<compile_context>
chip_gen: v5e
topology: v5e:2x2
jax: 0.10.0
libtpu: 0.0.40
codegen_flags: <defaults>
</compile_context>

<pallas_src>
import functools

import jax
import jax.numpy as jnp
from jax.experimental import pallas as pl
from jax.experimental.pallas import tpu as pltpu

EPS = 1e-5
VMEM_LIMIT = 32 * 1024 * 1024  # >= scoped default everywhere; raise toward ~100 MiB on v5e/v6e


# ----------------------------------------------------------------------------
# Stage kernel: (optional fused input-BN+ReLU) -> 3x3 conv -> partial BN stats
# ----------------------------------------------------------------------------
def conv_stage_kernel(x_ref, w_ref, scale_ref, shift_ref,
                      y_ref, s1_ref, s2_ref,
                      hbuf, acc_ref,
                      *, H, W, apply_input_bn, compute_dtype):
    """One conv stage for one batch image.

    x_ref:     (H, W, Cin)       input activation (pre-BN conv output for stage 2)
    w_ref:     (9, Cin, Cout)    conv taps, k = kh*3 + kw
    scale_ref: (1, Cin)          folded BN scale for the *input* (stage 2 only)
    shift_ref: (1, Cin)          folded BN shift for the *input* (stage 2 only)
    y_ref:     (H, W, Cout)      conv output (pre-BN)
    s1_ref:    (1, Cout)         per-image sum_y   (global BN stats, reduced outside)
    s2_ref:    (1, Cout)         per-image sum_y^2
    hbuf:      (H+2, W+2, Cin)   zero-padded halo scratch (VMEM)
    acc_ref:   (H*W, Cout) f32   matmul accumulator (VMEM)
    """
    cin = x_ref.shape[-1]
    cout = y_ref.shape[-1]

    h = x_ref[...].astype(jnp.float32)
    if apply_input_bn:
        # Previous stage's BatchNorm + ReLU folded to one FMA + max, on the fly.
        scale = scale_ref[...].reshape(1, 1, cin)
        shift = shift_ref[...].reshape(1, 1, cin)
        h = jnp.maximum(h * scale + shift, 0.0)

    # Zero-padded halo for the "SAME" 3x3 conv lives entirely in VMEM.
    hbuf[...] = jnp.zeros_like(hbuf)
    hbuf[pl.ds(1, H), pl.ds(1, W), :] = h.astype(hbuf.dtype)

    # 3x3 conv as 9 shifted-tap matmuls accumulated in f32 (in-kernel im2col).
    acc_ref[...] = jnp.zeros_like(acc_ref)
    for kh in range(3):
        for kw in range(3):
            patch = hbuf[pl.ds(kh, H), pl.ds(kw, W), :]          # (H, W, Cin)
            lhs = patch.reshape(H * W, cin).astype(compute_dtype)
            acc_ref[...] += jnp.dot(lhs, w_ref[kh * 3 + kw],
                                    preferred_element_type=jnp.float32)

    acc = acc_ref[...]
    y_ref[...] = acc.reshape(H, W, cout)
    # Per-image partial BatchNorm statistics (kept f32).
    s1_ref[...] = jnp.sum(acc, axis=0, keepdims=True)
    s2_ref[...] = jnp.sum(acc * acc, axis=0, keepdims=True)


def conv_stage(x, w9, in_scale, in_shift, *, apply_input_bn,
               compute_dtype=jnp.float32):
    """3x3 SAME conv over an NHWC batch; returns (y_pre_bn, sum_y, sum_y2)."""
    N, H, W, Cin = x.shape
    Cout = w9.shape[-1]

    kernel = functools.partial(conv_stage_kernel, H=H, W=W,
                               apply_input_bn=apply_input_bn,
                               compute_dtype=compute_dtype)
    grid_spec = pltpu.PrefetchScalarGridSpec(
        num_scalar_prefetch=0,
        grid=(N,),
        in_specs=[
            pl.BlockSpec((None, H, W, Cin), lambda n: (n, 0, 0, 0)),
            pl.BlockSpec((9, Cin, Cout), lambda n: (0, 0, 0)),   # stays resident
            pl.BlockSpec((1, Cin), lambda n: (0, 0)),
            pl.BlockSpec((1, Cin), lambda n: (0, 0)),
        ],
        out_specs=(
            pl.BlockSpec((None, H, W, Cout), lambda n: (n, 0, 0, 0)),
            pl.BlockSpec((None, 1, Cout), lambda n: (n, 0, 0)),
            pl.BlockSpec((None, 1, Cout), lambda n: (n, 0, 0)),
        ),
        scratch_shapes=[
            pltpu.VMEM((H + 2, W + 2, Cin), compute_dtype),
            pltpu.VMEM((H * W, Cout), jnp.float32),
        ],
    )
    return pl.pallas_call(
        kernel,
        grid_spec=grid_spec,
        out_shape=(
            jax.ShapeDtypeStruct((N, H, W, Cout), jnp.float32),
            jax.ShapeDtypeStruct((N, 1, Cout), jnp.float32),
            jax.ShapeDtypeStruct((N, 1, Cout), jnp.float32),
        ),
        compiler_params=pltpu.CompilerParams(
            dimension_semantics=("parallel",),   # images independent -> v7x 2-TC sharding
            vmem_limit_bytes=VMEM_LIMIT,
        ),
    )(x, w9.astype(compute_dtype), in_scale, in_shift)


# ----------------------------------------------------------------------------
# Final folded BatchNorm + ReLU: tiled, lane-dense elementwise kernel
# ----------------------------------------------------------------------------
def bn_relu_kernel(y_ref, scale_ref, shift_ref, o_ref):
    o_ref[...] = jnp.maximum(y_ref[...] * scale_ref[...] + shift_ref[...], 0.0)


def _pick_row_tile(m, cap=1024):
    for t in (1024, 512, 256, 128, 64, 32, 16, 8):
        if t <= cap and m % t == 0:
            return t
    return m


def bn_relu(y2d, scale, shift):
    M, Cp = y2d.shape
    tm = _pick_row_tile(M)
    grid_spec = pltpu.PrefetchScalarGridSpec(
        num_scalar_prefetch=0,
        grid=(M // tm,),
        in_specs=[
            pl.BlockSpec((tm, Cp), lambda i: (i, 0)),
            pl.BlockSpec((1, Cp), lambda i: (0, 0)),
            pl.BlockSpec((1, Cp), lambda i: (0, 0)),
        ],
        out_specs=pl.BlockSpec((tm, Cp), lambda i: (i, 0)),
    )
    return pl.pallas_call(
        bn_relu_kernel,
        grid_spec=grid_spec,
        out_shape=jax.ShapeDtypeStruct((M, Cp), jnp.float32),
        compiler_params=pltpu.CompilerParams(
            dimension_semantics=("parallel",),
            vmem_limit_bytes=VMEM_LIMIT,
        ),
    )(y2d, scale, shift)


def _finalize_bn(s1, s2, gamma_p, beta_p, count):
    """Fold training-mode BN (biased variance) into per-channel scale/shift (f32)."""
    mean = s1 / count
    var = jnp.maximum(s2 / count - mean * mean, 0.0)
    scale = gamma_p * jax.lax.rsqrt(var + EPS)
    shift = beta_p - mean * scale
    return scale.reshape(1, -1).astype(jnp.float32), shift.reshape(1, -1).astype(jnp.float32)


# ----------------------------------------------------------------------------
# ConvBlock forward
# ----------------------------------------------------------------------------
def conv_block(x_nchw, params, *, compute_dtype=jnp.float32):
    """Pallas ConvBlock forward.  x_nchw: (N, Cin, H, W) float32."""
    (w1, _b1, g1, bt1), (w2, _b2, g2, bt2) = params
    N, Cin, H, W = x_nchw.shape
    Cout = w1.shape[0]
    Cp = ((Cout + 127) // 128) * 128           # lane-dense padded channel count
    count = float(N * H * W)

    x = jnp.transpose(x_nchw, (0, 2, 3, 1))    # NCHW -> NHWC

    # PyTorch conv weight (Cout, Cin, 3, 3) -> (9, Cin, Cout), Cout padded to Cp.
    w1_9 = jnp.transpose(w1, (2, 3, 1, 0)).reshape(9, Cin, Cout)
    w1_9 = jnp.pad(w1_9, ((0, 0), (0, 0), (0, Cp - Cout)))
    w2_9 = jnp.transpose(w2, (2, 3, 1, 0)).reshape(9, Cout, Cout)
    w2_9 = jnp.pad(w2_9, ((0, 0), (0, Cp - Cout), (0, Cp - Cout)))
    g1p, bt1p = jnp.pad(g1, (0, Cp - Cout)), jnp.pad(bt1, (0, Cp - Cout))
    g2p, bt2p = jnp.pad(g2, (0, Cp - Cout)), jnp.pad(bt2, (0, Cp - Cout))
    # Conv biases b1/b2 are dropped on purpose: training-mode BatchNorm subtracts
    # the batch mean immediately afterwards, so a per-channel constant cancels.

    one = jnp.ones((1, Cin), jnp.float32)
    zero = jnp.zeros((1, Cin), jnp.float32)

    # Stage 1: conv1 + per-image partial BN1 statistics.
    y1, a1, q1 = conv_stage(x, w1_9, one, zero,
                            apply_input_bn=False, compute_dtype=compute_dtype)
    scale1, shift1 = _finalize_bn(jnp.sum(a1, axis=(0, 1)), jnp.sum(q1, axis=(0, 1)),
                                  g1p, bt1p, count)

    # Stage 2: BN1+ReLU fused on the fly + conv2 + partial BN2 statistics.
    y2, a2, q2 = conv_stage(y1, w2_9, scale1, shift1,
                            apply_input_bn=True, compute_dtype=compute_dtype)
    scale2, shift2 = _finalize_bn(jnp.sum(a2, axis=(0, 1)), jnp.sum(q2, axis=(0, 1)),
                                  g2p, bt2p, count)

    # Final BN2 + ReLU: lane-dense tiled elementwise kernel; slice padding once.
    out2d = bn_relu(y2.reshape(N * H * W, Cp), scale2, shift2)
    out = out2d.reshape(N, H, W, Cp)[..., :Cout]
    return jnp.transpose(out, (0, 3, 1, 2))    # NHWC -> NCHW


# ----------------------------------------------------------------------------
# Pure-JAX reference (PyTorch semantics: conv+bias, training-mode BN, ReLU)
# ----------------------------------------------------------------------------
def reference(x_nchw, params):
    def stage(x, w, b, g, bt):
        y = jax.lax.conv_general_dilated(
            x, w, window_strides=(1, 1), padding="SAME",
            dimension_numbers=("NCHW", "OIHW", "NCHW"))
        y = y + b.reshape(1, -1, 1, 1)
        mean = y.mean(axis=(0, 2, 3), keepdims=True)
        var = ((y - mean) ** 2).mean(axis=(0, 2, 3), keepdims=True)
        y = (y - mean) / jnp.sqrt(var + EPS)
        y = y * g.reshape(1, -1, 1, 1) + bt.reshape(1, -1, 1, 1)
        return jnp.maximum(y, 0.0)
    (w1, b1, g1, bt1), (w2, b2, g2, bt2) = params
    return stage(stage(x_nchw, w1, b1, g1, bt1), w2, b2, g2, bt2)


def init_params(key, ch_in, ch_out):
    """Deterministic synthetic parameters (shapes match nn.Conv2d / nn.BatchNorm2d)."""
    ks = jax.random.split(key, 8)
    w1 = 0.1 * jax.random.normal(ks[0], (ch_out, ch_in, 3, 3), jnp.float32)
    b1 = 0.1 * jax.random.normal(ks[1], (ch_out,), jnp.float32)
    g1 = 1.0 + 0.1 * jax.random.normal(ks[2], (ch_out,), jnp.float32)
    bt1 = 0.1 * jax.random.normal(ks[3], (ch_out,), jnp.float32)
    w2 = 0.1 * jax.random.normal(ks[4], (ch_out, ch_out, 3, 3), jnp.float32)
    b2 = 0.1 * jax.random.normal(ks[5], (ch_out,), jnp.float32)
    g2 = 1.0 + 0.1 * jax.random.normal(ks[6], (ch_out,), jnp.float32)
    bt2 = 0.1 * jax.random.normal(ks[7], (ch_out,), jnp.float32)
    return (w1, b1, g1, bt1), (w2, b2, g2, bt2)


if __name__ == "__main__":
    key = jax.random.PRNGKey(0)
    kx, kp = jax.random.split(key)

    N, CH_IN, CH_OUT, H, W = 2, 4, 8, 16, 16
    x = jax.random.normal(kx, (N, CH_IN, H, W), jnp.float32)
    params = init_params(kp, CH_IN, CH_OUT)

    out = jax.jit(conv_block)(x, params)
    out = jax.block_until_ready(out)

    ref = jax.block_until_ready(reference(x, params))
    assert out.shape == (N, CH_OUT, H, W), out.shape
    assert jnp.allclose(out, ref, rtol=1e-3, atol=1e-3), float(jnp.max(jnp.abs(out - ref)))

    print("KERNEL_OK")
</pallas_src>

<mosaic_0001>
module attributes {stable_mosaic.version = 11 : i64} {
  func.func @conv_stage_kernel(%arg0: i32, %arg1: memref<1x16x16x4xf32, #tpu.memory_space<vmem>>, %arg2: memref<9x4x128xf32, #tpu.memory_space<vmem>>, %arg3: memref<1x4xf32, #tpu.memory_space<vmem>>, %arg4: memref<1x4xf32, #tpu.memory_space<vmem>>, %arg5: memref<1x16x16x128xf32, #tpu.memory_space<vmem>>, %arg6: memref<1x1x128xf32, #tpu.memory_space<vmem>>, %arg7: memref<1x1x128xf32, #tpu.memory_space<vmem>>, %arg8: memref<18x18x4xf32, #tpu.memory_space<vmem>>, %arg9: memref<256x128xf32, #tpu.memory_space<vmem>>) attributes {dimension_semantics = [#tpu.dimension_semantics<parallel>], iteration_bounds = array<i64: 2>, scalar_prefetch = 0 : i64, scratch_operands = 2 : i64, tpu.core_type = #tpu.core_type<tc>, window_params = [{transform_indices = @transform_0, window_bounds = array<i64: 1, 16, 16, 4>}, {pipeline_mode = #tpu.pipeline_mode<synchronous>, transform_indices = @transform_1, window_bounds = array<i64: 9, 4, 128>}, {pipeline_mode = #tpu.pipeline_mode<synchronous>, transform_indices = @transform_2, window_bounds = array<i64: 1, 4>}, {pipeline_mode = #tpu.pipeline_mode<synchronous>, transform_indices = @transform_3, window_bounds = array<i64: 1, 4>}, {transform_indices = @transform_4, window_bounds = array<i64: 1, 16, 16, 128>}, {transform_indices = @transform_5, window_bounds = array<i64: 1, 1, 128>}, {transform_indices = @transform_6, window_bounds = array<i64: 1, 1, 128>}]} {
    %c0 = arith.constant 0 : index
    %c0_0 = arith.constant 0 : index
    %c0_1 = arith.constant 0 : index
    %c0_2 = arith.constant 0 : index
    %0 = vector.load %arg1[%c0, %c0_0, %c0_1, %c0_2] : memref<1x16x16x4xf32, #tpu.memory_space<vmem>>, vector<1x16x16x4xf32>
    %1 = vector.shape_cast %0 : vector<1x16x16x4xf32> to vector<16x16x4xf32>
    %cst = arith.constant 0.000000e+00 : f32
    %2 = vector.broadcast %cst : f32 to vector<18x18x4xf32>
    %c0_3 = arith.constant 0 : index
    %c0_4 = arith.constant 0 : index
    %c0_5 = arith.constant 0 : index
    %3 = vector.load %arg8[%c0_3, %c0_4, %c0_5] : memref<18x18x4xf32, #tpu.memory_space<vmem>>, vector<18x18x4xf32>
    tpu.vector_store %arg8[%c0_3, %c0_4, %c0_5], %2 {strides = array<i32>} : memref<18x18x4xf32, #tpu.memory_space<vmem>>, vector<18x18x4xf32>,
    %c1 = arith.constant 1 : index
    %c1_6 = arith.constant 1 : index
    %c0_7 = arith.constant 0 : index
    %4 = vector.load %arg8[%c1, %c1_6, %c0_7] : memref<18x18x4xf32, #tpu.memory_space<vmem>>, vector<16x16x4xf32>
    tpu.vector_store %arg8[%c1, %c1_6, %c0_7], %1 {strides = array<i32>} : memref<18x18x4xf32, #tpu.memory_space<vmem>>, vector<16x16x4xf32>,
    %cst_8 = arith.constant 0.000000e+00 : f32
    %5 = vector.broadcast %cst_8 : f32 to vector<256x128xf32>
    %c0_9 = arith.constant 0 : index
    %c0_10 = arith.constant 0 : index
    %6 = vector.load %arg9[%c0_9, %c0_10] : memref<256x128xf32, #tpu.memory_space<vmem>>, vector<256x128xf32>
    tpu.vector_store %arg9[%c0_9, %c0_10], %5 {strides = array<i32>} : memref<256x128xf32, #tpu.memory_space<vmem>>, vector<256x128xf32>,
    %c0_11 = arith.constant 0 : index
    %c0_12 = arith.constant 0 : index
    %c0_13 = arith.constant 0 : index
    %7 = vector.load %arg8[%c0_11, %c0_12, %c0_13] : memref<18x18x4xf32, #tpu.memory_space<vmem>>, vector<16x16x4xf32>
    %8 = vector.shape_cast %7 : vector<16x16x4xf32> to vector<256x4xf32>
    %c0_14 = arith.constant 0 : index
    %c0_15 = arith.constant 0 : index
    %9 = vector.load %arg9[%c0_14, %c0_15] : memref<256x128xf32, #tpu.memory_space<vmem>>, vector<256x128xf32>
    %c0_16 = arith.constant 0 : index
    %c0_17 = arith.constant 0 : index
    %c0_18 = arith.constant 0 : index
    %10 = vector.load %arg2[%c0_16, %c0_17, %c0_18] : memref<9x4x128xf32, #tpu.memory_space<vmem>>, vector<1x4x128xf32>
    %11 = vector.shape_cast %10 : vector<1x4x128xf32> to vector<4x128xf32>
    %cst_19 = arith.constant dense<0.000000e+00> : vector<256x128xf32>
    %12 = tpu.matmul %8, %11, %cst_19 {dimension_numbers = #tpu.dot_dimension_numbers<[1], [0], [0], [1], [0, 0, 1, 1], [], []>} : vector<256x4xf32>, vector<4x128xf32>, vector<256x128xf32> -> vector<256x128xf32>
    %13 = arith.addf %9, %12 : vector<256x128xf32>
    %c0_20 = arith.constant 0 : index
    %c0_21 = arith.constant 0 : index
    %14 = vector.load %arg9[%c0_20, %c0_21] : memref<256x128xf32, #tpu.memory_space<vmem>>, vector<256x128xf32>
    tpu.vector_store %arg9[%c0_20, %c0_21], %13 {strides = array<i32>} : memref<256x128xf32, #tpu.memory_space<vmem>>, vector<256x128xf32>,
    %c0_22 = arith.constant 0 : index
    %c1_23 = arith.constant 1 : index
    %c0_24 = arith.constant 0 : index
    %15 = vector.load %arg8[%c0_22, %c1_23, %c0_24] : memref<18x18x4xf32, #tpu.memory_space<vmem>>, vector<16x16x4xf32>
    %16 = vector.shape_cast %15 : vector<16x16x4xf32> to vector<256x4xf32>
    %c0_25 = arith.constant 0 : index
    %c0_26 = arith.constant 0 : index
    %17 = vector.load %arg9[%c0_25, %c0_26] : memref<256x128xf32, #tpu.memory_space<vmem>>, vector<256x128xf32>
    %c1_27 = arith.constant 1 : index
    %c0_28 = arith.constant 0 : index
    %c0_29 = arith.constant 0 : index
    %18 = vector.load %arg2[%c1_27, %c0_28, %c0_29] : memref<9x4x128xf32, #tpu.memory_space<vmem>>, vector<1x4x128xf32>
    %19 = vector.shape_cast %18 : vector<1x4x128xf32> to vector<4x128xf32>
    %cst_30 = arith.constant dense<0.000000e+00> : vector<256x128xf32>
    %20 = tpu.matmul %16, %19, %cst_30 {dimension_numbers = #tpu.dot_dimension_numbers<[1], [0], [0], [1], [0, 0, 1, 1], [], []>} : vector<256x4xf32>, vector<4x128xf32>, vector<256x128xf32> -> vector<256x128xf32>
    %21 = arith.addf %17, %20 : vector<256x128xf32>
    %c0_31 = arith.constant 0 : index
    %c0_32 = arith.constant 0 : index
    %22 = vector.load %arg9[%c0_31, %c0_32] : memref<256x128xf32, #tpu.memory_space<vmem>>, vector<256x128xf32>
    tpu.vector_store %arg9[%c0_31, %c0_32], %21 {strides = array<i32>} : memref<256x128xf32, #tpu.memory_space<vmem>>, vector<256x128xf32>,
    %c0_33 = arith.constant 0 : index
    %c2 = arith.constant 2 : index
    %c0_34 = arith.constant 0 : index
    %23 = vector.load %arg8[%c0_33, %c2, %c0_34] : memref<18x18x4xf32, #tpu.memory_space<vmem>>, vector<16x16x4xf32>
    %24 = vector.shape_cast %23 : vector<16x16x4xf32> to vector<256x4xf32>
    %c0_35 = arith.constant 0 : index
    %c0_36 = arith.constant 0 : index
    %25 = vector.load %arg9[%c0_35, %c0_36] : memref<256x128xf32, #tpu.memory_space<vmem>>, vector<256x128xf32>
    %c2_37 = arith.constant 2 : index
    %c0_38 = arith.constant 0 : index
    %c0_39 = arith.constant 0 : index
    %26 = vector.load %arg2[%c2_37, %c0_38, %c0_39] : memref<9x4x128xf32, #tpu.memory_space<vmem>>, vector<1x4x128xf32>
    %27 = vector.shape_cast %26 : vector<1x4x128xf32> to vector<4x128xf32>
    %cst_40 = arith.constant dense<0.000000e+00> : vector<256x128xf32>
    %28 = tpu.matmul %24, %27, %cst_40 {dimension_numbers = #tpu.dot_dimension_numbers<[1], [0], [0], [1], [0, 0, 1, 1], [], []>} : vector<256x4xf32>, vector<4x128xf32>, vector<256x128xf32> -> vector<256x128xf32>
    %29 = arith.addf %25, %28 : vector<256x128xf32>
    %c0_41 = arith.constant 0 : index
    %c0_42 = arith.constant 0 : index
    %30 = vector.load %arg9[%c0_41, %c0_42] : memref<256x128xf32, #tpu.memory_space<vmem>>, vector<256x128xf32>
    tpu.vector_store %arg9[%c0_41, %c0_42], %29 {strides = array<i32>} : memref<256x128xf32, #tpu.memory_space<vmem>>, vector<256x128xf32>,
    %c1_43 = arith.constant 1 : index
    %c0_44 = arith.constant 0 : index
    %c0_45 = arith.constant 0 : index
    %31 = vector.load %arg8[%c1_43, %c0_44, %c0_45] : memref<18x18x4xf32, #tpu.memory_space<vmem>>, vector<16x16x4xf32>
    %32 = vector.shape_cast %31 : vector<16x16x4xf32> to vector<256x4xf32>
    %c0_46 = arith.constant 0 : index
    %c0_47 = arith.constant 0 : index
    %33 = vector.load %arg9[%c0_46, %c0_47] : memref<256x128xf32, #tpu.memory_space<vmem>>, vector<256x128xf32>
    %c3 = arith.constant 3 : index
    %c0_48 = arith.constant 0 : index
    %c0_49 = arith.constant 0 : index
    %34 = vector.load %arg2[%c3, %c0_48, %c0_49] : memref<9x4x128xf32, #tpu.memory_space<vmem>>, vector<1x4x128xf32>
    %35 = vector.shape_cast %34 : vector<1x4x128xf32> to vector<4x128xf32>
    %cst_50 = arith.constant dense<0.000000e+00> : vector<256x128xf32>
    %36 = tpu.matmul %32, %35, %cst_50 {dimension_numbers = #tpu.dot_dimension_numbers<[1], [0], [0], [1], [0, 0, 1, 1], [], []>} : vector<256x4xf32>, vector<4x128xf32>, vector<256x128xf32> -> vector<256x128xf32>
    %37 = arith.addf %33, %36 : vector<256x128xf32>
    %c0_51 = arith.constant 0 : index
    %c0_52 = arith.constant 0 : index
    %38 = vector.load %arg9[%c0_51, %c0_52] : memref<256x128xf32, #tpu.memory_space<vmem>>, vector<256x128xf32>
    tpu.vector_store %arg9[%c0_51, %c0_52], %37 {strides = array<i32>} : memref<256x128xf32, #tpu.memory_space<vmem>>, vector<256x128xf32>,
    %c1_53 = arith.constant 1 : index
    %c1_54 = arith.constant 1 : index
    %c0_55 = arith.constant 0 : index
    %39 = vector.load %arg8[%c1_53, %c1_54, %c0_55] : memref<18x18x4xf32, #tpu.memory_space<vmem>>, vector<16x16x4xf32>
    %40 = vector.shape_cast %39 : vector<16x16x4xf32> to vector<256x4xf32>
    %c0_56 = arith.constant 0 : index
    %c0_57 = arith.constant 0 : index
    %41 = vector.load %arg9[%c0_56, %c0_57] : memref<256x128xf32, #tpu.memory_space<vmem>>, vector<256x128xf32>
    %c4 = arith.constant 4 : index
    %c0_58 = arith.constant 0 : index
    %c0_59 = arith.constant 0 : index
    %42 = vector.load %arg2[%c4, %c0_58, %c0_59] : memref<9x4x128xf32, #tpu.memory_space<vmem>>, vector<1x4x128xf32>
    %43 = vector.shape_cast %42 : vector<1x4x128xf32> to vector<4x128xf32>
    %cst_60 = arith.constant dense<0.000000e+00> : vector<256x128xf32>
    %44 = tpu.matmul %40, %43, %cst_60 {dimension_numbers = #tpu.dot_dimension_numbers<[1], [0], [0], [1], [0, 0, 1, 1], [], []>} : vector<256x4xf32>, vector<4x128xf32>, vector<256x128xf32> -> vector<256x128xf32>
    %45 = arith.addf %41, %44 : vector<256x128xf32>
    %c0_61 = arith.constant 0 : index
    %c0_62 = arith.constant 0 : index
    %46 = vector.load %arg9[%c0_61, %c0_62] : memref<256x128xf32, #tpu.memory_space<vmem>>, vector<256x128xf32>
    tpu.vector_store %arg9[%c0_61, %c0_62], %45 {strides = array<i32>} : memref<256x128xf32, #tpu.memory_space<vmem>>, vector<256x128xf32>,
    %c1_63 = arith.constant 1 : index
    %c2_64 = arith.constant 2 : index
    %c0_65 = arith.constant 0 : index
    %47 = vector.load %arg8[%c1_63, %c2_64, %c0_65] : memref<18x18x4xf32, #tpu.memory_space<vmem>>, vector<16x16x4xf32>
    %48 = vector.shape_cast %47 : vector<16x16x4xf32> to vector<256x4xf32>
    %c0_66 = arith.constant 0 : index
    %c0_67 = arith.constant 0 : index
    %49 = vector.load %arg9[%c0_66, %c0_67] : memref<256x128xf32, #tpu.memory_space<vmem>>, vector<256x128xf32>
    %c5 = arith.constant 5 : index
    %c0_68 = arith.constant 0 : index
    %c0_69 = arith.constant 0 : index
    %50 = vector.load %arg2[%c5, %c0_68, %c0_69] : memref<9x4x128xf32, #tpu.memory_space<vmem>>, vector<1x4x128xf32>
    %51 = vector.shape_cast %50 : vector<1x4x128xf32> to vector<4x128xf32>
    %cst_70 = arith.constant dense<0.000000e+00> : vector<256x128xf32>
    %52 = tpu.matmul %48, %51, %cst_70 {dimension_numbers = #tpu.dot_dimension_numbers<[1], [0], [0], [1], [0, 0, 1, 1], [], []>} : vector<256x4xf32>, vector<4x128xf32>, vector<256x128xf32> -> vector<256x128xf32>
    %53 = arith.addf %49, %52 : vector<256x128xf32>
    %c0_71 = arith.constant 0 : index
    %c0_72 = arith.constant 0 : index
    %54 = vector.load %arg9[%c0_71, %c0_72] : memref<256x128xf32, #tpu.memory_space<vmem>>, vector<256x128xf32>
    tpu.vector_store %arg9[%c0_71, %c0_72], %53 {strides = array<i32>} : memref<256x128xf32, #tpu.memory_space<vmem>>, vector<256x128xf32>,
    %c2_73 = arith.constant 2 : index
    %c0_74 = arith.constant 0 : index
    %c0_75 = arith.constant 0 : index
    %55 = vector.load %arg8[%c2_73, %c0_74, %c0_75] : memref<18x18x4xf32, #tpu.memory_space<vmem>>, vector<16x16x4xf32>
    %56 = vector.shape_cast %55 : vector<16x16x4xf32> to vector<256x4xf32>
    %c0_76 = arith.constant 0 : index
    %c0_77 = arith.constant 0 : index
    %57 = vector.load %arg9[%c0_76, %c0_77] : memref<256x128xf32, #tpu.memory_space<vmem>>, vector<256x128xf32>
    %c6 = arith.constant 6 : index
    %c0_78 = arith.constant 0 : index
    %c0_79 = arith.constant 0 : index
    %58 = vector.load %arg2[%c6, %c0_78, %c0_79] : memref<9x4x128xf32, #tpu.memory_space<vmem>>, vector<1x4x128xf32>
    %59 = vector.shape_cast %58 : vector<1x4x128xf32> to vector<4x128xf32>
    %cst_80 = arith.constant dense<0.000000e+00> : vector<256x128xf32>
    %60 = tpu.matmul %56, %59, %cst_80 {dimension_numbers = #tpu.dot_dimension_numbers<[1], [0], [0], [1], [0, 0, 1, 1], [], []>} : vector<256x4xf32>, vector<4x128xf32>, vector<256x128xf32> -> vector<256x128xf32>
    %61 = arith.addf %57, %60 : vector<256x128xf32>
    %c0_81 = arith.constant 0 : index
    %c0_82 = arith.constant 0 : index
    %62 = vector.load %arg9[%c0_81, %c0_82] : memref<256x128xf32, #tpu.memory_space<vmem>>, vector<256x128xf32>
    tpu.vector_store %arg9[%c0_81, %c0_82], %61 {strides = array<i32>} : memref<256x128xf32, #tpu.memory_space<vmem>>, vector<256x128xf32>,
    %c2_83 = arith.constant 2 : index
    %c1_84 = arith.constant 1 : index
    %c0_85 = arith.constant 0 : index
    %63 = vector.load %arg8[%c2_83, %c1_84, %c0_85] : memref<18x18x4xf32, #tpu.memory_space<vmem>>, vector<16x16x4xf32>
    %64 = vector.shape_cast %63 : vector<16x16x4xf32> to vector<256x4xf32>
    %c0_86 = arith.constant 0 : index
    %c0_87 = arith.constant 0 : index
    %65 = vector.load %arg9[%c0_86, %c0_87] : memref<256x128xf32, #tpu.memory_space<vmem>>, vector<256x128xf32>
    %c7 = arith.constant 7 : index
    %c0_88 = arith.constant 0 : index
    %c0_89 = arith.constant 0 : index
    %66 = vector.load %arg2[%c7, %c0_88, %c0_89] : memref<9x4x128xf32, #tpu.memory_space<vmem>>, vector<1x4x128xf32>
    %67 = vector.shape_cast %66 : vector<1x4x128xf32> to vector<4x128xf32>
    %cst_90 = arith.constant dense<0.000000e+00> : vector<256x128xf32>
    %68 = tpu.matmul %64, %67, %cst_90 {dimension_numbers = #tpu.dot_dimension_numbers<[1], [0], [0], [1], [0, 0, 1, 1], [], []>} : vector<256x4xf32>, vector<4x128xf32>, vector<256x128xf32> -> vector<256x128xf32>
    %69 = arith.addf %65, %68 : vector<256x128xf32>
    %c0_91 = arith.constant 0 : index
    %c0_92 = arith.constant 0 : index
    %70 = vector.load %arg9[%c0_91, %c0_92] : memref<256x128xf32, #tpu.memory_space<vmem>>, vector<256x128xf32>
    tpu.vector_store %arg9[%c0_91, %c0_92], %69 {strides = array<i32>} : memref<256x128xf32, #tpu.memory_space<vmem>>, vector<256x128xf32>,
    %c2_93 = arith.constant 2 : index
    %c2_94 = arith.constant 2 : index
    %c0_95 = arith.constant 0 : index
    %71 = vector.load %arg8[%c2_93, %c2_94, %c0_95] : memref<18x18x4xf32, #tpu.memory_space<vmem>>, vector<16x16x4xf32>
    %72 = vector.shape_cast %71 : vector<16x16x4xf32> to vector<256x4xf32>
    %c0_96 = arith.constant 0 : index
    %c0_97 = arith.constant 0 : index
    %73 = vector.load %arg9[%c0_96, %c0_97] : memref<256x128xf32, #tpu.memory_space<vmem>>, vector<256x128xf32>
    %c8 = arith.constant 8 : index
    %c0_98 = arith.constant 0 : index
    %c0_99 = arith.constant 0 : index
    %74 = vector.load %arg2[%c8, %c0_98, %c0_99] : memref<9x4x128xf32, #tpu.memory_space<vmem>>, vector<1x4x128xf32>
    %75 = vector.shape_cast %74 : vector<1x4x128xf32> to vector<4x128xf32>
    %cst_100 = arith.constant dense<0.000000e+00> : vector<256x128xf32>
    %76 = tpu.matmul %72, %75, %cst_100 {dimension_numbers = #tpu.dot_dimension_numbers<[1], [0], [0], [1], [0, 0, 1, 1], [], []>} : vector<256x4xf32>, vector<4x128xf32>, vector<256x128xf32> -> vector<256x128xf32>
    %77 = arith.addf %73, %76 : vector<256x128xf32>
    %c0_101 = arith.constant 0 : index
    %c0_102 = arith.constant 0 : index
    %78 = vector.load %arg9[%c0_101, %c0_102] : memref<256x128xf32, #tpu.memory_space<vmem>>, vector<256x128xf32>
    tpu.vector_store %arg9[%c0_101, %c0_102], %77 {strides = array<i32>} : memref<256x128xf32, #tpu.memory_space<vmem>>, vector<256x128xf32>,
    %c0_103 = arith.constant 0 : index
    %c0_104 = arith.constant 0 : index
    %79 = vector.load %arg9[%c0_103, %c0_104] : memref<256x128xf32, #tpu.memory_space<vmem>>, vector<256x128xf32>
    %80 = vector.shape_cast %79 : vector<256x128xf32> to vector<16x16x128xf32>
    %c0_105 = arith.constant 0 : index
    %c0_106 = arith.constant 0 : index
    %c0_107 = arith.constant 0 : index
    %c0_108 = arith.constant 0 : index
    %81 = vector.load %arg5[%c0_105, %c0_106, %c0_107, %c0_108] : memref<1x16x16x128xf32, #tpu.memory_space<vmem>>, vector<1x16x16x128xf32>
    %82 = vector.shape_cast %81 : vector<1x16x16x128xf32> to vector<16x16x128xf32>
    %83 = vector.shape_cast %80 : vector<16x16x128xf32> to vector<1x16x16x128xf32>
    tpu.vector_store %arg5[%c0_105, %c0_106, %c0_107, %c0_108], %83 {strides = array<i32>} : memref<1x16x16x128xf32, #tpu.memory_space<vmem>>, vector<1x16x16x128xf32>,
    %cst_109 = arith.constant dense<0.000000e+00> : vector<128xf32>
    %84 = vector.multi_reduction <add>, %79, %cst_109 [0] : vector<256x128xf32> to vector<128xf32>
    %85 = vector.shape_cast %84 : vector<128xf32> to vector<1x128xf32>
    %c0_110 = arith.constant 0 : index
    %c0_111 = arith.constant 0 : index
    %c0_112 = arith.constant 0 : index
    %86 = vector.load %arg6[%c0_110, %c0_111, %c0_112] : memref<1x1x128xf32, #tpu.memory_space<vmem>>, vector<1x1x128xf32>
    %87 = vector.shape_cast %86 : vector<1x1x128xf32> to vector<1x128xf32>
    %88 = vector.shape_cast %85 : vector<1x128xf32> to vector<1x1x128xf32>
    tpu.vector_store %arg6[%c0_110, %c0_111, %c0_112], %88 {strides = array<i32>} : memref<1x1x128xf32, #tpu.memory_space<vmem>>, vector<1x1x128xf32>,
    %89 = arith.mulf %79, %79 : vector<256x128xf32>
    %cst_113 = arith.constant dense<0.000000e+00> : vector<128xf32>
    %90 = vector.multi_reduction <add>, %89, %cst_113 [0] : vector<256x128xf32> to vector<128xf32>
    %91 = vector.shape_cast %90 : vector<128xf32> to vector<1x128xf32>
    %c0_114 = arith.constant 0 : index
    %c0_115 = arith.constant 0 : index
    %c0_116 = arith.constant 0 : index
    %92 = vector.load %arg7[%c0_114, %c0_115, %c0_116] : memref<1x1x128xf32, #tpu.memory_space<vmem>>, vector<1x1x128xf32>
    %93 = vector.shape_cast %92 : vector<1x1x128xf32> to vector<1x128xf32>
    %94 = vector.shape_cast %91 : vector<1x128xf32> to vector<1x1x128xf32>
    tpu.vector_store %arg7[%c0_114, %c0_115, %c0_116], %94 {strides = array<i32>} : memref<1x1x128xf32, #tpu.memory_space<vmem>>, vector<1x1x128xf32>,
    return
  }
  func.func @transform_0(%arg0: i32) -> (i32, i32, i32, i32) {
    %c0_i32 = arith.constant 0 : i32
    %c0_i32_0 = arith.constant 0 : i32
    %c0_i32_1 = arith.constant 0 : i32
    %c0_i32_2 = arith.constant 0 : i32
    return %arg0, %c0_i32, %c0_i32_0, %c0_i32_1 : i32, i32, i32, i32
  }
  func.func @transform_1(%arg0: i32) -> (i32, i32, i32) {
    %c0_i32 = arith.constant 0 : i32
    %c0_i32_0 = arith.constant 0 : i32
    %c0_i32_1 = arith.constant 0 : i32
    %c0_i32_2 = arith.constant 0 : i32
    return %c0_i32, %c0_i32_0, %c0_i32_1 : i32, i32, i32
  }
  func.func @transform_2(%arg0: i32) -> (i32, i32) {
    %c0_i32 = arith.constant 0 : i32
    %c0_i32_0 = arith.constant 0 : i32
    %c0_i32_1 = arith.constant 0 : i32
    return %c0_i32, %c0_i32_0 : i32, i32
  }
  func.func @transform_3(%arg0: i32) -> (i32, i32) {
    %c0_i32 = arith.constant 0 : i32
    %c0_i32_0 = arith.constant 0 : i32
    %c0_i32_1 = arith.constant 0 : i32
    return %c0_i32, %c0_i32_0 : i32, i32
  }
  func.func @transform_4(%arg0: i32) -> (i32, i32, i32, i32) {
    %c0_i32 = arith.constant 0 : i32
    %c0_i32_0 = arith.constant 0 : i32
    %c0_i32_1 = arith.constant 0 : i32
    %c0_i32_2 = arith.constant 0 : i32
    return %arg0, %c0_i32, %c0_i32_0, %c0_i32_1 : i32, i32, i32, i32
  }
  func.func @transform_5(%arg0: i32) -> (i32, i32, i32) {
    %c0_i32 = arith.constant 0 : i32
    %c0_i32_0 = arith.constant 0 : i32
    %c0_i32_1 = arith.constant 0 : i32
    return %arg0, %c0_i32, %c0_i32_0 : i32, i32, i32
  }
  func.func @transform_6(%arg0: i32) -> (i32, i32, i32) {
    %c0_i32 = arith.constant 0 : i32
    %c0_i32_0 = arith.constant 0 : i32
    %c0_i32_1 = arith.constant 0 : i32
    return %arg0, %c0_i32, %c0_i32_0 : i32, i32, i32
  }
}

module attributes {stable_mosaic.version = 11 : i64} {
  func.func @conv_stage_kernel(%arg0: i32, %arg1: memref<1x16x16x128xf32, #tpu.memory_space<vmem>>, %arg2: memref<9x128x128xf32, #tpu.memory_space<vmem>>, %arg3: memref<1x128xf32, #tpu.memory_space<vmem>>, %arg4: memref<1x128xf32, #tpu.memory_space<vmem>>, %arg5: memref<1x16x16x128xf32, #tpu.memory_space<vmem>>, %arg6: memref<1x1x128xf32, #tpu.memory_space<vmem>>, %arg7: memref<1x1x128xf32, #tpu.memory_space<vmem>>, %arg8: memref<18x18x128xf32, #tpu.memory_space<vmem>>, %arg9: memref<256x128xf32, #tpu.memory_space<vmem>>) attributes {dimension_semantics = [#tpu.dimension_semantics<parallel>], iteration_bounds = array<i64: 2>, scalar_prefetch = 0 : i64, scratch_operands = 2 : i64, tpu.core_type = #tpu.core_type<tc>, window_params = [{transform_indices = @transform_0, window_bounds = array<i64: 1, 16, 16, 128>}, {pipeline_mode = #tpu.pipeline_mode<synchronous>, transform_indices = @transform_1, window_bounds = array<i64: 9, 128, 128>}, {pipeline_mode = #tpu.pipeline_mode<synchronous>, transform_indices = @transform_2, window_bounds = array<i64: 1, 128>}, {pipeline_mode = #tpu.pipeline_mode<synchronous>, transform_indices = @transform_3, window_bounds = array<i64: 1, 128>}, {transform_indices = @transform_4, window_bounds = array<i64: 1, 16, 16, 128>}, {transform_indices = @transform_5, window_bounds = array<i64: 1, 1, 128>}, {transform_indices = @transform_6, window_bounds = array<i64: 1, 1, 128>}]} {
    %c0 = arith.constant 0 : index
    %c0_0 = arith.constant 0 : index
    %c0_1 = arith.constant 0 : index
    %c0_2 = arith.constant 0 : index
    %0 = vector.load %arg1[%c0, %c0_0, %c0_1, %c0_2] : memref<1x16x16x128xf32, #tpu.memory_space<vmem>>, vector<1x16x16x128xf32>
    %1 = vector.shape_cast %0 : vector<1x16x16x128xf32> to vector<16x16x128xf32>
    %c0_3 = arith.constant 0 : index
    %c0_4 = arith.constant 0 : index
    %2 = vector.load %arg3[%c0_3, %c0_4] : memref<1x128xf32, #tpu.memory_space<vmem>>, vector<1x128xf32>
    %3 = vector.shape_cast %2 : vector<1x128xf32> to vector<1x1x128xf32>
    %c0_5 = arith.constant 0 : index
    %c0_6 = arith.constant 0 : index
    %4 = vector.load %arg4[%c0_5, %c0_6] : memref<1x128xf32, #tpu.memory_space<vmem>>, vector<1x128xf32>
    %5 = vector.shape_cast %4 : vector<1x128xf32> to vector<1x1x128xf32>
    %6 = vector.broadcast %3 : vector<1x1x128xf32> to vector<16x16x128xf32>
    %7 = arith.mulf %1, %6 : vector<16x16x128xf32>
    %8 = vector.broadcast %5 : vector<1x1x128xf32> to vector<16x16x128xf32>
    %9 = arith.addf %7, %8 : vector<16x16x128xf32>
    %cst = arith.constant 0.000000e+00 : f32
    %10 = vector.broadcast %cst : f32 to vector<16x16x128xf32>
    %11 = arith.maximumf %9, %10 : vector<16x16x128xf32>
    %cst_7 = arith.constant 0.000000e+00 : f32
    %12 = vector.broadcast %cst_7 : f32 to vector<18x18x128xf32>
    %c0_8 = arith.constant 0 : index
    %c0_9 = arith.constant 0 : index
    %c0_10 = arith.constant 0 : index
    %13 = vector.load %arg8[%c0_8, %c0_9, %c0_10] : memref<18x18x128xf32, #tpu.memory_space<vmem>>, vector<18x18x128xf32>
    tpu.vector_store %arg8[%c0_8, %c0_9, %c0_10], %12 {strides = array<i32>} : memref<18x18x128xf32, #tpu.memory_space<vmem>>, vector<18x18x128xf32>,
    %c1 = arith.constant 1 : index
    %c1_11 = arith.constant 1 : index
    %c0_12 = arith.constant 0 : index
    %14 = vector.load %arg8[%c1, %c1_11, %c0_12] : memref<18x18x128xf32, #tpu.memory_space<vmem>>, vector<16x16x128xf32>
    tpu.vector_store %arg8[%c1, %c1_11, %c0_12], %11 {strides = array<i32>} : memref<18x18x128xf32, #tpu.memory_space<vmem>>, vector<16x16x128xf32>,
    %cst_13 = arith.constant 0.000000e+00 : f32
    %15 = vector.broadcast %cst_13 : f32 to vector<256x128xf32>
    %c0_14 = arith.constant 0 : index
    %c0_15 = arith.constant 0 : index
    %16 = vector.load %arg9[%c0_14, %c0_15] : memref<256x128xf32, #tpu.memory_space<vmem>>, vector<256x128xf32>
    tpu.vector_store %arg9[%c0_14, %c0_15], %15 {strides = array<i32>} : memref<256x128xf32, #tpu.memory_space<vmem>>, vector<256x128xf32>,
    %c0_16 = arith.constant 0 : index
    %c0_17 = arith.constant 0 : index
    %c0_18 = arith.constant 0 : index
    %17 = vector.load %arg8[%c0_16, %c0_17, %c0_18] : memref<18x18x128xf32, #tpu.memory_space<vmem>>, vector<16x16x128xf32>
    %18 = vector.shape_cast %17 : vector<16x16x128xf32> to vector<256x128xf32>
    %c0_19 = arith.constant 0 : index
    %c0_20 = arith.constant 0 : index
    %19 = vector.load %arg9[%c0_19, %c0_20] : memref<256x128xf32, #tpu.memory_space<vmem>>, vector<256x128xf32>
    %c0_21 = arith.constant 0 : index
    %c0_22 = arith.constant 0 : index
    %c0_23 = arith.constant 0 : index
    %20 = vector.load %arg2[%c0_21, %c0_22, %c0_23] : memref<9x128x128xf32, #tpu.memory_space<vmem>>, vector<1x128x128xf32>
    %21 = vector.shape_cast %20 : vector<1x128x128xf32> to vector<128x128xf32>
    %cst_24 = arith.constant dense<0.000000e+00> : vector<256x128xf32>
    %22 = tpu.matmul %18, %21, %cst_24 {dimension_numbers = #tpu.dot_dimension_numbers<[1], [0], [0], [1], [0, 0, 1, 1], [], []>} : vector<256x128xf32>, vector<128x128xf32>, vector<256x128xf32> -> vector<256x128xf32>
    %23 = arith.addf %19, %22 : vector<256x128xf32>
    %c0_25 = arith.constant 0 : index
    %c0_26 = arith.constant 0 : index
    %24 = vector.load %arg9[%c0_25, %c0_26] : memref<256x128xf32, #tpu.memory_space<vmem>>, vector<256x128xf32>
    tpu.vector_store %arg9[%c0_25, %c0_26], %23 {strides = array<i32>} : memref<256x128xf32, #tpu.memory_space<vmem>>, vector<256x128xf32>,
    %c0_27 = arith.constant 0 : index
    %c1_28 = arith.constant 1 : index
    %c0_29 = arith.constant 0 : index
    %25 = vector.load %arg8[%c0_27, %c1_28, %c0_29] : memref<18x18x128xf32, #tpu.memory_space<vmem>>, vector<16x16x128xf32>
    %26 = vector.shape_cast %25 : vector<16x16x128xf32> to vector<256x128xf32>
    %c0_30 = arith.constant 0 : index
    %c0_31 = arith.constant 0 : index
    %27 = vector.load %arg9[%c0_30, %c0_31] : memref<256x128xf32, #tpu.memory_space<vmem>>, vector<256x128xf32>
    %c1_32 = arith.constant 1 : index
    %c0_33 = arith.constant 0 : index
    %c0_34 = arith.constant 0 : index
    %28 = vector.load %arg2[%c1_32, %c0_33, %c0_34] : memref<9x128x128xf32, #tpu.memory_space<vmem>>, vector<1x128x128xf32>
    %29 = vector.shape_cast %28 : vector<1x128x128xf32> to vector<128x128xf32>
    %cst_35 = arith.constant dense<0.000000e+00> : vector<256x128xf32>
    %30 = tpu.matmul %26, %29, %cst_35 {dimension_numbers = #tpu.dot_dimension_numbers<[1], [0], [0], [1], [0, 0, 1, 1], [], []>} : vector<256x128xf32>, vector<128x128xf32>, vector<256x128xf32> -> vector<256x128xf32>
    %31 = arith.addf %27, %30 : vector<256x128xf32>
    %c0_36 = arith.constant 0 : index
    %c0_37 = arith.constant 0 : index
    %32 = vector.load %arg9[%c0_36, %c0_37] : memref<256x128xf32, #tpu.memory_space<vmem>>, vector<256x128xf32>
    tpu.vector_store %arg9[%c0_36, %c0_37], %31 {strides = array<i32>} : memref<256x128xf32, #tpu.memory_space<vmem>>, vector<256x128xf32>,
    %c0_38 = arith.constant 0 : index
    %c2 = arith.constant 2 : index
    %c0_39 = arith.constant 0 : index
    %33 = vector.load %arg8[%c0_38, %c2, %c0_39] : memref<18x18x128xf32, #tpu.memory_space<vmem>>, vector<16x16x128xf32>
    %34 = vector.shape_cast %33 : vector<16x16x128xf32> to vector<256x128xf32>
    %c0_40 = arith.constant 0 : index
    %c0_41 = arith.constant 0 : index
    %35 = vector.load %arg9[%c0_40, %c0_41] : memref<256x128xf32, #tpu.memory_space<vmem>>, vector<256x128xf32>
    %c2_42 = arith.constant 2 : index
    %c0_43 = arith.constant 0 : index
    %c0_44 = arith.constant 0 : index
    %36 = vector.load %arg2[%c2_42, %c0_43, %c0_44] : memref<9x128x128xf32, #tpu.memory_space<vmem>>, vector<1x128x128xf32>
    %37 = vector.shape_cast %36 : vector<1x128x128xf32> to vector<128x128xf32>
    %cst_45 = arith.constant dense<0.000000e+00> : vector<256x128xf32>
    %38 = tpu.matmul %34, %37, %cst_45 {dimension_numbers = #tpu.dot_dimension_numbers<[1], [0], [0], [1], [0, 0, 1, 1], [], []>} : vector<256x128xf32>, vector<128x128xf32>, vector<256x128xf32> -> vector<256x128xf32>
    %39 = arith.addf %35, %38 : vector<256x128xf32>
    %c0_46 = arith.constant 0 : index
    %c0_47 = arith.constant 0 : index
    %40 = vector.load %arg9[%c0_46, %c0_47] : memref<256x128xf32, #tpu.memory_space<vmem>>, vector<256x128xf32>
    tpu.vector_store %arg9[%c0_46, %c0_47], %39 {strides = array<i32>} : memref<256x128xf32, #tpu.memory_space<vmem>>, vector<256x128xf32>,
    %c1_48 = arith.constant 1 : index
    %c0_49 = arith.constant 0 : index
    %c0_50 = arith.constant 0 : index
    %41 = vector.load %arg8[%c1_48, %c0_49, %c0_50] : memref<18x18x128xf32, #tpu.memory_space<vmem>>, vector<16x16x128xf32>
    %42 = vector.shape_cast %41 : vector<16x16x128xf32> to vector<256x128xf32>
    %c0_51 = arith.constant 0 : index
    %c0_52 = arith.constant 0 : index
    %43 = vector.load %arg9[%c0_51, %c0_52] : memref<256x128xf32, #tpu.memory_space<vmem>>, vector<256x128xf32>
    %c3 = arith.constant 3 : index
    %c0_53 = arith.constant 0 : index
    %c0_54 = arith.constant 0 : index
    %44 = vector.load %arg2[%c3, %c0_53, %c0_54] : memref<9x128x128xf32, #tpu.memory_space<vmem>>, vector<1x128x128xf32>
    %45 = vector.shape_cast %44 : vector<1x128x128xf32> to vector<128x128xf32>
    %cst_55 = arith.constant dense<0.000000e+00> : vector<256x128xf32>
    %46 = tpu.matmul %42, %45, %cst_55 {dimension_numbers = #tpu.dot_dimension_numbers<[1], [0], [0], [1], [0, 0, 1, 1], [], []>} : vector<256x128xf32>, vector<128x128xf32>, vector<256x128xf32> -> vector<256x128xf32>
    %47 = arith.addf %43, %46 : vector<256x128xf32>
    %c0_56 = arith.constant 0 : index
    %c0_57 = arith.constant 0 : index
    %48 = vector.load %arg9[%c0_56, %c0_57] : memref<256x128xf32, #tpu.memory_space<vmem>>, vector<256x128xf32>
    tpu.vector_store %arg9[%c0_56, %c0_57], %47 {strides = array<i32>} : memref<256x128xf32, #tpu.memory_space<vmem>>, vector<256x128xf32>,
    %c1_58 = arith.constant 1 : index
    %c1_59 = arith.constant 1 : index
    %c0_60 = arith.constant 0 : index
    %49 = vector.load %arg8[%c1_58, %c1_59, %c0_60] : memref<18x18x128xf32, #tpu.memory_space<vmem>>, vector<16x16x128xf32>
    %50 = vector.shape_cast %49 : vector<16x16x128xf32> to vector<256x128xf32>
    %c0_61 = arith.constant 0 : index
    %c0_62 = arith.constant 0 : index
    %51 = vector.load %arg9[%c0_61, %c0_62] : memref<256x128xf32, #tpu.memory_space<vmem>>, vector<256x128xf32>
    %c4 = arith.constant 4 : index
    %c0_63 = arith.constant 0 : index
    %c0_64 = arith.constant 0 : index
    %52 = vector.load %arg2[%c4, %c0_63, %c0_64] : memref<9x128x128xf32, #tpu.memory_space<vmem>>, vector<1x128x128xf32>
    %53 = vector.shape_cast %52 : vector<1x128x128xf32> to vector<128x128xf32>
    %cst_65 = arith.constant dense<0.000000e+00> : vector<256x128xf32>
    %54 = tpu.matmul %50, %53, %cst_65 {dimension_numbers = #tpu.dot_dimension_numbers<[1], [0], [0], [1], [0, 0, 1, 1], [], []>} : vector<256x128xf32>, vector<128x128xf32>, vector<256x128xf32> -> vector<256x128xf32>
    %55 = arith.addf %51, %54 : vector<256x128xf32>
    %c0_66 = arith.constant 0 : index
    %c0_67 = arith.constant 0 : index
    %56 = vector.load %arg9[%c0_66, %c0_67] : memref<256x128xf32, #tpu.memory_space<vmem>>, vector<256x128xf32>
    tpu.vector_store %arg9[%c0_66, %c0_67], %55 {strides = array<i32>} : memref<256x128xf32, #tpu.memory_space<vmem>>, vector<256x128xf32>,
    %c1_68 = arith.constant 1 : index
    %c2_69 = arith.constant 2 : index
    %c0_70 = arith.constant 0 : index
    %57 = vector.load %arg8[%c1_68, %c2_69, %c0_70] : memref<18x18x128xf32, #tpu.memory_space<vmem>>, vector<16x16x128xf32>
    %58 = vector.shape_cast %57 : vector<16x16x128xf32> to vector<256x128xf32>
    %c0_71 = arith.constant 0 : index
    %c0_72 = arith.constant 0 : index
    %59 = vector.load %arg9[%c0_71, %c0_72] : memref<256x128xf32, #tpu.memory_space<vmem>>, vector<256x128xf32>
    %c5 = arith.constant 5 : index
    %c0_73 = arith.constant 0 : index
    %c0_74 = arith.constant 0 : index
    %60 = vector.load %arg2[%c5, %c0_73, %c0_74] : memref<9x128x128xf32, #tpu.memory_space<vmem>>, vector<1x128x128xf32>
    %61 = vector.shape_cast %60 : vector<1x128x128xf32> to vector<128x128xf32>
    %cst_75 = arith.constant dense<0.000000e+00> : vector<256x128xf32>
    %62 = tpu.matmul %58, %61, %cst_75 {dimension_numbers = #tpu.dot_dimension_numbers<[1], [0], [0], [1], [0, 0, 1, 1], [], []>} : vector<256x128xf32>, vector<128x128xf32>, vector<256x128xf32> -> vector<256x128xf32>
    %63 = arith.addf %59, %62 : vector<256x128xf32>
    %c0_76 = arith.constant 0 : index
    %c0_77 = arith.constant 0 : index
    %64 = vector.load %arg9[%c0_76, %c0_77] : memref<256x128xf32, #tpu.memory_space<vmem>>, vector<256x128xf32>
    tpu.vector_store %arg9[%c0_76, %c0_77], %63 {strides = array<i32>} : memref<256x128xf32, #tpu.memory_space<vmem>>, vector<256x128xf32>,
    %c2_78 = arith.constant 2 : index
    %c0_79 = arith.constant 0 : index
    %c0_80 = arith.constant 0 : index
    %65 = vector.load %arg8[%c2_78, %c0_79, %c0_80] : memref<18x18x128xf32, #tpu.memory_space<vmem>>, vector<16x16x128xf32>
    %66 = vector.shape_cast %65 : vector<16x16x128xf32> to vector<256x128xf32>
    %c0_81 = arith.constant 0 : index
    %c0_82 = arith.constant 0 : index
    %67 = vector.load %arg9[%c0_81, %c0_82] : memref<256x128xf32, #tpu.memory_space<vmem>>, vector<256x128xf32>
    %c6 = arith.constant 6 : index
    %c0_83 = arith.constant 0 : index
    %c0_84 = arith.constant 0 : index
    %68 = vector.load %arg2[%c6, %c0_83, %c0_84] : memref<9x128x128xf32, #tpu.memory_space<vmem>>, vector<1x128x128xf32>
    %69 = vector.shape_cast %68 : vector<1x128x128xf32> to vector<128x128xf32>
    %cst_85 = arith.constant dense<0.000000e+00> : vector<256x128xf32>
    %70 = tpu.matmul %66, %69, %cst_85 {dimension_numbers = #tpu.dot_dimension_numbers<[1], [0], [0], [1], [0, 0, 1, 1], [], []>} : vector<256x128xf32>, vector<128x128xf32>, vector<256x128xf32> -> vector<256x128xf32>
    %71 = arith.addf %67, %70 : vector<256x128xf32>
    %c0_86 = arith.constant 0 : index
    %c0_87 = arith.constant 0 : index
    %72 = vector.load %arg9[%c0_86, %c0_87] : memref<256x128xf32, #tpu.memory_space<vmem>>, vector<256x128xf32>
    tpu.vector_store %arg9[%c0_86, %c0_87], %71 {strides = array<i32>} : memref<256x128xf32, #tpu.memory_space<vmem>>, vector<256x128xf32>,
    %c2_88 = arith.constant 2 : index
    %c1_89 = arith.constant 1 : index
    %c0_90 = arith.constant 0 : index
    %73 = vector.load %arg8[%c2_88, %c1_89, %c0_90] : memref<18x18x128xf32, #tpu.memory_space<vmem>>, vector<16x16x128xf32>
    %74 = vector.shape_cast %73 : vector<16x16x128xf32> to vector<256x128xf32>
    %c0_91 = arith.constant 0 : index
    %c0_92 = arith.constant 0 : index
    %75 = vector.load %arg9[%c0_91, %c0_92] : memref<256x128xf32, #tpu.memory_space<vmem>>, vector<256x128xf32>
    %c7 = arith.constant 7 : index
    %c0_93 = arith.constant 0 : index
    %c0_94 = arith.constant 0 : index
    %76 = vector.load %arg2[%c7, %c0_93, %c0_94] : memref<9x128x128xf32, #tpu.memory_space<vmem>>, vector<1x128x128xf32>
    %77 = vector.shape_cast %76 : vector<1x128x128xf32> to vector<128x128xf32>
    %cst_95 = arith.constant dense<0.000000e+00> : vector<256x128xf32>
    %78 = tpu.matmul %74, %77, %cst_95 {dimension_numbers = #tpu.dot_dimension_numbers<[1], [0], [0], [1], [0, 0, 1, 1], [], []>} : vector<256x128xf32>, vector<128x128xf32>, vector<256x128xf32> -> vector<256x128xf32>
    %79 = arith.addf %75, %78 : vector<256x128xf32>
    %c0_96 = arith.constant 0 : index
    %c0_97 = arith.constant 0 : index
    %80 = vector.load %arg9[%c0_96, %c0_97] : memref<256x128xf32, #tpu.memory_space<vmem>>, vector<256x128xf32>
    tpu.vector_store %arg9[%c0_96, %c0_97], %79 {strides = array<i32>} : memref<256x128xf32, #tpu.memory_space<vmem>>, vector<256x128xf32>,
    %c2_98 = arith.constant 2 : index
    %c2_99 = arith.constant 2 : index
    %c0_100 = arith.constant 0 : index
    %81 = vector.load %arg8[%c2_98, %c2_99, %c0_100] : memref<18x18x128xf32, #tpu.memory_space<vmem>>, vector<16x16x128xf32>
    %82 = vector.shape_cast %81 : vector<16x16x128xf32> to vector<256x128xf32>
    %c0_101 = arith.constant 0 : index
    %c0_102 = arith.constant 0 : index
    %83 = vector.load %arg9[%c0_101, %c0_102] : memref<256x128xf32, #tpu.memory_space<vmem>>, vector<256x128xf32>
    %c8 = arith.constant 8 : index
    %c0_103 = arith.constant 0 : index
    %c0_104 = arith.constant 0 : index
    %84 = vector.load %arg2[%c8, %c0_103, %c0_104] : memref<9x128x128xf32, #tpu.memory_space<vmem>>, vector<1x128x128xf32>
    %85 = vector.shape_cast %84 : vector<1x128x128xf32> to vector<128x128xf32>
    %cst_105 = arith.constant dense<0.000000e+00> : vector<256x128xf32>
    %86 = tpu.matmul %82, %85, %cst_105 {dimension_numbers = #tpu.dot_dimension_numbers<[1], [0], [0], [1], [0, 0, 1, 1], [], []>} : vector<256x128xf32>, vector<128x128xf32>, vector<256x128xf32> -> vector<256x128xf32>
    %87 = arith.addf %83, %86 : vector<256x128xf32>
    %c0_106 = arith.constant 0 : index
    %c0_107 = arith.constant 0 : index
    %88 = vector.load %arg9[%c0_106, %c0_107] : memref<256x128xf32, #tpu.memory_space<vmem>>, vector<256x128xf32>
    tpu.vector_store %arg9[%c0_106, %c0_107], %87 {strides = array<i32>} : memref<256x128xf32, #tpu.memory_space<vmem>>, vector<256x128xf32>,
    %c0_108 = arith.constant 0 : index
    %c0_109 = arith.constant 0 : index
    %89 = vector.load %arg9[%c0_108, %c0_109] : memref<256x128xf32, #tpu.memory_space<vmem>>, vector<256x128xf32>
    %90 = vector.shape_cast %89 : vector<256x128xf32> to vector<16x16x128xf32>
    %c0_110 = arith.constant 0 : index
    %c0_111 = arith.constant 0 : index
    %c0_112 = arith.constant 0 : index
    %c0_113 = arith.constant 0 : index
    %91 = vector.load %arg5[%c0_110, %c0_111, %c0_112, %c0_113] : memref<1x16x16x128xf32, #tpu.memory_space<vmem>>, vector<1x16x16x128xf32>
    %92 = vector.shape_cast %91 : vector<1x16x16x128xf32> to vector<16x16x128xf32>
    %93 = vector.shape_cast %90 : vector<16x16x128xf32> to vector<1x16x16x128xf32>
    tpu.vector_store %arg5[%c0_110, %c0_111, %c0_112, %c0_113], %93 {strides = array<i32>} : memref<1x16x16x128xf32, #tpu.memory_space<vmem>>, vector<1x16x16x128xf32>,
    %cst_114 = arith.constant dense<0.000000e+00> : vector<128xf32>
    %94 = vector.multi_reduction <add>, %89, %cst_114 [0] : vector<256x128xf32> to vector<128xf32>
    %95 = vector.shape_cast %94 : vector<128xf32> to vector<1x128xf32>
    %c0_115 = arith.constant 0 : index
    %c0_116 = arith.constant 0 : index
    %c0_117 = arith.constant 0 : index
    %96 = vector.load %arg6[%c0_115, %c0_116, %c0_117] : memref<1x1x128xf32, #tpu.memory_space<vmem>>, vector<1x1x128xf32>
    %97 = vector.shape_cast %96 : vector<1x1x128xf32> to vector<1x128xf32>
    %98 = vector.shape_cast %95 : vector<1x128xf32> to vector<1x1x128xf32>
    tpu.vector_store %arg6[%c0_115, %c0_116, %c0_117], %98 {strides = array<i32>} : memref<1x1x128xf32, #tpu.memory_space<vmem>>, vector<1x1x128xf32>,
    %99 = arith.mulf %89, %89 : vector<256x128xf32>
    %cst_118 = arith.constant dense<0.000000e+00> : vector<128xf32>
    %100 = vector.multi_reduction <add>, %99, %cst_118 [0] : vector<256x128xf32> to vector<128xf32>
    %101 = vector.shape_cast %100 : vector<128xf32> to vector<1x128xf32>
    %c0_119 = arith.constant 0 : index
    %c0_120 = arith.constant 0 : index
    %c0_121 = arith.constant 0 : index
    %102 = vector.load %arg7[%c0_119, %c0_120, %c0_121] : memref<1x1x128xf32, #tpu.memory_space<vmem>>, vector<1x1x128xf32>
    %103 = vector.shape_cast %102 : vector<1x1x128xf32> to vector<1x128xf32>
    %104 = vector.shape_cast %101 : vector<1x128xf32> to vector<1x1x128xf32>
    tpu.vector_store %arg7[%c0_119, %c0_120, %c0_121], %104 {strides = array<i32>} : memref<1x1x128xf32, #tpu.memory_space<vmem>>, vector<1x1x128xf32>,
    return
  }
  func.func @transform_0(%arg0: i32) -> (i32, i32, i32, i32) {
    %c0_i32 = arith.constant 0 : i32
    %c0_i32_0 = arith.constant 0 : i32
    %c0_i32_1 = arith.constant 0 : i32
    %c0_i32_2 = arith.constant 0 : i32
    return %arg0, %c0_i32, %c0_i32_0, %c0_i32_1 : i32, i32, i32, i32
  }
  func.func @transform_1(%arg0: i32) -> (i32, i32, i32) {
    %c0_i32 = arith.constant 0 : i32
    %c0_i32_0 = arith.constant 0 : i32
    %c0_i32_1 = arith.constant 0 : i32
    %c0_i32_2 = arith.constant 0 : i32
    return %c0_i32, %c0_i32_0, %c0_i32_1 : i32, i32, i32
  }
  func.func @transform_2(%arg0: i32) -> (i32, i32) {
    %c0_i32 = arith.constant 0 : i32
    %c0_i32_0 = arith.constant 0 : i32
    %c0_i32_1 = arith.constant 0 : i32
    return %c0_i32, %c0_i32_0 : i32, i32
  }
  func.func @transform_3(%arg0: i32) -> (i32, i32) {
    %c0_i32 = arith.constant 0 : i32
    %c0_i32_0 = arith.constant 0 : i32
    %c0_i32_1 = arith.constant 0 : i32
    return %c0_i32, %c0_i32_0 : i32, i32
  }
  func.func @transform_4(%arg0: i32) -> (i32, i32, i32, i32) {
    %c0_i32 = arith.constant 0 : i32
    %c0_i32_0 = arith.constant 0 : i32
    %c0_i32_1 = arith.constant 0 : i32
    %c0_i32_2 = arith.constant 0 : i32
    return %arg0, %c0_i32, %c0_i32_0, %c0_i32_1 : i32, i32, i32, i32
  }
  func.func @transform_5(%arg0: i32) -> (i32, i32, i32) {
    %c0_i32 = arith.constant 0 : i32
    %c0_i32_0 = arith.constant 0 : i32
    %c0_i32_1 = arith.constant 0 : i32
    return %arg0, %c0_i32, %c0_i32_0 : i32, i32, i32
  }
  func.func @transform_6(%arg0: i32) -> (i32, i32, i32) {
    %c0_i32 = arith.constant 0 : i32
    %c0_i32_0 = arith.constant 0 : i32
    %c0_i32_1 = arith.constant 0 : i32
    return %arg0, %c0_i32, %c0_i32_0 : i32, i32, i32
  }
}

module attributes {stable_mosaic.version = 11 : i64} {
  func.func @bn_relu_kernel(%arg0: i32, %arg1: memref<512x128xf32, #tpu.memory_space<vmem>>, %arg2: memref<1x128xf32, #tpu.memory_space<vmem>>, %arg3: memref<1x128xf32, #tpu.memory_space<vmem>>, %arg4: memref<512x128xf32, #tpu.memory_space<vmem>>) attributes {dimension_semantics = [#tpu.dimension_semantics<parallel>], iteration_bounds = array<i64: 1>, scalar_prefetch = 0 : i64, scratch_operands = 0 : i64, tpu.core_type = #tpu.core_type<tc>, window_params = [{transform_indices = @transform_0, window_bounds = array<i64: 512, 128>}, {pipeline_mode = #tpu.pipeline_mode<synchronous>, transform_indices = @transform_1, window_bounds = array<i64: 1, 128>}, {pipeline_mode = #tpu.pipeline_mode<synchronous>, transform_indices = @transform_2, window_bounds = array<i64: 1, 128>}, {transform_indices = @transform_3, window_bounds = array<i64: 512, 128>}]} {
    %c0 = arith.constant 0 : index
    %c0_0 = arith.constant 0 : index
    %0 = vector.load %arg1[%c0, %c0_0] : memref<512x128xf32, #tpu.memory_space<vmem>>, vector<512x128xf32>
    %c0_1 = arith.constant 0 : index
    %c0_2 = arith.constant 0 : index
    %1 = vector.load %arg2[%c0_1, %c0_2] : memref<1x128xf32, #tpu.memory_space<vmem>>, vector<1x128xf32>
    %2 = vector.broadcast %1 : vector<1x128xf32> to vector<512x128xf32>
    %3 = arith.mulf %0, %2 : vector<512x128xf32>
    %c0_3 = arith.constant 0 : index
    %c0_4 = arith.constant 0 : index
    %4 = vector.load %arg3[%c0_3, %c0_4] : memref<1x128xf32, #tpu.memory_space<vmem>>, vector<1x128xf32>
    %5 = vector.broadcast %4 : vector<1x128xf32> to vector<512x128xf32>
    %6 = arith.addf %3, %5 : vector<512x128xf32>
    %cst = arith.constant 0.000000e+00 : f32
    %7 = vector.broadcast %cst : f32 to vector<512x128xf32>
    %8 = arith.maximumf %6, %7 : vector<512x128xf32>
    %c0_5 = arith.constant 0 : index
    %c0_6 = arith.constant 0 : index
    %9 = vector.load %arg4[%c0_5, %c0_6] : memref<512x128xf32, #tpu.memory_space<vmem>>, vector<512x128xf32>
    tpu.vector_store %arg4[%c0_5, %c0_6], %8 {strides = array<i32>} : memref<512x128xf32, #tpu.memory_space<vmem>>, vector<512x128xf32>,
    return
  }
  func.func @transform_0(%arg0: i32) -> (i32, i32) {
    %c0_i32 = arith.constant 0 : i32
    %c0_i32_0 = arith.constant 0 : i32
    return %arg0, %c0_i32 : i32, i32
  }
  func.func @transform_1(%arg0: i32) -> (i32, i32) {
    %c0_i32 = arith.constant 0 : i32
    %c0_i32_0 = arith.constant 0 : i32
    %c0_i32_1 = arith.constant 0 : i32
    return %c0_i32, %c0_i32_0 : i32, i32
  }
  func.func @transform_2(%arg0: i32) -> (i32, i32) {
    %c0_i32 = arith.constant 0 : i32
    %c0_i32_0 = arith.constant 0 : i32
    %c0_i32_1 = arith.constant 0 : i32
    return %c0_i32, %c0_i32_0 : i32, i32
  }
  func.func @transform_3(%arg0: i32) -> (i32, i32) {
    %c0_i32 = arith.constant 0 : i32
    %c0_i32_0 = arith.constant 0 : i32
    return %arg0, %c0_i32 : i32, i32
  }
}

</mosaic_0001>

<bundles_post_ra>
// kernel: conv_block.5
= control target key start
LH: loop header
LB: loop body
LE: loop exit
PB: predicated region body
PF: predicated region fallthrough
CT: control target
= control target key end

     0   :  { %s893_s0 = inlined_call_operand.vmem [shape: f32[512,128], index: 0, kind: input, shape index: {}]   ;;  %s894_s1 = inlined_call_operand.vmem [shape: f32[1,128], index: 1, kind: input, shape index: {}]   ;;  %s895_s2 = inlined_call_operand.vmem [shape: f32[1,128], index: 2, kind: input, shape index: {}]   ;;  %s896_s3 = inlined_call_operand.vmem [shape: f32[512,128], index: 3, kind: output, shape index: {}]  }
   0x1   :  { %v14_v0 = vld [vmem:[%s893_s0] sm:$0xff]  ;;  %v15_v3 = vld [vmem:[%s893_s0 + $0x8] sm:$0xff]  ;;  %v16_v6 = vld [vmem:[%s893_s0 + $0x10] sm:$0xff] }
   0x2   :  { %v374_v1 = vld [vmem:[%s894_s1] ss:$0 sm:$0xff]  ;;  %v17_v7 = vld [vmem:[%s893_s0 + $0x18] sm:$0xff]  ;;  %v19_v12 = vld [vmem:[%s893_s0 + $0x28] sm:$0xff] }
   0x3   :  { %v379_v2 = vld [vmem:[%s895_s2] ss:$0 sm:$0xff]  ;;  %v82_v4 = vmul.f32 %v374_v1, %v14_v0  ;;  %v83_v5 = vmul.f32 %v374_v1, %v15_v3  ;;  %v84_v9 = vmul.f32 %v374_v1, %v16_v6  ;;  %v85_v10 = vmul.f32 %v374_v1, %v17_v7  ;;  %v20_v13 = vld [vmem:[%s893_s0 + $0x30] sm:$0xff]  ;;  %v21_v14 = vld [vmem:[%s893_s0 + $0x38] sm:$0xff] }
   0x4   :  { %v18_v8 = vld [vmem:[%s893_s0 + $0x20] sm:$0xff]  ;;  %v87_v17 = vmul.f32 %v374_v1, %v19_v12  ;;  %v88_v18 = vmul.f32 %v374_v1, %v20_v13  ;;  %v89_v22 = vmul.f32 %v374_v1, %v21_v14  ;;  %v23_v24 = vld [vmem:[%s893_s0 + $0x48] sm:$0xff]  ;;  %v24_v29 = vld [vmem:[%s893_s0 + $0x50] sm:$0xff] }
   0x5   :  { %v86_v11 = vmul.f32 %v374_v1, %v18_v8  ;;  %v150_v15 = vadd.f32 %v379_v2, %v82_v4  ;;  %v151_v16 = vadd.f32 %v379_v2, %v83_v5  ;;  %v152_v19 = vadd.f32 %v379_v2, %v84_v9  ;;  %v22_v23 = vld [vmem:[%s893_s0 + $0x40] sm:$0xff]  ;;  %v25_v30 = vld [vmem:[%s893_s0 + $0x58] sm:$0xff]  ;;  %v27_v35 = vld [vmem:[%s893_s0 + $0x68] sm:$0xff] }
   0x6   :  { %v153_v20 = vadd.f32 %v379_v2, %v85_v10  ;;  %v155_v27 = vadd.f32 %v379_v2, %v87_v17  ;;  %v156_v28 = vadd.f32 %v379_v2, %v88_v18  ;;  %v26_v31 = vld [vmem:[%s893_s0 + $0x60] sm:$0xff]  ;;  %v157_v34 = vadd.f32 %v379_v2, %v89_v22  ;;  %v28_v36 = vld [vmem:[%s893_s0 + $0x70] sm:$0xff]  ;;  %v29_v41 = vld [vmem:[%s893_s0 + $0x78] sm:$0xff] }
   0x7   :  { %v154_v21 = vadd.f32 %v379_v2, %v86_v11  ;;  %v214_v25 = vmax.f32 %v150_v15, 0.0  ;;  %v215_v26 = vmax.f32 %v151_v16, 0.0  ;;  %v216_v32 = vmax.f32 %v152_v19, 0.0  ;;  %v30_v54 = vld [vmem:[%s893_s0 + $0x80] sm:$0xff]  ;;  %v31_v55 = vld [vmem:[%s893_s0 + $0x88] sm:$0xff]  ;;  %v32_v58 = vld [vmem:[%s893_s0 + $0x90] sm:$0xff] }
   0x8   :  { %v217_v33 = vmax.f32 %v153_v20, 0.0  ;;  %v219_v38 = vmax.f32 %v155_v27, 0.0  ;;  %v90_v39 = vmul.f32 %v374_v1, %v22_v23  ;;  %v91_v40 = vmul.f32 %v374_v1, %v23_v24  ;;  %v33_v59 = vld [vmem:[%s893_s0 + $0x98] sm:$0xff]  ;;  %v34_v62 = vld [vmem:[%s893_s0 + $0xa0] sm:$0xff]  ;;  %v35_v5 = vld [vmem:[%s893_s0 + $0xa8] sm:$0xff] }
   0x9   :  { %278 = vst [vmem:[%s896_s3] sm:$0xff] %v214_v25  ;;  %v218_v37 = vmax.f32 %v154_v21, 0.0  ;;  %v220_v42 = vmax.f32 %v156_v28, 0.0  ;;  %v92_v43 = vmul.f32 %v374_v1, %v24_v29  ;;  %v93_v44 = vmul.f32 %v374_v1, %v25_v30  ;;  %v36_v10 = vld [vmem:[%s893_s0 + $0xb0] sm:$0xff]  ;;  %v37_v14 = vld [vmem:[%s893_s0 + $0xb8] sm:$0xff]  ;;  %v38_v18 = vld [vmem:[%s893_s0 + $0xc0] sm:$0xff] }
   0xa   :  { %279 = vst [vmem:[%s896_s3 + $0x8] sm:$0xff] %v215_v26  ;;  %v94_v45 = vmul.f32 %v374_v1, %v26_v31  ;;  %v158_v46 = vadd.f32 %v379_v2, %v90_v39  ;;  %v159_v47 = vadd.f32 %v379_v2, %v91_v40  ;;  %v95_v48 = vmul.f32 %v374_v1, %v27_v35  ;;  %v39_v22 = vld [vmem:[%s893_s0 + $0xc8] sm:$0xff]  ;;  %v40_v26 = vld [vmem:[%s893_s0 + $0xd0] sm:$0xff]  ;;  %v41_v30 = vld [vmem:[%s893_s0 + $0xd8] sm:$0xff] }
   0xb   :  { %280 = vst [vmem:[%s896_s3 + $0x10] sm:$0xff] %v216_v32  ;;  %v96_v49 = vmul.f32 %v374_v1, %v28_v36  ;;  %v221_v50 = vmax.f32 %v157_v34, 0.0  ;;  %v160_v51 = vadd.f32 %v379_v2, %v92_v43  ;;  %v161_v52 = vadd.f32 %v379_v2, %v93_v44  ;;  %v42_v34 = vld [vmem:[%s893_s0 + $0xe0] sm:$0xff] }
   0xc   :  { %281 = vst [vmem:[%s896_s3 + $0x18] sm:$0xff] %v217_v33  ;;  %v97_v53 = vmul.f32 %v374_v1, %v29_v41  ;;  %v222_v56 = vmax.f32 %v158_v46, 0.0  ;;  %v162_v57 = vadd.f32 %v379_v2, %v94_v45  ;;  %v223_v60 = vmax.f32 %v159_v47, 0.0  ;;  %v45_v46 = vld [vmem:[%s893_s0 + $0xf8] sm:$0xff] }
   0xd   :  { %282 = vst [vmem:[%s896_s3 + $0x20] sm:$0xff] %v218_v37  ;;  %v163_v61 = vadd.f32 %v379_v2, %v95_v48  ;;  %v224_v63 = vmax.f32 %v160_v51, 0.0  ;;  %v164_v0 = vadd.f32 %v379_v2, %v96_v49  ;;  %v98_v3 = vmul.f32 %v374_v1, %v30_v54  ;;  %v47_v54 = vld [vmem:[%s893_s0 + $0x108] sm:$0xff] }
   0xe   :  { %283 = vst [vmem:[%s896_s3 + $0x28] sm:$0xff] %v219_v38  ;;  %v99_v4 = vmul.f32 %v374_v1, %v31_v55  ;;  %v225_v6 = vmax.f32 %v161_v52, 0.0  ;;  %v165_v7 = vadd.f32 %v379_v2, %v97_v53  ;;  %v100_v8 = vmul.f32 %v374_v1, %v32_v58  ;;  %v43_v38 = vld [vmem:[%s893_s0 + $0xe8] sm:$0xff]  ;;  %v48_v58 = vld [vmem:[%s893_s0 + $0x110] sm:$0xff] }
   0xf   :  { %284 = vst [vmem:[%s896_s3 + $0x30] sm:$0xff] %v220_v42  ;;  %v101_v9 = vmul.f32 %v374_v1, %v33_v59  ;;  %v226_v11 = vmax.f32 %v162_v57, 0.0  ;;  %v166_v12 = vadd.f32 %v379_v2, %v98_v3  ;;  %v102_v13 = vmul.f32 %v374_v1, %v34_v62  ;;  %v44_v42 = vld [vmem:[%s893_s0 + $0xf0] sm:$0xff]  ;;  %v49_v62 = vld [vmem:[%s893_s0 + $0x118] sm:$0xff] }
  0x10   :  { %285 = vst [vmem:[%s896_s3 + $0x38] sm:$0xff] %v221_v50  ;;  %v227_v15 = vmax.f32 %v163_v61, 0.0  ;;  %v167_v16 = vadd.f32 %v379_v2, %v99_v4  ;;  %v103_v17 = vmul.f32 %v374_v1, %v35_v5  ;;  %v228_v19 = vmax.f32 %v164_v0, 0.0  ;;  %v46_v50 = vld [vmem:[%s893_s0 + $0x100] sm:$0xff] }
  0x11   :  { %286 = vst [vmem:[%s896_s3 + $0x40] sm:$0xff] %v222_v56  ;;  %v168_v20 = vadd.f32 %v379_v2, %v100_v8  ;;  %v104_v21 = vmul.f32 %v374_v1, %v36_v10  ;;  %v229_v23 = vmax.f32 %v165_v7, 0.0  ;;  %v169_v24 = vadd.f32 %v379_v2, %v101_v9  ;;  %v50_v4 = vld [vmem:[%s893_s0 + $0x120] sm:$0xff]  ;;  %v51_v8 = vld [vmem:[%s893_s0 + $0x128] sm:$0xff] }
  0x12   :  { %287 = vst [vmem:[%s896_s3 + $0x48] sm:$0xff] %v223_v60  ;;  %v105_v25 = vmul.f32 %v374_v1, %v37_v14  ;;  %v230_v27 = vmax.f32 %v166_v12, 0.0  ;;  %v170_v28 = vadd.f32 %v379_v2, %v102_v13  ;;  %v106_v29 = vmul.f32 %v374_v1, %v38_v18  ;;  %v52_v12 = vld [vmem:[%s893_s0 + $0x130] sm:$0xff] }
  0x13   :  { %288 = vst [vmem:[%s896_s3 + $0x50] sm:$0xff] %v224_v63  ;;  %v231_v31 = vmax.f32 %v167_v16, 0.0  ;;  %v171_v32 = vadd.f32 %v379_v2, %v103_v17  ;;  %v107_v33 = vmul.f32 %v374_v1, %v39_v22  ;;  %v232_v35 = vmax.f32 %v168_v20, 0.0  ;;  %v53_v16 = vld [vmem:[%s893_s0 + $0x138] sm:$0xff]  ;;  %v54_v20 = vld [vmem:[%s893_s0 + $0x140] sm:$0xff] }
  0x14   :  { %289 = vst [vmem:[%s896_s3 + $0x58] sm:$0xff] %v225_v6  ;;  %v172_v36 = vadd.f32 %v379_v2, %v104_v21  ;;  %v108_v37 = vmul.f32 %v374_v1, %v40_v26  ;;  %v233_v39 = vmax.f32 %v169_v24, 0.0  ;;  %v173_v40 = vadd.f32 %v379_v2, %v105_v25  ;;  %v55_v24 = vld [vmem:[%s893_s0 + $0x148] sm:$0xff] }
  0x15   :  { %290 = vst [vmem:[%s896_s3 + $0x60] sm:$0xff] %v226_v11  ;;  %v109_v41 = vmul.f32 %v374_v1, %v41_v30  ;;  %v234_v43 = vmax.f32 %v170_v28, 0.0  ;;  %v174_v44 = vadd.f32 %v379_v2, %v106_v29  ;;  %v110_v45 = vmul.f32 %v374_v1, %v42_v34  ;;  %v56_v28 = vld [vmem:[%s893_s0 + $0x150] sm:$0xff] }
  0x16   :  { %291 = vst [vmem:[%s896_s3 + $0x68] sm:$0xff] %v227_v15  ;;  %v235_v47 = vmax.f32 %v171_v32, 0.0  ;;  %v175_v48 = vadd.f32 %v379_v2, %v107_v33  ;;  %v111_v49 = vmul.f32 %v374_v1, %v43_v38  ;;  %v236_v51 = vmax.f32 %v172_v36, 0.0  ;;  %v57_v32 = vld [vmem:[%s893_s0 + $0x158] sm:$0xff]  ;;  %v58_v36 = vld [vmem:[%s893_s0 + $0x160] sm:$0xff] }
  0x17   :  { %292 = vst [vmem:[%s896_s3 + $0x70] sm:$0xff] %v228_v19  ;;  %v176_v52 = vadd.f32 %v379_v2, %v108_v37  ;;  %v112_v53 = vmul.f32 %v374_v1, %v44_v42  ;;  %v237_v55 = vmax.f32 %v173_v40, 0.0  ;;  %v177_v56 = vadd.f32 %v379_v2, %v109_v41  ;;  %v59_v40 = vld [vmem:[%s893_s0 + $0x168] sm:$0xff] }
  0x18   :  { %293 = vst [vmem:[%s896_s3 + $0x78] sm:$0xff] %v229_v23  ;;  %v113_v57 = vmul.f32 %v374_v1, %v45_v46  ;;  %v238_v59 = vmax.f32 %v174_v44, 0.0  ;;  %v178_v60 = vadd.f32 %v379_v2, %v110_v45  ;;  %v114_v61 = vmul.f32 %v374_v1, %v46_v50  ;;  %v60_v44 = vld [vmem:[%s893_s0 + $0x170] sm:$0xff] }
  0x19   :  { %294 = vst [vmem:[%s896_s3 + $0x80] sm:$0xff] %v230_v27  ;;  %v239_v63 = vmax.f32 %v175_v48, 0.0  ;;  %v179_v0 = vadd.f32 %v379_v2, %v111_v49  ;;  %v115_v3 = vmul.f32 %v374_v1, %v47_v54  ;;  %v240_v5 = vmax.f32 %v176_v52, 0.0  ;;  %v61_v48 = vld [vmem:[%s893_s0 + $0x178] sm:$0xff]  ;;  %v62_v52 = vld [vmem:[%s893_s0 + $0x180] sm:$0xff] }
  0x1a   :  { %295 = vst [vmem:[%s896_s3 + $0x88] sm:$0xff] %v231_v31  ;;  %v180_v6 = vadd.f32 %v379_v2, %v112_v53  ;;  %v116_v7 = vmul.f32 %v374_v1, %v48_v58  ;;  %v241_v9 = vmax.f32 %v177_v56, 0.0  ;;  %v181_v10 = vadd.f32 %v379_v2, %v113_v57  ;;  %v63_v56 = vld [vmem:[%s893_s0 + $0x188] sm:$0xff] }
  0x1b   :  { %296 = vst [vmem:[%s896_s3 + $0x90] sm:$0xff] %v232_v35  ;;  %v117_v11 = vmul.f32 %v374_v1, %v49_v62  ;;  %v242_v13 = vmax.f32 %v178_v60, 0.0  ;;  %v182_v14 = vadd.f32 %v379_v2, %v114_v61  ;;  %v118_v15 = vmul.f32 %v374_v1, %v50_v4  ;;  %v64_v60 = vld [vmem:[%s893_s0 + $0x190] sm:$0xff] }
  0x1c   :  { %297 = vst [vmem:[%s896_s3 + $0x98] sm:$0xff] %v233_v39  ;;  %v243_v17 = vmax.f32 %v179_v0, 0.0  ;;  %v183_v18 = vadd.f32 %v379_v2, %v115_v3  ;;  %v119_v19 = vmul.f32 %v374_v1, %v51_v8  ;;  %v244_v21 = vmax.f32 %v180_v6, 0.0  ;;  %v65_v0 = vld [vmem:[%s893_s0 + $0x198] sm:$0xff] }
  0x1d   :  { %298 = vst [vmem:[%s896_s3 + $0xa0] sm:$0xff] %v234_v43  ;;  %v184_v22 = vadd.f32 %v379_v2, %v116_v7  ;;  %v120_v23 = vmul.f32 %v374_v1, %v52_v12  ;;  %v245_v25 = vmax.f32 %v181_v10, 0.0  ;;  %v185_v26 = vadd.f32 %v379_v2, %v117_v11  ;;  %v77_v3 = vld [vmem:[%s893_s0 + $0x1f8] sm:$0xff]  ;;  %v66_v7 = vld [vmem:[%s893_s0 + $0x1a0] sm:$0xff]  ;;  %v67_v11 = vld [vmem:[%s893_s0 + $0x1a8] sm:$0xff] }
  0x1e   :  { %299 = vst [vmem:[%s896_s3 + $0xa8] sm:$0xff] %v235_v47  ;;  %v121_v27 = vmul.f32 %v374_v1, %v53_v16  ;;  %v246_v29 = vmax.f32 %v182_v14, 0.0  ;;  %v186_v30 = vadd.f32 %v379_v2, %v118_v15  ;;  %v122_v31 = vmul.f32 %v374_v1, %v54_v20  ;;  %v68_v15 = vld [vmem:[%s893_s0 + $0x1b0] sm:$0xff]  ;;  %v69_v20 = vld [vmem:[%s893_s0 + $0x1b8] sm:$0xff] }
  0x1f   :  { %300 = vst [vmem:[%s896_s3 + $0xb0] sm:$0xff] %v236_v51  ;;  %v247_v33 = vmax.f32 %v183_v18, 0.0  ;;  %v187_v34 = vadd.f32 %v379_v2, %v119_v19  ;;  %v123_v35 = vmul.f32 %v374_v1, %v55_v24  ;;  %v248_v37 = vmax.f32 %v184_v22, 0.0  ;;  %v70_v24 = vld [vmem:[%s893_s0 + $0x1c0] sm:$0xff] }
  0x20   :  { %301 = vst [vmem:[%s896_s3 + $0xb8] sm:$0xff] %v237_v55  ;;  %v188_v38 = vadd.f32 %v379_v2, %v120_v23  ;;  %v124_v39 = vmul.f32 %v374_v1, %v56_v28  ;;  %v249_v41 = vmax.f32 %v185_v26, 0.0  ;;  %v189_v42 = vadd.f32 %v379_v2, %v121_v27 }
  0x21   :  { %302 = vst [vmem:[%s896_s3 + $0xc0] sm:$0xff] %v238_v59  ;;  %v125_v43 = vmul.f32 %v374_v1, %v57_v32  ;;  %v250_v45 = vmax.f32 %v186_v30, 0.0  ;;  %v190_v46 = vadd.f32 %v379_v2, %v122_v31  ;;  %v126_v47 = vmul.f32 %v374_v1, %v58_v36 }
  0x22   :  { %303 = vst [vmem:[%s896_s3 + $0xc8] sm:$0xff] %v239_v63  ;;  %v251_v49 = vmax.f32 %v187_v34, 0.0  ;;  %v191_v50 = vadd.f32 %v379_v2, %v123_v35  ;;  %v127_v51 = vmul.f32 %v374_v1, %v59_v40  ;;  %v252_v53 = vmax.f32 %v188_v38, 0.0 }
  0x23   :  { %304 = vst [vmem:[%s896_s3 + $0xd0] sm:$0xff] %v240_v5  ;;  %v192_v54 = vadd.f32 %v379_v2, %v124_v39  ;;  %v128_v55 = vmul.f32 %v374_v1, %v60_v44  ;;  %v253_v57 = vmax.f32 %v189_v42, 0.0  ;;  %v193_v58 = vadd.f32 %v379_v2, %v125_v43 }
  0x24   :  { %305 = vst [vmem:[%s896_s3 + $0xd8] sm:$0xff] %v241_v9  ;;  %v129_v59 = vmul.f32 %v374_v1, %v61_v48  ;;  %v254_v61 = vmax.f32 %v190_v46, 0.0  ;;  %v194_v62 = vadd.f32 %v379_v2, %v126_v47  ;;  %v130_v63 = vmul.f32 %v374_v1, %v62_v52 }
  0x25   :  { %306 = vst [vmem:[%s896_s3 + $0xe0] sm:$0xff] %v242_v13  ;;  %v255_v4 = vmax.f32 %v191_v50, 0.0  ;;  %v195_v5 = vadd.f32 %v379_v2, %v127_v51  ;;  %v131_v6 = vmul.f32 %v374_v1, %v63_v56  ;;  %v256_v8 = vmax.f32 %v192_v54, 0.0 }
  0x26   :  { %307 = vst [vmem:[%s896_s3 + $0xe8] sm:$0xff] %v243_v17  ;;  %v196_v9 = vadd.f32 %v379_v2, %v128_v55  ;;  %v132_v10 = vmul.f32 %v374_v1, %v64_v60  ;;  %v257_v12 = vmax.f32 %v193_v58, 0.0  ;;  %v197_v13 = vadd.f32 %v379_v2, %v129_v59 }
  0x27   :  { %308 = vst [vmem:[%s896_s3 + $0xf0] sm:$0xff] %v244_v21  ;;  %v133_v14 = vmul.f32 %v374_v1, %v65_v0  ;;  %v145_v16 = vmul.f32 %v374_v1, %v77_v3  ;;  %v258_v17 = vmax.f32 %v194_v62, 0.0  ;;  %v198_v18 = vadd.f32 %v379_v2, %v130_v63 }
  0x28   :  { %309 = vst [vmem:[%s896_s3 + $0xf8] sm:$0xff] %v245_v25  ;;  %v134_v19 = vmul.f32 %v374_v1, %v66_v7  ;;  %v259_v21 = vmax.f32 %v195_v5, 0.0  ;;  %v199_v22 = vadd.f32 %v379_v2, %v131_v6  ;;  %v135_v23 = vmul.f32 %v374_v1, %v67_v11 }
  0x29   :  { %310 = vst [vmem:[%s896_s3 + $0x100] sm:$0xff] %v246_v29  ;;  %v784_v25 = vadd.f32 %v379_v2, %v145_v16  ;;  %v260_v26 = vmax.f32 %v196_v9, 0.0  ;;  %v200_v27 = vadd.f32 %v379_v2, %v132_v10  ;;  %v136_v28 = vmul.f32 %v374_v1, %v68_v15  ;;  %v71_v29 = vld [vmem:[%s893_s0 + $0x1c8] sm:$0xff] }
  0x2a   :  { %311 = vst [vmem:[%s896_s3 + $0x108] sm:$0xff] %v247_v33  ;;  %v261_v30 = vmax.f32 %v197_v13, 0.0  ;;  %v201_v31 = vadd.f32 %v379_v2, %v133_v14  ;;  %v137_v32 = vmul.f32 %v374_v1, %v69_v20  ;;  %v72_v33 = vld [vmem:[%s893_s0 + $0x1d0] sm:$0xff]  ;;  %v262_v34 = vmax.f32 %v198_v18, 0.0 }
  0x2b   :  { %312 = vst [vmem:[%s896_s3 + $0x110] sm:$0xff] %v248_v37  ;;  %v202_v35 = vadd.f32 %v379_v2, %v134_v19  ;;  %v138_v36 = vmul.f32 %v374_v1, %v70_v24  ;;  %v73_v37 = vld [vmem:[%s893_s0 + $0x1d8] sm:$0xff]  ;;  %v263_v38 = vmax.f32 %v199_v22, 0.0  ;;  %v203_v39 = vadd.f32 %v379_v2, %v135_v23 }
  0x2c   :  { %313 = vst [vmem:[%s896_s3 + $0x118] sm:$0xff] %v249_v41  ;;  %v139_v40 = vmul.f32 %v374_v1, %v71_v29  ;;  %v74_v41 = vld [vmem:[%s893_s0 + $0x1e0] sm:$0xff]  ;;  %v264_v42 = vmax.f32 %v200_v27, 0.0  ;;  %v204_v43 = vadd.f32 %v379_v2, %v136_v28  ;;  %v140_v44 = vmul.f32 %v374_v1, %v72_v33 }
  0x2d   :  { %314 = vst [vmem:[%s896_s3 + $0x120] sm:$0xff] %v250_v45  ;;  %v75_v45 = vld [vmem:[%s893_s0 + $0x1e8] sm:$0xff]  ;;  %v265_v46 = vmax.f32 %v201_v31, 0.0  ;;  %v205_v47 = vadd.f32 %v379_v2, %v137_v32  ;;  %v141_v48 = vmul.f32 %v374_v1, %v73_v37  ;;  %v266_v50 = vmax.f32 %v202_v35, 0.0 }
  0x2e   :  { %315 = vst [vmem:[%s896_s3 + $0x128] sm:$0xff] %v251_v49  ;;  %v76_v49 = vld [vmem:[%s893_s0 + $0x1f0] sm:$0xff]  ;;  %v206_v51 = vadd.f32 %v379_v2, %v138_v36  ;;  %v142_v52 = vmul.f32 %v374_v1, %v74_v41  ;;  %v207_v54 = vadd.f32 %v379_v2, %v139_v40  ;;  %v143_v55 = vmul.f32 %v374_v1, %v75_v45 }
  0x2f   :  { %316 = vst [vmem:[%s896_s3 + $0x130] sm:$0xff] %v252_v53  ;;  %v267_v53 = vmax.f32 %v203_v39, 0.0  ;;  %v268_v56 = vmax.f32 %v204_v43, 0.0  ;;  %v144_v58 = vmul.f32 %v374_v1, %v76_v49  ;;  %v269_v59 = vmax.f32 %v205_v47, 0.0 }
  0x30   :  { %317 = vst [vmem:[%s896_s3 + $0x138] sm:$0xff] %v253_v57  ;;  %v208_v57 = vadd.f32 %v379_v2, %v140_v44  ;;  %v209_v60 = vadd.f32 %v379_v2, %v141_v48  ;;  %v210_v62 = vadd.f32 %v379_v2, %v142_v52  ;;  %v271_v63 = vmax.f32 %v207_v54, 0.0 }
  0x31   :  { %318 = vst [vmem:[%s896_s3 + $0x140] sm:$0xff] %v254_v61  ;;  %v270_v61 = vmax.f32 %v206_v51, 0.0  ;;  %v211_v1 = vadd.f32 %v379_v2, %v143_v55  ;;  %v212_v3 = vadd.f32 %v379_v2, %v144_v58  ;;  %v277_v7 = vmax.f32 %v784_v25, 0.0 }
  0x32   :  { %319 = vst [vmem:[%s896_s3 + $0x148] sm:$0xff] %v255_v4  ;;  %v272_v0 = vmax.f32 %v208_v57, 0.0  ;;  %v273_v4 = vmax.f32 %v209_v60, 0.0  ;;  %v274_v5 = vmax.f32 %v210_v62, 0.0 }
  0x33   :  { %320 = vst [vmem:[%s896_s3 + $0x150] sm:$0xff] %v256_v8  ;;  %v275_v6 = vmax.f32 %v211_v1, 0.0  ;;  %v276_v2 = vmax.f32 %v212_v3, 0.0 }
  0x34   :  { %321 = vst [vmem:[%s896_s3 + $0x158] sm:$0xff] %v257_v12 }
  0x35   :  { %322 = vst [vmem:[%s896_s3 + $0x160] sm:$0xff] %v258_v17 }
  0x36   :  { %323 = vst [vmem:[%s896_s3 + $0x168] sm:$0xff] %v259_v21 }
  0x37   :  { %324 = vst [vmem:[%s896_s3 + $0x170] sm:$0xff] %v260_v26 }
  0x38   :  { %325 = vst [vmem:[%s896_s3 + $0x178] sm:$0xff] %v261_v30 }
  0x39   :  { %326 = vst [vmem:[%s896_s3 + $0x180] sm:$0xff] %v262_v34 }
  0x3a   :  { %327 = vst [vmem:[%s896_s3 + $0x188] sm:$0xff] %v263_v38 }
  0x3b   :  { %328 = vst [vmem:[%s896_s3 + $0x190] sm:$0xff] %v264_v42 }
  0x3c   :  { %329 = vst [vmem:[%s896_s3 + $0x198] sm:$0xff] %v265_v46 }
  0x3d   :  { %330 = vst [vmem:[%s896_s3 + $0x1a0] sm:$0xff] %v266_v50 }
  0x3e   :  { %331 = vst [vmem:[%s896_s3 + $0x1a8] sm:$0xff] %v267_v53 }
  0x3f   :  { %332 = vst [vmem:[%s896_s3 + $0x1b0] sm:$0xff] %v268_v56 }
  0x40   :  { %333 = vst [vmem:[%s896_s3 + $0x1b8] sm:$0xff] %v269_v59 }
  0x41   :  { %334 = vst [vmem:[%s896_s3 + $0x1c0] sm:$0xff] %v270_v61 }
  0x42   :  { %335 = vst [vmem:[%s896_s3 + $0x1c8] sm:$0xff] %v271_v63 }
  0x43   :  { %336 = vst [vmem:[%s896_s3 + $0x1d0] sm:$0xff] %v272_v0 }
  0x44   :  { %337 = vst [vmem:[%s896_s3 + $0x1d8] sm:$0xff] %v273_v4 }
  0x45   :  { %338 = vst [vmem:[%s896_s3 + $0x1e0] sm:$0xff] %v274_v5 }
  0x46   :  { %339 = vst [vmem:[%s896_s3 + $0x1e8] sm:$0xff] %v275_v6 }
  0x47   :  { %340 = vst [vmem:[%s896_s3 + $0x1f0] sm:$0xff] %v276_v2 }
  0x48   :  { %341 = vst [vmem:[%s896_s3 + $0x1f8] sm:$0xff] %v277_v7 }

// kernel: conv_block.3
= control target key start
LH: loop header
LB: loop body
LE: loop exit
PB: predicated region body
PF: predicated region fallthrough
CT: control target
= control target key end

     0   :  { %s4152_s21 = smov 0   ;;  %s5313_s0 = inlined_call_operand.vmem [shape: f32[2,16,16,4], index: 0, kind: input, shape index: {}]   ;;  %s5314_s1 = inlined_call_operand.vmem [shape: f32[9,4,128], index: 1, kind: input, shape index: {}]   ;;  %s5315_s2 = inlined_call_operand.vmem [shape: f32[1,4], index: 2, kind: input, shape index: {}]   ;;  %s5316_s3 = inlined_call_operand.vmem [shape: f32[1,4], index: 3, kind: input, shape index: {}]   ;;  %s5317_s4 = inlined_call_operand.vmem [shape: f32[2,16,16,128], index: 4, kind: output, shape index: {0}]   ;;  %s5318_s5 = inlined_call_operand.vmem [shape: f32[2,1,128], index: 5, kind: output, shape index: {1}]   ;;  %s5319_s6 = inlined_call_operand.vmem [shape: f32[2,1,128], index: 6, kind: output, shape index: {2}]  }
   0x1 LB: > { %s3778_s2 = sadd.s32 4294967295, %s4114_s21   ;;  %p3782_p0 = scmp.ge.s32.totalorder %s4114_s21, 1  ;;  %s4114_s21 = sphi %s4152_s21, %s17_s21  }
   0x2   : > { %p217_p1 = scmp.lt.s32.totalorder %s4114_s21, 3 }
   0x4   : > { %p218_p2 = pnand %p3782_p0, %p217_p1 }
   0x6   : > { %221 = sbr.rel (%p218_p2) target bundleno = 793 (0x319), region = 36 }
   0xb   : > { %v486_v0 = vld [vmem:[%s5314_s1] sm:$0xf]  ;;  %vm583_vm0 = vcmask 1043456   ;;  %p253_p3 = scmp.lt.s32.totalorder %s3778_s2, 1  ;;  %vm301_vm1 = vcmask 31744   ;;  %v4116_v1 = vmov 0.0  }
   0xc   : > { %4096 = vmatpush.msk.msra.mxu1 %vm583_vm0, %v486_v0  ;;  %4097 = vmatpush.msk.msra.mxu2 %vm583_vm0, %v486_v0  ;;  %315 = vst.msk [vmem:[#allocation2 + $0x60] sm:$0xff] %vm301_vm1, %v4116_v1  ;;  %v3854_v4 = vld [vmem:[%s5314_s1 + $0x8] sm:$0xf]  ;;  %v3888_v5 = vld [vmem:[%s5314_s1 + $0xc] sm:$0xf]  ;;  %vm304_vm2 = vcmask 25600  }
   0xd   : > { %s5442_s2 = smov (!%p253_p3, %s3778_s2), 1  ;;  %316 = vst.msk [vmem:[#allocation2 + $0x68] sm:$0xff] %vm301_vm1, %v4116_v1  ;;  %4098 = vmatpush.msk.msra.mxu3 %vm583_vm0, %v486_v0  ;;  %3787 = vmatpush.msk.msra.mxu0 %vm583_vm0, %v486_v0  ;;  %v3820_v6 = vld [vmem:[%s5314_s1 + $0x4] sm:$0xf]  ;;  %v3922_v10 = vld [vmem:[%s5314_s1 + $0x10] sm:$0xf] }
   0xe   : > { %302 = vst.msk [vmem:[#allocation2] sm:$0xff] %vm301_vm1, %v4116_v1  ;;  %s4094_s23 = sshll.u32 %s5442_s2, 8  ;;  %3855 = vmatpush.msk.msrb.mxu2 %vm583_vm0, %v3854_v4  ;;  %3821 = vmatpush.msk.msrb.mxu1 %vm583_vm0, %v3820_v6  ;;  %v3990_v57 = vld [vmem:[%s5314_s1 + $0x18] sm:$0xf]  ;;  %v4024_v58 = vld [vmem:[%s5314_s1 + $0x1c] sm:$0xf]  ;;  %s265_s24 = scalar_lea.vmem %s5318_s5, %s5442_s2 }
   0xf   : > { %303 = vst.msk [vmem:[#allocation2 + $0x8] sm:$0xff] %vm301_vm1, %v4116_v1  ;;  %s4183_s26 = scalar_lea.vmem %s5313_s0, %s4094_s23  ;;  %3889 = vmatpush.msk.msrb.mxu3 %vm583_vm0, %v3888_v5  ;;  %3923 = vmatpush.msk.msrb.mxu0 %vm583_vm0, %v3922_v10  ;;  %v3956_v59 = vld [vmem:[%s5314_s1 + $0x14] sm:$0xf]  ;;  %v4058_v0 = vld [vmem:[%s5314_s1 + $0x20] sm:$0xf]  ;;  %s5151_s3 = scalar_lea.vmem %s5317_s4, %s4094_s23 }
  0x10   : > { %306 = vst.msk [vmem:[#allocation2 + $0x18] sm:$0xff] %vm301_vm1, %v4116_v1  ;;  %v275_v2 = vld [vmem:[%s4183_s26 + $0x30] sm:$0xff]  ;;  %v276_v11 = vld [vmem:[%s4183_s26 + $0x38] sm:$0xff]  ;;  %v277_v18 = vld [vmem:[%s4183_s26 + $0x40] sm:$0xff]  ;;  %s268_s27 = scalar_lea.vmem %s5319_s6, %s5442_s2 }
  0x11   : > { %307 = vst.msk [vmem:[#allocation2 + $0x20] sm:$0xff] %vm301_vm1, %v4116_v1  ;;  %v283_v7 = vld [vmem:[%s4183_s26 + $0x70] sm:$0xff]  ;;  %v284_v16 = vld [vmem:[%s4183_s26 + $0x78] sm:$0xff]  ;;  %v285_v19 = vld [vmem:[%s4183_s26 + $0x80] sm:$0xff] }
  0x12   : > { %364 = vst.msk [vmem:[#allocation2 + $0x61] sm:$0xff] %vm301_vm1, %v275_v2  ;;  %v291_v9 = vld [vmem:[%s4183_s26 + $0xb0] sm:$0xff]  ;;  %v292_v17 = vld [vmem:[%s4183_s26 + $0xb8] sm:$0xff]  ;;  %v293_v20 = vld [vmem:[%s4183_s26 + $0xc0] sm:$0xff] }
  0x13   : > { %309 = vst.msk [vmem:[#allocation2 + $0x30] sm:$0xff] %vm301_vm1, %v4116_v1  ;;  %v278_v21 = vld [vmem:[%s4183_s26 + $0x48] sm:$0xff]  ;;  %v269_v23 = vld [vmem:[%s4183_s26] sm:$0xff]  ;;  %v279_v25 = vld [vmem:[%s4183_s26 + $0x50] sm:$0xff] }
  0x14   : > { %310 = vst.msk [vmem:[#allocation2 + $0x38] sm:$0xff] %vm301_vm1, %v4116_v1  ;;  %v286_v22 = vld [vmem:[%s4183_s26 + $0x88] sm:$0xff]  ;;  %v287_v27 = vld [vmem:[%s4183_s26 + $0x90] sm:$0xff]  ;;  %v280_v32 = vld [vmem:[%s4183_s26 + $0x58] sm:$0xff] }
  0x15   : > { %312 = vst.msk [vmem:[#allocation2 + $0x48] sm:$0xff] %vm301_vm1, %v4116_v1  ;;  %v422_v8 = vld [vmem:[#allocation2] sm:$0xff]  ;;  %v294_v24 = vld [vmem:[%s4183_s26 + $0xc8] sm:$0xff]  ;;  %v295_v31 = vld [vmem:[%s4183_s26 + $0xd0] sm:$0xff] }
  0x16   : > { %313 = vst.msk [vmem:[#allocation2 + $0x50] sm:$0xff] %vm301_vm1, %v4116_v1  ;;  %3788 = vmatmul.msk.f32.vlgmr.msra.gmra.mxu0 %vm301_vm1, %v422_v8  ;;  %v423_v12 = vld [vmem:[#allocation2 + $0x8] sm:$0xff]  ;;  %v288_v33 = vld [vmem:[%s4183_s26 + $0x98] sm:$0xff]  ;;  %v271_v34 = vld [vmem:[%s4183_s26 + $0x10] sm:$0xff] }
  0x17   : > { %318 = vst.msk [vmem:[#allocation2 + $0x78] sm:$0xff] %vm301_vm1, %v4116_v1  ;;  %v270_v29 = vld [vmem:[%s4183_s26 + $0x8] sm:$0xff]  ;;  %v296_v36 = vld [vmem:[%s4183_s26 + $0xd8] sm:$0xff]  ;;  %v281_v39 = vld [vmem:[%s4183_s26 + $0x60] sm:$0xff]  ;;  %4059 = vmatpush.msk.msra.mxu0 %vm583_vm0, %v4058_v0 }
  0x18   : > { %319 = vst.msk [vmem:[#allocation2 + $0x80] sm:$0xff] %vm301_vm1, %v4116_v1  ;;  %v289_v41 = vld [vmem:[%s4183_s26 + $0xa0] sm:$0xff]  ;;  %v272_v42 = vld [vmem:[%s4183_s26 + $0x18] sm:$0xff]  ;;  %v282_v44 = vld [vmem:[%s4183_s26 + $0x68] sm:$0xff] }
  0x19   : > { %v4203_v3 = vld [vmem:[#allocation2 + $0x60] sm:$0xff]  ;;  %321 = vst.msk [vmem:[#allocation2 + $0x90] sm:$0xff] %vm301_vm1, %v4116_v1  ;;  %v290_v45 = vld [vmem:[%s4183_s26 + $0xa8] sm:$0xff] }
  0x1a   : > { %3796 = vmatmul.msk.f32.vlgmr.msra.gmra.mxu1 %vm301_vm1, %v4203_v3  ;;  %322 = vst.msk [vmem:[#allocation2 + $0x98] sm:$0xff] %vm301_vm1, %v4116_v1  ;;  %v297_v43 = vld [vmem:[%s4183_s26 + $0xe0] sm:$0xff]  ;;  %v298_v49 = vld [vmem:[%s4183_s26 + $0xe8] sm:$0xff] }
  0x1b   : > { %324 = vst.msk [vmem:[#allocation2 + $0xa8] sm:$0xff] %vm301_vm1, %v4116_v1  ;;  %v273_v47 = vld [vmem:[%s4183_s26 + $0x20] sm:$0xff]  ;;  %v274_v52 = vld [vmem:[%s4183_s26 + $0x28] sm:$0xff]  ;;  %3957 = vmatpush.msk.msra.mxu1 %vm583_vm0, %v3956_v59 }
  0x1c   : > { %325 = vst.msk [vmem:[#allocation2 + $0xb0] sm:$0xff] %vm301_vm1, %v4116_v1 }
  0x1d   : > { %327 = vst.msk [vmem:[#allocation2 + $0xc0] sm:$0xff] %vm301_vm1, %v4116_v1 }
  0x1e   : > { %328 = vst.msk [vmem:[#allocation2 + $0xc8] sm:$0xff] %vm301_vm1, %v4116_v1  ;;  %3789 = vmatmul.msk.f32.gmra.mxu0 %vm301_vm1, %v423_v12 }
  0x1f   : > { %330 = vst.msk [vmem:[#allocation2 + $0xd8] sm:$0xff] %vm301_vm1, %v4116_v1 }
  0x20   : > { %331 = vst.msk [vmem:[#allocation2 + $0xe0] sm:$0xff] %vm301_vm1, %v4116_v1 }
  0x21   : > { %333 = vst.msk [vmem:[#allocation2 + $0xf0] sm:$0xff] %vm301_vm1, %v4116_v1 }
  0x22   : > { %334 = vst.msk [vmem:[#allocation2 + $0xf8] sm:$0xff] %vm301_vm1, %v4116_v1 }
  0x23   : > { %336 = vst.msk [vmem:[#allocation2 + $0x108] sm:$0xff] %vm301_vm1, %v4116_v1 }
  0x24   : > { %337 = vst.msk [vmem:[#allocation2 + $0x110] sm:$0xff] %vm301_vm1, %v4116_v1 }
  0x25   : > { %339 = vst.msk [vmem:[#allocation2 + $0x120] sm:$0xff] %vm301_vm1, %v4116_v1 }
  0x26   : > { %340 = vst.msk [vmem:[#allocation2 + $0x128] sm:$0xff] %vm301_vm1, %v4116_v1 }
  0x27   : > { %342 = vst.msk [vmem:[#allocation2 + $0x138] sm:$0xff] %vm301_vm1, %v4116_v1 }
  0x28   : > { %343 = vst.msk [vmem:[#allocation2 + $0x140] sm:$0xff] %vm301_vm1, %v4116_v1 }
  0x29   : > { %345 = vst.msk [vmem:[#allocation2 + $0x150] sm:$0xff] %vm301_vm1, %v4116_v1 }
  0x2a   : > { %346 = vst.msk [vmem:[#allocation2 + $0x158] sm:$0xff] %vm301_vm1, %v4116_v1 }
  0x2b   : > { %348 = vst.msk [vmem:[#allocation2 + $0x168] sm:$0xff] %vm301_vm1, %v4116_v1 }
  0x2c   : > { %349 = vst.msk [vmem:[#allocation2 + $0x170] sm:$0xff] %vm301_vm1, %v4116_v1 }
  0x2d   : > { %351 = vst.msk [vmem:[#allocation2 + $0x180] sm:$0xff] %vm301_vm1, %v4116_v1 }
  0x2e   : > { %352 = vst.msk [vmem:[#allocation2 + $0x188] sm:$0xff] %vm301_vm1, %v4116_v1 }
  0x2f   : > { %354 = vst.msk [vmem:[#allocation2 + $0x198] sm:$0xff] %vm301_vm1, %v4116_v1 }
  0x30   : > { %355 = vst.msk [vmem:[#allocation2 + $0x1a0] sm:$0xff] %vm301_vm1, %v4116_v1 }
  0x31   : > { %372 = vst.msk [vmem:[#allocation2 + $0xc1] sm:$0xff] %vm301_vm1, %v283_v7 }
  0x32   : > { %380 = vst.msk [vmem:[#allocation2 + $0x121] sm:$0xff] %vm301_vm1, %v291_v9  ;;  %v764_v9 = vld [vmem:[#allocation2 + $0x1] sm:$0xff] }
  0x33   : > { %317 = vst.msk [vmem:[#allocation2 + $0x70] sm:$0x3] %vm304_vm2, %v4116_v1 }
  0x34   : > { %365 = vst.msk [vmem:[#allocation2 + $0x69] sm:$0xff] %vm301_vm1, %v276_v11  ;;  %v1106_v11 = vld [vmem:[#allocation2 + $0x2] sm:$0xff] }
  0x35   : > { %305 = vst.msk [vmem:[#allocation2 + $0x10] sm:$0x3] %vm304_vm2, %v4116_v1 }
  0x36   : > { %308 = vst.msk [vmem:[#allocation2 + $0x28] sm:$0x3] %vm304_vm2, %v4116_v1 }
  0x37   : > { %311 = vst.msk [vmem:[#allocation2 + $0x40] sm:$0x3] %vm304_vm2, %v4116_v1 }
  0x38   : > { %v4287_v13 = vld [vmem:[#allocation2 + $0xc0] sm:$0xff]  ;;  %314 = vst.msk [vmem:[#allocation2 + $0x58] sm:$0x3] %vm304_vm2, %v4116_v1 }
  0x39   : > { %3804 = vmatmul.msk.f32.vlgmr.msra.gmra.mxu2 %vm301_vm1, %v4287_v13  ;;  %v4293_v14 = vld [vmem:[#allocation2 + $0x120] sm:$0xff]  ;;  %320 = vst.msk [vmem:[#allocation2 + $0x88] sm:$0x3] %vm304_vm2, %v4116_v1 }
  0x3a   : > { %3812 = vmatmul.msk.f32.vlgmr.msra.gmra.mxu3 %vm301_vm1, %v4293_v14  ;;  %323 = vst.msk [vmem:[#allocation2 + $0xa0] sm:$0x3] %vm304_vm2, %v4116_v1  ;;  %3991 = vmatpush.msk.msra.mxu2 %vm583_vm0, %v3990_v57 }
  0x3b   : > { %v4301_v15 = vld [vmem:[#allocation2 + $0x68] sm:$0xff]  ;;  %326 = vst.msk [vmem:[#allocation2 + $0xb8] sm:$0x3] %vm304_vm2, %v4116_v1  ;;  %4025 = vmatpush.msk.msra.mxu3 %vm583_vm0, %v4024_v58 }
  0x3c   : > { %3797 = vmatmul.msk.f32.gmra.mxu1 %vm301_vm1, %v4301_v15  ;;  %329 = vst.msk [vmem:[#allocation2 + $0xd0] sm:$0x3] %vm304_vm2, %v4116_v1  ;;  %v765_v12 = vld [vmem:[#allocation2 + $0x9] sm:$0xff] }
  0x3d   : > { %332 = vst.msk [vmem:[#allocation2 + $0xe8] sm:$0x3] %vm304_vm2, %v4116_v1 }
  0x3e   : > { %335 = vst.msk [vmem:[#allocation2 + $0x100] sm:$0x3] %vm304_vm2, %v4116_v1 }
  0x3f   : > { %338 = vst.msk [vmem:[#allocation2 + $0x118] sm:$0x3] %vm304_vm2, %v4116_v1 }
  0x40   : > { %341 = vst.msk [vmem:[#allocation2 + $0x130] sm:$0x3] %vm304_vm2, %v4116_v1 }
  0x41   : > { %344 = vst.msk [vmem:[#allocation2 + $0x148] sm:$0x3] %vm304_vm2, %v4116_v1 }
  0x42   : > { %347 = vst.msk [vmem:[#allocation2 + $0x160] sm:$0x3] %vm304_vm2, %v4116_v1 }
  0x43   : > { %350 = vst.msk [vmem:[#allocation2 + $0x178] sm:$0x3] %vm304_vm2, %v4116_v1 }
  0x44   : > { %353 = vst.msk [vmem:[#allocation2 + $0x190] sm:$0x3] %vm304_vm2, %v4116_v1 }
  0x45   : > { %356 = vst.msk [vmem:[#allocation2 + $0x1a8] sm:$0x3] %vm304_vm2, %v4116_v1 }
  0x46   : > { %373 = vst.msk [vmem:[#allocation2 + $0xc9] sm:$0xff] %vm301_vm1, %v284_v16 }
  0x47   : > { %381 = vst.msk [vmem:[#allocation2 + $0x129] sm:$0xff] %vm301_vm1, %v292_v17  ;;  %v1107_v17 = vld [vmem:[#allocation2 + $0xa] sm:$0xff] }
  0x48   : > { %366 = vst.msk [vmem:[#allocation2 + $0x79] sm:$0xff] %vm301_vm1, %v277_v18 }
  0x49   : > { %374 = vst.msk [vmem:[#allocation2 + $0xd9] sm:$0xff] %vm301_vm1, %v285_v19 }
  0x4a   : > { %382 = vst.msk [vmem:[#allocation2 + $0x139] sm:$0xff] %vm301_vm1, %v293_v20 }
  0x4b   : > { %367 = vst.msk [vmem:[#allocation2 + $0x81] sm:$0xff] %vm301_vm1, %v278_v21 }
  0x4c   : > { %375 = vst.msk [vmem:[#allocation2 + $0xe1] sm:$0xff] %vm301_vm1, %v286_v22 }
  0x4d   : > { %v4344_v26 = vld [vmem:[#allocation2 + $0xc8] sm:$0xff]  ;;  %358 = vst.msk [vmem:[#allocation2 + $0x19] sm:$0xff] %vm301_vm1, %v269_v23 }
  0x4e   : > { %3805 = vmatmul.msk.f32.gmra.mxu2 %vm301_vm1, %v4344_v26  ;;  %v4350_v28 = vld [vmem:[#allocation2 + $0x128] sm:$0xff]  ;;  %383 = vst.msk [vmem:[#allocation2 + $0x141] sm:$0xff] %vm301_vm1, %v294_v24 }
  0x4f   : > { %3813 = vmatmul.msk.f32.gmra.mxu3 %vm301_vm1, %v4350_v28  ;;  %v4356_v30 = vld [vmem:[#allocation2 + $0x78] sm:$0xff]  ;;  %368 = vst.msk [vmem:[#allocation2 + $0x91] sm:$0xff] %vm301_vm1, %v279_v25 }
  0x50   : > { %3798 = vmatmul.msk.f32.gmra.mxu1 %vm301_vm1, %v4356_v30  ;;  %376 = vst.msk [vmem:[#allocation2 + $0xf1] sm:$0xff] %vm301_vm1, %v287_v27  ;;  %v4368_v35 = vld [vmem:[#allocation2 + $0xd8] sm:$0xff]  ;;  %v4557_v27 = vld [vmem:[#allocation2 + $0x61] sm:$0xff] }
  0x51   : > { %359 = vst.msk [vmem:[#allocation2 + $0x21] sm:$0xff] %vm301_vm1, %v270_v29  ;;  %v4372_v37 = vld [vmem:[#allocation2 + $0x138] sm:$0xff] }
  0x52   : > { %384 = vst.msk [vmem:[#allocation2 + $0x151] sm:$0xff] %vm301_vm1, %v295_v31  ;;  %v4378_v40 = vld [vmem:[#allocation2 + $0x80] sm:$0xff] }
  0x53   : > { %369 = vst.msk [vmem:[#allocation2 + $0x99] sm:$0xff] %vm301_vm1, %v280_v32  ;;  %v4402_v48 = vld [vmem:[#allocation2 + $0xe0] sm:$0xff]  ;;  %v4571_v32 = vld [vmem:[#allocation2 + $0x69] sm:$0xff] }
  0x54   : > { %v4374_v38 = vld [vmem:[#allocation2 + $0x18] sm:$0xff]  ;;  %377 = vst.msk [vmem:[#allocation2 + $0xf9] sm:$0xff] %vm301_vm1, %v288_v33  ;;  %v4647_v0 = vld [vmem:[#allocation2 + $0x82] sm:$0xff] }
  0x55   : > { %3790 = vmatmul.msk.f32.gmra.mxu0 %vm301_vm1, %v4374_v38  ;;  %360 = vst.msk [vmem:[#allocation2 + $0x31] sm:$0xff] %vm301_vm1, %v271_v34  ;;  %v4406_v50 = vld [vmem:[#allocation2 + $0x140] sm:$0xff] }
  0x56   : > { %3806 = vmatmul.msk.f32.gmra.mxu2 %vm301_vm1, %v4368_v35  ;;  %385 = vst.msk [vmem:[#allocation2 + $0x159] sm:$0xff] %vm301_vm1, %v296_v36  ;;  %v4409_v51 = vld [vmem:[#allocation2 + $0x90] sm:$0xff]  ;;  %v1790_v10 = vld [vmem:[#allocation2 + $0x19] sm:$0xff]  ;;  %v4587_v36 = vld [vmem:[#allocation2 + $0x62] sm:$0xff] }
  0x57   : > { %3814 = vmatmul.msk.f32.gmra.mxu3 %vm301_vm1, %v4372_v37  ;;  %370 = vst.msk [vmem:[#allocation2 + $0xa9] sm:$0xff] %vm301_vm1, %v281_v39  ;;  %v4425_v54 = vld [vmem:[#allocation2 + $0xf0] sm:$0xff] }
  0x58   : > { %3799 = vmatmul.msk.f32.gmra.mxu1 %vm301_vm1, %v4378_v40  ;;  %378 = vst.msk [vmem:[#allocation2 + $0x109] sm:$0xff] %vm301_vm1, %v289_v41  ;;  %v4398_v46 = vld [vmem:[#allocation2 + $0x20] sm:$0xff] }
  0x59   : > { %361 = vst.msk [vmem:[#allocation2 + $0x39] sm:$0xff] %vm301_vm1, %v272_v42  ;;  %v4427_v55 = vld [vmem:[#allocation2 + $0x150] sm:$0xff]  ;;  %v1791_v16 = vld [vmem:[#allocation2 + $0x21] sm:$0xff] }
  0x5a   : > { %386 = vst.msk [vmem:[#allocation2 + $0x169] sm:$0xff] %vm301_vm1, %v297_v43  ;;  %v4429_v56 = vld [vmem:[#allocation2 + $0x98] sm:$0xff]  ;;  %v4523_v21 = vld [vmem:[#allocation2 + $0x22] sm:$0xff]  ;;  %v4607_v43 = vld [vmem:[#allocation2 + $0x6a] sm:$0xff] }
  0x5b   : > { %371 = vst.msk [vmem:[#allocation2 + $0xb1] sm:$0xff] %vm301_vm1, %v282_v44  ;;  %v4453_v61 = vld [vmem:[#allocation2 + $0xf8] sm:$0xff]  ;;  %v4605_v42 = vld [vmem:[#allocation2 + $0x81] sm:$0xff] }
  0x5c   : > { %379 = vst.msk [vmem:[#allocation2 + $0x111] sm:$0xff] %vm301_vm1, %v290_v45  ;;  %v4423_v53 = vld [vmem:[#allocation2 + $0x30] sm:$0xff]  ;;  %v4512_v19 = vld [vmem:[#allocation2 + $0x1a] sm:$0xff] }
  0x5d   : > { %3791 = vmatmul.msk.f32.gmra.mxu0 %vm301_vm1, %v4398_v46  ;;  %362 = vst.msk [vmem:[#allocation2 + $0x49] sm:$0xff] %vm301_vm1, %v273_v47  ;;  %v4455_v62 = vld [vmem:[#allocation2 + $0x158] sm:$0xff] }
  0x5e   : > { %3807 = vmatmul.msk.f32.gmra.mxu2 %vm301_vm1, %v4402_v48  ;;  %387 = vst.msk [vmem:[#allocation2 + $0x171] sm:$0xff] %vm301_vm1, %v298_v49  ;;  %v4457_v63 = vld [vmem:[#allocation2 + $0xa8] sm:$0xff]  ;;  %v4510_v18 = vld [vmem:[#allocation2 + $0x31] sm:$0xff]  ;;  %v4627_v49 = vld [vmem:[#allocation2 + $0x7a] sm:$0xff] }
  0x5f   : > { %3815 = vmatmul.msk.f32.gmra.mxu3 %vm301_vm1, %v4406_v50  ;;  %363 = vst.msk [vmem:[#allocation2 + $0x51] sm:$0xff] %vm301_vm1, %v274_v52  ;;  %v4473_v2 = vld [vmem:[#allocation2 + $0x108] sm:$0xff]  ;;  %v4625_v47 = vld [vmem:[#allocation2 + $0x91] sm:$0xff]  ;;  %v4645_v59 = vld [vmem:[#allocation2 + $0x99] sm:$0xff] }
  0x60   : > { %3800 = vmatmul.msk.f32.gmra.mxu1 %vm301_vm1, %v4409_v51  ;;  %v4451_v60 = vld [vmem:[#allocation2 + $0x38] sm:$0xff]  ;;  %5349 = vst [vmem:[#allocation4_spill] sm:$0xff] %v4557_v27 }
  0x61   : > { %v4475_v4 = vld [vmem:[#allocation2 + $0x168] sm:$0xff]  ;;  %v4521_v20 = vld [vmem:[#allocation2 + $0x39] sm:$0xff]  ;;  %5350 = vst [vmem:[#allocation5_spill] sm:$0xff] %v4571_v32 }
  0x62   : > { %v4477_v5 = vld [vmem:[#allocation2 + $0xb0] sm:$0xff]  ;;  %v4547_v25 = vld [vmem:[#allocation2 + $0x3a] sm:$0xff]  ;;  %5353 = vst [vmem:[#allocation8_spill] sm:$0xff] %v4605_v42 }
  0x63   : > { %v4489_v7 = vld [vmem:[#allocation2 + $0x110] sm:$0xff]  ;;  %5354 = vst [vmem:[#allocation9_spill] sm:$0xff] %v4607_v43 }
  0x64   : > { %v4471_v1 = vld [vmem:[#allocation2 + $0x48] sm:$0xff]  ;;  %v4535_v23 = vld [vmem:[#allocation2 + $0x32] sm:$0xff]  ;;  %5356 = vst [vmem:[#allocation11_spill] sm:$0xff] %v4625_v47 }
  0x65   : > { %3792 = vmatmul.msk.f32.gmra.mxu0 %vm301_vm1, %v4423_v53  ;;  %v4491_v8 = vld [vmem:[#allocation2 + $0x170] sm:$0xff]  ;;  %5357 = vst [vmem:[#allocation12_spill] sm:$0xff] %v4627_v49 }
  0x66   : > { %3808 = vmatmul.msk.f32.gmra.mxu2 %vm301_vm1, %v4425_v54  ;;  %v4487_v6 = vld [vmem:[#allocation2 + $0x50] sm:$0xff]  ;;  %5359 = vst [vmem:[#allocation14_spill] sm:$0xff] %v4645_v59 }
  0x67   : > { %3816 = vmatmul.msk.f32.gmra.mxu3 %vm301_vm1, %v4427_v55  ;;  %v4533_v22 = vld [vmem:[#allocation2 + $0x49] sm:$0xff]  ;;  %v4545_v24 = vld [vmem:[#allocation2 + $0x51] sm:$0xff]  ;;  %5360 = vst [vmem:[#allocation15_spill] sm:$0xff] %v4647_v0 }
  0x68   : > { %3801 = vmatmul.msk.f32.gmra.mxu1 %vm301_vm1, %v4429_v56  ;;  %v4559_v29 = vld [vmem:[#allocation2 + $0x4a] sm:$0xff]  ;;  %v4573_v33 = vld [vmem:[#allocation2 + $0x52] sm:$0xff] }
  0x6d   : > { %3793 = vmatmul.msk.f32.gmra.mxu0 %vm301_vm1, %v4451_v60 }
  0x6e   : > { %3809 = vmatmul.msk.f32.gmra.mxu2 %vm301_vm1, %v4453_v61 }
  0x6f   : > { %3817 = vmatmul.msk.f32.gmra.mxu3 %vm301_vm1, %v4455_v62 }
  0x70   : > { %3802 = vmatmul.msk.f32.gmra.mxu1 %vm301_vm1, %v4457_v63 }
  0x75   : > { %3794 = vmatmul.msk.f32.gmra.mxu0 %vm301_vm1, %v4471_v1 }
  0x76   : > { %3810 = vmatmul.msk.f32.gmra.mxu2 %vm301_vm1, %v4473_v2 }
  0x77   : > { %3818 = vmatmul.msk.f32.gmra.mxu3 %vm301_vm1, %v4475_v4 }
  0x78   : > { %3803 = vmatmul.msk.f32.gmra.mxu1 %vm301_vm1, %v4477_v5 }
  0x7d   : > { %3795 = vmatmul.msk.f32.gmra.mxu0 %vm301_vm1, %v4487_v6 }
  0x7e   : > { %3811 = vmatmul.msk.f32.gmra.mxu2 %vm301_vm1, %v4489_v7 }
  0x7f   : > { %3819 = vmatmul.msk.f32.gmra.mxu3 %vm301_vm1, %v4491_v8 }
  0x80   : > { %3822 = vmatmul.msk.f32.vlgmr.msrb.gmra.mxu1 %vm301_vm1, %v764_v9 }
  0x85   : > { %3924 = vmatmul.msk.f32.vlgmr.msrb.gmra.mxu0 %vm301_vm1, %v1790_v10 }
  0x86   : > { %3856 = vmatmul.msk.f32.vlgmr.msrb.gmra.mxu2 %vm301_vm1, %v1106_v11 }
  0x87   : > { %3890 = vmatmul.msk.f32.vlgmr.msrb.gmra.mxu3 %vm301_vm1, %v4374_v38 }
  0x88   : > { %3823 = vmatmul.msk.f32.gmra.mxu1 %vm301_vm1, %v765_v12  ;;  %v4665_v12 = vld [vmem:[#allocation2 + $0xa9] sm:$0xff] }
  0x89   : > { %5362 = vst [vmem:[#allocation17_spill] sm:$0xff] %v4665_v12 }
  0x8d   : > { %3925 = vmatmul.msk.f32.gmra.mxu0 %vm301_vm1, %v1791_v16 }
  0x8e   : > { %3857 = vmatmul.msk.f32.gmra.mxu2 %vm301_vm1, %v1107_v17 }
  0x8f   : > { %3891 = vmatmul.msk.f32.gmra.mxu3 %vm301_vm1, %v4398_v46 }
  0x90   : > { %3824 = vmatmul.msk.f32.gmra.mxu1 %vm301_vm1, %v1790_v10 }
  0x93   : > { %v4579_v34 = vpop.f32.mrf.mxu0 }
  0x95   : > { %3926 = vmatmul.msk.f32.gmra.mxu0 %vm301_vm1, %v4510_v18 }
  0x96   : > { %3858 = vmatmul.msk.f32.gmra.mxu2 %vm301_vm1, %v4512_v19 }
  0x97   : > { %3892 = vmatmul.msk.f32.gmra.mxu3 %vm301_vm1, %v4423_v53  ;;  %v4569_v31 = vpop.f32.mrf.mxu1 }
  0x98   : > { %3825 = vmatmul.msk.f32.gmra.mxu1 %vm301_vm1, %v1791_v16  ;;  %v4667_v16 = vld [vmem:[#allocation2 + $0x92] sm:$0xff] }
  0x99   : > { %5363 = vst [vmem:[#allocation18_spill] sm:$0xff] %v4667_v16 }
  0x9b   : > { %v4603_v41 = vpop.f32.mrf.mxu0 }
  0x9d   : > { %3927 = vmatmul.msk.f32.gmra.mxu0 %vm301_vm1, %v4521_v20 }
  0x9e   : > { %3859 = vmatmul.msk.f32.gmra.mxu2 %vm301_vm1, %v4523_v21 }
  0x9f   : > { %3893 = vmatmul.msk.f32.gmra.mxu3 %vm301_vm1, %v4451_v60 }
  0xa0   : > { %3826 = vmatmul.msk.f32.gmra.mxu1 %vm301_vm1, %v4510_v18 }
  0xa5   : > { %3928 = vmatmul.msk.f32.gmra.mxu0 %vm301_vm1, %v4533_v22 }
  0xa6   : > { %3860 = vmatmul.msk.f32.gmra.mxu2 %vm301_vm1, %v4535_v23 }
  0xa7   : > { %3894 = vmatmul.msk.f32.gmra.mxu3 %vm301_vm1, %v4471_v1 }
  0xa8   : > { %3827 = vmatmul.msk.f32.gmra.mxu1 %vm301_vm1, %v4521_v20 }
  0xad   : > { %3929 = vmatmul.msk.f32.gmra.mxu0 %vm301_vm1, %v4545_v24 }
  0xae   : > { %3861 = vmatmul.msk.f32.gmra.mxu2 %vm301_vm1, %v4547_v25 }
  0xaf   : > { %3895 = vmatmul.msk.f32.gmra.mxu3 %vm301_vm1, %v4487_v6 }
  0xb0   : > { %3828 = vmatmul.msk.f32.gmra.mxu1 %vm301_vm1, %v4533_v22 }
  0xb5   : > { %3930 = vmatmul.msk.f32.gmra.mxu0 %vm301_vm1, %v4557_v27 }
  0xb6   : > { %3862 = vmatmul.msk.f32.gmra.mxu2 %vm301_vm1, %v4559_v29 }
  0xb7   : > { %3896 = vmatmul.msk.f32.gmra.mxu3 %vm301_vm1, %v4203_v3  ;;  %v4585_v3 = vld [vmem:[#allocation2 + $0x79] sm:$0xff] }
  0xb8   : > { %3829 = vmatmul.msk.f32.gmra.mxu1 %vm301_vm1, %v4545_v24  ;;  %5351 = vst [vmem:[#allocation6_spill] sm:$0xff] %v4585_v3 }
  0xb9   : > { %v4589_v38 = vpop.f32.mrf.mxu1 }
  0xbc   : > { %v4597_v39 = vpop.f32.mrf.mxu2 }
  0xbd   : > { %3931 = vmatmul.msk.f32.gmra.mxu0 %vm301_vm1, %v4571_v32 }
  0xbe   : > { %3863 = vmatmul.msk.f32.gmra.mxu2 %vm301_vm1, %v4573_v33 }
  0xbf   : > { %3897 = vmatmul.msk.f32.gmra.mxu3 %vm301_vm1, %v4301_v15  ;;  %v4599_v15 = vpop.f32.mrf.mxu3 }
  0xc0   : > { %3830 = vmatmul.msk.f32.gmra.mxu1 %vm301_vm1, %v4557_v27  ;;  %5352 = vst [vmem:[#allocation7_spill] sm:$0xff] %v4599_v15  ;;  %v4687_v15 = vld [vmem:[#allocation2 + $0x9a] sm:$0xff] }
  0xc1   : > { %5367 = vst [vmem:[#allocation22_spill] sm:$0xff] %v4687_v15 }
  0xc5   : > { %3932 = vmatmul.msk.f32.gmra.mxu0 %vm301_vm1, %v4585_v3 }
  0xc6   : > { %3864 = vmatmul.msk.f32.gmra.mxu2 %vm301_vm1, %v4587_v36 }
  0xc7   : > { %3898 = vmatmul.msk.f32.gmra.mxu3 %vm301_vm1, %v4356_v30 }
  0xc8   : > { %3831 = vmatmul.msk.f32.gmra.mxu1 %vm301_vm1, %v4571_v32  ;;  %v4754_v32 = vld [vmem:[#allocation2 + $0xe1] sm:$0xff] }
  0xcd   : > { %v4609_v44 = vpop.f32.mrf.mxu1  ;;  %3933 = vmatmul.msk.f32.gmra.mxu0 %vm301_vm1, %v4605_v42 }
  0xce   : > { %3865 = vmatmul.msk.f32.gmra.mxu2 %vm301_vm1, %v4607_v43  ;;  %v4756_v43 = vld [vmem:[#allocation2 + $0xca] sm:$0xff] }
  0xcf   : > { %3899 = vmatmul.msk.f32.gmra.mxu3 %vm301_vm1, %v4378_v40 }
  0xd0   : > { %3832 = vmatmul.msk.f32.gmra.mxu1 %vm301_vm1, %v4585_v3  ;;  %v4727_v3 = vld [vmem:[#allocation2 + $0xb2] sm:$0xff] }
  0xd1   : > { %v4619_v30 = vpop.f32.mrf.mxu2  ;;  %5374 = vst [vmem:[#allocation29_spill] sm:$0xff] %v4727_v3 }
  0xd2   : > { %v4621_v45 = vpop.f32.mrf.mxu3  ;;  %v4623_v46 = vpop.f32.mrf.mxu0 }
  0xd3   : > { %5355 = vst [vmem:[#allocation10_spill] sm:$0xff] %v4621_v45  ;;  %v4685_v45 = vld [vmem:[#allocation2 + $0xb1] sm:$0xff] }
  0xd4   : > { %5366 = vst [vmem:[#allocation21_spill] sm:$0xff] %v4685_v45 }
  0xd5   : > { %v4629_v52 = vpop.f32.mrf.mxu1  ;;  %3934 = vmatmul.msk.f32.gmra.mxu0 %vm301_vm1, %v4625_v47 }
  0xd6   : > { %3866 = vmatmul.msk.f32.gmra.mxu2 %vm301_vm1, %v4627_v49 }
  0xd7   : > { %3900 = vmatmul.msk.f32.gmra.mxu3 %vm301_vm1, %v4409_v51 }
  0xd8   : > { %3833 = vmatmul.msk.f32.gmra.mxu1 %vm301_vm1, %v4605_v42  ;;  %v4707_v42 = vld [vmem:[#allocation2 + $0xaa] sm:$0xff] }
  0xd9   : > { %v4639_v40 = vpop.f32.mrf.mxu2  ;;  %5371 = vst [vmem:[#allocation26_spill] sm:$0xff] %v4707_v42 }
  0xda   : > { %v4641_v57 = vpop.f32.mrf.mxu3  ;;  %v4643_v58 = vpop.f32.mrf.mxu0 }
  0xdb   : > { %5358 = vst [vmem:[#allocation13_spill] sm:$0xff] %v4641_v57 }
  0xdd   : > { %v4649_v9 = vpop.f32.mrf.mxu1  ;;  %3935 = vmatmul.msk.f32.gmra.mxu0 %vm301_vm1, %v4645_v59 }
  0xde   : > { %3867 = vmatmul.msk.f32.gmra.mxu2 %vm301_vm1, %v4647_v0 }
  0xdf   : > { %3901 = vmatmul.msk.f32.gmra.mxu3 %vm301_vm1, %v4429_v56 }
  0xe0   : > { %3834 = vmatmul.msk.f32.gmra.mxu1 %vm301_vm1, %v4625_v47 }
  0xe1   : > { %v4659_v51 = vpop.f32.mrf.mxu2 }
  0xe2   : > { %v4661_v10 = vpop.f32.mrf.mxu3  ;;  %v4663_v11 = vpop.f32.mrf.mxu0 }
  0xe3   : > { %5361 = vst [vmem:[#allocation16_spill] sm:$0xff] %v4661_v10 }
  0xe5   : > { %v4669_v17 = vpop.f32.mrf.mxu1  ;;  %3936 = vmatmul.msk.f32.gmra.mxu0 %vm301_vm1, %v4665_v12 }
  0xe6   : > { %3868 = vmatmul.msk.f32.gmra.mxu2 %vm301_vm1, %v4667_v16  ;;  %v4705_v16 = vld [vmem:[#allocation2 + $0xc1] sm:$0xff] }
  0xe7   : > { %3902 = vmatmul.msk.f32.gmra.mxu3 %vm301_vm1, %v4457_v63  ;;  %5370 = vst [vmem:[#allocation25_spill] sm:$0xff] %v4705_v16 }
  0xe8   : > { %3835 = vmatmul.msk.f32.gmra.mxu1 %vm301_vm1, %v4645_v59 }
  0xe9   : > { %v4679_v56 = vpop.f32.mrf.mxu2 }
  0xea   : > { %5364 = vst [vmem:[#allocation19_spill] sm:$0xff] %v4679_v56  ;;  %v4681_v10 = vpop.f32.mrf.mxu3  ;;  %v4683_v57 = vpop.f32.mrf.mxu0 }
  0xeb   : > { %5365 = vst [vmem:[#allocation20_spill] sm:$0xff] %v4681_v10 }
  0xed   : > { %v4689_v47 = vpop.f32.mrf.mxu1  ;;  %3937 = vmatmul.msk.f32.gmra.mxu0 %vm301_vm1, %v4685_v45 }
  0xee   : > { %3869 = vmatmul.msk.f32.gmra.mxu2 %vm301_vm1, %v4687_v15  ;;  %v4725_v15 = vld [vmem:[#allocation2 + $0xc9] sm:$0xff] }
  0xef   : > { %3903 = vmatmul.msk.f32.gmra.mxu3 %vm301_vm1, %v4477_v5 }
  0xf0   : > { %3836 = vmatmul.msk.f32.gmra.mxu1 %vm301_vm1, %v4665_v12 }
  0xf1   : > { %v4699_v63 = vpop.f32.mrf.mxu2 }
  0xf2   : > { %5368 = vst [vmem:[#allocation23_spill] sm:$0xff] %v4699_v63  ;;  %v4701_v10 = vpop.f32.mrf.mxu3  ;;  %v4703_v59 = vpop.f32.mrf.mxu0 }
  0xf3   : > { %5369 = vst [vmem:[#allocation24_spill] sm:$0xff] %v4701_v10 }
  0xf5   : > { %v4709_v0 = vpop.f32.mrf.mxu1  ;;  %3938 = vmatmul.msk.f32.gmra.mxu0 %vm301_vm1, %v4705_v16 }
  0xf6   : > { %3870 = vmatmul.msk.f32.gmra.mxu2 %vm301_vm1, %v4707_v42  ;;  %v4741_v42 = vld [vmem:[#allocation2 + $0xd9] sm:$0xff] }
  0xf7   : > { %3904 = vmatmul.msk.f32.gmra.mxu3 %vm301_vm1, %v4287_v13 }
  0xf8   : > { %3837 = vmatmul.msk.f32.gmra.mxu1 %vm301_vm1, %v4685_v45 }
  0xf9   : > { %v4719_v5 = vpop.f32.mrf.mxu2 }
  0xfa   : > { %5372 = vst [vmem:[#allocation27_spill] sm:$0xff] %v4719_v5  ;;  %v4721_v10 = vpop.f32.mrf.mxu3  ;;  %v4723_v12 = vpop.f32.mrf.mxu0  ;;  %v4743_v5 = vld [vmem:[#allocation2 + $0xc2] sm:$0xff] }
  0xfb   : > { %5373 = vst [vmem:[#allocation28_spill] sm:$0xff] %v4721_v10 }
  0xfc   : > { %5377 = vst [vmem:[#allocation32_spill] sm:$0xff] %v4743_v5 }
  0xfd   : > { %v946_v49 = vpop.f32.mrf.mxu1  ;;  %3939 = vmatmul.msk.f32.gmra.mxu0 %vm301_vm1, %v4725_v15 }
  0xfe   : > { %3871 = vmatmul.msk.f32.gmra.mxu2 %vm301_vm1, %v4727_v3 }
  0xff   : > { %3905 = vmatmul.msk.f32.gmra.mxu3 %vm301_vm1, %v4344_v26  ;;  %v1042_v26 = vadd.f32 %v946_v49, %v4579_v34 }
 0x100   : > { %3838 = vmatmul.msk.f32.gmra.mxu1 %vm301_vm1, %v4705_v16 }
 0x101   : > { %v4737_v13 = vpop.f32.mrf.mxu2 }
 0x102   : > { %5375 = vst [vmem:[#allocation30_spill] sm:$0xff] %v4737_v13  ;;  %v4739_v10 = vpop.f32.mrf.mxu3  ;;  %v1972_v45 = vpop.f32.mrf.mxu0 }
 0x103   : > { %5376 = vst [vmem:[#allocation31_spill] sm:$0xff] %v4739_v10 }
 0x105   : > { %v949_v63 = vpop.f32.mrf.mxu1  ;;  %3940 = vmatmul.msk.f32.gmra.mxu0 %vm301_vm1, %v4741_v42 }
 0x106   : > { %3872 = vmatmul.msk.f32.gmra.mxu2 %vm301_vm1, %v4743_v5 }
 0x107   : > { %3906 = vmatmul.msk.f32.gmra.mxu3 %vm301_vm1, %v4368_v35  ;;  %v1043_v35 = vadd.f32 %v949_v63, %v4603_v41 }
 0x108   : > { %3839 = vmatmul.msk.f32.gmra.mxu1 %vm301_vm1, %v4725_v15 }
 0x109   : > { %v1288_v10 = vpop.f32.mrf.mxu2 }
 0x10a   : > { %v1384_v16 = vadd.f32 %v1288_v10, %v1042_v26  ;;  %v1630_v3 = vpop.f32.mrf.mxu3  ;;  %v1975_v13 = vpop.f32.mrf.mxu0  ;;  %v4771_v26 = vld [vmem:[#allocation2 + $0xda] sm:$0xff] }
 0x10c   : > { %v1726_v56 = vadd.f32 %v1630_v3, %v1384_v16  ;;  %v4769_v16 = vld [vmem:[#allocation2 + $0xf1] sm:$0xff] }
 0x10d   : > { %v952_v27 = vpop.f32.mrf.mxu1  ;;  %3941 = vmatmul.msk.f32.gmra.mxu0 %vm301_vm1, %v4754_v32 }
 0x10e   : > { %v4760_v5 = vadd.f32 %v1972_v45, %v1726_v56  ;;  %3873 = vmatmul.msk.f32.gmra.mxu2 %vm301_vm1, %v4756_v43 }
 0x10f   : > { %3907 = vmatmul.msk.f32.gmra.mxu3 %vm301_vm1, %v4402_v48  ;;  %v1044_v48 = vadd.f32 %v952_v27, %v4623_v46 }
 0x110   : > { %5378 = vst [vmem:[#allocation33_spill] sm:$0xff] %v4760_v5  ;;  %3840 = vmatmul.msk.f32.gmra.mxu1 %vm301_vm1, %v4741_v42 }
 0x111   : > { %v1291_v34 = vpop.f32.mrf.mxu2 }
 0x112   : > { %v1385_v49 = vadd.f32 %v1291_v34, %v1043_v35  ;;  %v1633_v3 = vpop.f32.mrf.mxu3  ;;  %v1978_v10 = vpop.f32.mrf.mxu0 }
 0x114   : > { %v1727_v45 = vadd.f32 %v1633_v3, %v1385_v49  ;;  %v4784_v49 = vld [vmem:[#allocation2 + $0xf9] sm:$0xff]  ;;  %v4786_v3 = vld [vmem:[#allocation2 + $0xe2] sm:$0xff] }
 0x115   : > { %v955_v56 = vpop.f32.mrf.mxu1  ;;  %3942 = vmatmul.msk.f32.gmra.mxu0 %vm301_vm1, %v4769_v16 }
 0x116   : > { %v4775_v5 = vadd.f32 %v1975_v13, %v1727_v45  ;;  %3874 = vmatmul.msk.f32.gmra.mxu2 %vm301_vm1, %v4771_v26 }
 0x117   : > { %3908 = vmatmul.msk.f32.gmra.mxu3 %vm301_vm1, %v4425_v54  ;;  %v1045_v54 = vadd.f32 %v955_v56, %v4643_v58 }
 0x118   : > { %5379 = vst [vmem:[#allocation34_spill] sm:$0xff] %v4775_v5  ;;  %3841 = vmatmul.msk.f32.gmra.mxu1 %vm301_vm1, %v4754_v32 }
 0x119   : > { %v1294_v41 = vpop.f32.mrf.mxu2 }
 0x11a   : > { %v1386_v63 = vadd.f32 %v1294_v41, %v1044_v48  ;;  %v1636_v35 = vpop.f32.mrf.mxu3  ;;  %v1981_v34 = vpop.f32.mrf.mxu0 }
 0x11c   : > { %v1728_v13 = vadd.f32 %v1636_v35, %v1386_v63  ;;  %v4799_v63 = vld [vmem:[#allocation2 + $0x109] sm:$0xff]  ;;  %v4801_v35 = vld [vmem:[#allocation2 + $0xf2] sm:$0xff] }
 0x11d   : > { %v958_v45 = vpop.f32.mrf.mxu1  ;;  %3943 = vmatmul.msk.f32.gmra.mxu0 %vm301_vm1, %v4784_v49 }
 0x11e   : > { %v4790_v5 = vadd.f32 %v1978_v10, %v1728_v13  ;;  %3875 = vmatmul.msk.f32.gmra.mxu2 %vm301_vm1, %v4786_v3 }
 0x11f   : > { %3909 = vmatmul.msk.f32.gmra.mxu3 %vm301_vm1, %v4453_v61  ;;  %v1046_v61 = vadd.f32 %v958_v45, %v4663_v11 }
 0x120   : > { %5380 = vst [vmem:[#allocation35_spill] sm:$0xff] %v4790_v5  ;;  %3842 = vmatmul.msk.f32.gmra.mxu1 %vm301_vm1, %v4769_v16 }
 0x121   : > { %v1297_v27 = vpop.f32.mrf.mxu2 }
 0x122   : > { %v1387_v46 = vadd.f32 %v1297_v27, %v1045_v54  ;;  %v1639_v48 = vpop.f32.mrf.mxu3  ;;  %v1984_v41 = vpop.f32.mrf.mxu0 }
 0x124   : > { %v1729_v10 = vadd.f32 %v1639_v48, %v1387_v46  ;;  %v4814_v46 = vld [vmem:[#allocation2 + $0x111] sm:$0xff]  ;;  %v4816_v48 = vld [vmem:[#allocation2 + $0xfa] sm:$0xff] }
 0x125   : > { %v961_v13 = vpop.f32.mrf.mxu1  ;;  %3944 = vmatmul.msk.f32.gmra.mxu0 %vm301_vm1, %v4799_v63 }
 0x126   : > { %v4805_v5 = vadd.f32 %v1981_v34, %v1729_v10  ;;  %3876 = vmatmul.msk.f32.gmra.mxu2 %vm301_vm1, %v4801_v35 }
 0x127   : > { %3910 = vmatmul.msk.f32.gmra.mxu3 %vm301_vm1, %v4473_v2  ;;  %v1047_v2 = vadd.f32 %v961_v13, %v4683_v57 }
 0x128   : > { %5381 = vst [vmem:[#allocation36_spill] sm:$0xff] %v4805_v5  ;;  %3843 = vmatmul.msk.f32.gmra.mxu1 %vm301_vm1, %v4784_v49 }
 0x129   : > { %v1300_v58 = vpop.f32.mrf.mxu2 }
 0x12a   : > { %v1388_v56 = vadd.f32 %v1300_v58, %v1046_v61  ;;  %v1642_v54 = vpop.f32.mrf.mxu3  ;;  %v1987_v27 = vpop.f32.mrf.mxu0 }
 0x12c   : > { %v1730_v34 = vadd.f32 %v1642_v54, %v1388_v56  ;;  %v4829_v56 = vld [vmem:[#allocation2 + $0x121] sm:$0xff]  ;;  %v4831_v54 = vld [vmem:[#allocation2 + $0x10a] sm:$0xff] }
 0x12d   : > { %v964_v10 = vpop.f32.mrf.mxu1  ;;  %3945 = vmatmul.msk.f32.gmra.mxu0 %vm301_vm1, %v4814_v46 }
 0x12e   : > { %v4820_v5 = vadd.f32 %v1984_v41, %v1730_v34  ;;  %3877 = vmatmul.msk.f32.gmra.mxu2 %vm301_vm1, %v4816_v48 }
 0x12f   : > { %3911 = vmatmul.msk.f32.gmra.mxu3 %vm301_vm1, %v4489_v7  ;;  %v1048_v7 = vadd.f32 %v964_v10, %v4703_v59 }
 0x130   : > { %5382 = vst [vmem:[#allocation37_spill] sm:$0xff] %v4820_v5  ;;  %3844 = vmatmul.msk.f32.gmra.mxu1 %vm301_vm1, %v4799_v63 }
 0x131   : > { %v1303_v11 = vpop.f32.mrf.mxu2 }
 0x132   : > { %v1389_v45 = vadd.f32 %v1303_v11, %v1047_v2  ;;  %v1645_v61 = vpop.f32.mrf.mxu3  ;;  %v1990_v58 = vpop.f32.mrf.mxu0 }
 0x134   : > { %v1731_v41 = vadd.f32 %v1645_v61, %v1389_v45  ;;  %v4844_v45 = vld [vmem:[#allocation2 + $0x129] sm:$0xff]  ;;  %v4846_v61 = vld [vmem:[#allocation2 + $0x112] sm:$0xff] }
 0x135   : > { %v967_v34 = vpop.f32.mrf.mxu1  ;;  %3946 = vmatmul.msk.f32.gmra.mxu0 %vm301_vm1, %v4829_v56 }
 0x136   : > { %v4835_v5 = vadd.f32 %v1987_v27, %v1731_v41  ;;  %3878 = vmatmul.msk.f32.gmra.mxu2 %vm301_vm1, %v4831_v54 }
 0x137   : > { %3912 = vmatmul.msk.f32.gmra.mxu3 %vm301_vm1, %v4293_v14  ;;  %v1049_v14 = vadd.f32 %v967_v34, %v4723_v12 }
 0x138   : > { %5383 = vst [vmem:[#allocation38_spill] sm:$0xff] %v4835_v5  ;;  %3845 = vmatmul.msk.f32.gmra.mxu1 %vm301_vm1, %v4814_v46 }
 0x139   : > { %v1306_v57 = vpop.f32.mrf.mxu2 }
 0x13a   : > { %v1390_v13 = vadd.f32 %v1306_v57, %v1048_v7  ;;  %v1648_v2 = vpop.f32.mrf.mxu3  ;;  %v1993_v11 = vpop.f32.mrf.mxu0 }
 0x13c   : > { %v1732_v27 = vadd.f32 %v1648_v2, %v1390_v13  ;;  %v4859_v13 = vld [vmem:[#allocation2 + $0x139] sm:$0xff]  ;;  %v4861_v2 = vld [vmem:[#allocation2 + $0x122] sm:$0xff] }
 0x13d   : > { %v970_v41 = vpop.f32.mrf.mxu1  ;;  %3947 = vmatmul.msk.f32.gmra.mxu0 %vm301_vm1, %v4844_v45 }
 0x13e   : > { %v4850_v5 = vadd.f32 %v1990_v58, %v1732_v27  ;;  %3879 = vmatmul.msk.f32.gmra.mxu2 %vm301_vm1, %v4846_v61 }
 0x13f   : > { %3913 = vmatmul.msk.f32.gmra.mxu3 %vm301_vm1, %v4350_v28  ;;  %v1050_v28 = vadd.f32 %v970_v41, %v4569_v31 }
 0x140   : > { %5384 = vst [vmem:[#allocation39_spill] sm:$0xff] %v4850_v5  ;;  %3846 = vmatmul.msk.f32.gmra.mxu1 %vm301_vm1, %v4829_v56 }
 0x141   : > { %v1309_v59 = vpop.f32.mrf.mxu2 }
 0x142   : > { %v1391_v10 = vadd.f32 %v1309_v59, %v1049_v14  ;;  %v1651_v7 = vpop.f32.mrf.mxu3  ;;  %v1996_v57 = vpop.f32.mrf.mxu0 }
 0x144   : > { %v1733_v58 = vadd.f32 %v1651_v7, %v1391_v10  ;;  %v4874_v10 = vld [vmem:[#allocation2 + $0x141] sm:$0xff] }
 0x145   : > { %v973_v27 = vpop.f32.mrf.mxu1  ;;  %3948 = vmatmul.msk.f32.gmra.mxu0 %vm301_vm1, %v4859_v13 }
 0x146   : > { %v4865_v5 = vadd.f32 %v1993_v11, %v1733_v58  ;;  %3880 = vmatmul.msk.f32.gmra.mxu2 %vm301_vm1, %v4861_v2  ;;  %v4876_v11 = vld [vmem:[#allocation2 + $0x12a] sm:$0xff]  ;;  %v1051_v31 = vadd.f32 %v973_v27, %v4589_v38  ;;  %v300_v38 = vld [vmem:[%s4183_s26 + $0xf8] sm:$0xff] }
 0x147   : > { %3914 = vmatmul.msk.f32.gmra.mxu3 %vm301_vm1, %v4372_v37  ;;  %v299_v37 = vld [vmem:[%s4183_s26 + $0xf0] sm:$0xff]  ;;  %389 = vst.msk [vmem:[#allocation2 + $0x189] sm:$0xff] %vm301_vm1, %v300_v38 }
 0x148   : > { %5385 = vst [vmem:[#allocation40_spill] sm:$0xff] %v4865_v5  ;;  %3847 = vmatmul.msk.f32.gmra.mxu1 %vm301_vm1, %v4844_v45 }
 0x149   : > { %v1312_v12 = vpop.f32.mrf.mxu2  ;;  %388 = vst.msk [vmem:[#allocation2 + $0x181] sm:$0xff] %vm301_vm1, %v299_v37 }
 0x14a   : > { %v1392_v34 = vadd.f32 %v1312_v12, %v1050_v28  ;;  %v1654_v14 = vpop.f32.mrf.mxu3  ;;  %v1999_v59 = vpop.f32.mrf.mxu0 }
 0x14c   : > { %v1734_v7 = vadd.f32 %v1654_v14, %v1392_v34  ;;  %v4891_v34 = vld [vmem:[#allocation2 + $0x151] sm:$0xff]  ;;  %v4893_v14 = vld [vmem:[#allocation2 + $0x13a] sm:$0xff] }
 0x14d   : > { %v976_v58 = vpop.f32.mrf.mxu1  ;;  %3949 = vmatmul.msk.f32.gmra.mxu0 %vm301_vm1, %v4874_v10 }
 0x14e   : > { %v4880_v5 = vadd.f32 %v1996_v57, %v1734_v7  ;;  %3881 = vmatmul.msk.f32.gmra.mxu2 %vm301_vm1, %v4876_v11  ;;  %v1052_v27 = vadd.f32 %v976_v58, %v4609_v44 }
 0x14f   : > { %3915 = vmatmul.msk.f32.gmra.mxu3 %vm301_vm1, %v4406_v50 }
 0x150   : > { %5386 = vst [vmem:[#allocation41_spill] sm:$0xff] %v4880_v5  ;;  %3848 = vmatmul.msk.f32.gmra.mxu1 %vm301_vm1, %v4859_v13 }
 0x151   : > { %v1315_v41 = vpop.f32.mrf.mxu2 }
 0x152   : > { %v1393_v28 = vadd.f32 %v1315_v41, %v1051_v31  ;;  %v1657_v12 = vpop.f32.mrf.mxu3  ;;  %v2002_v57 = vpop.f32.mrf.mxu0 }
 0x154   : > { %v1735_v7 = vadd.f32 %v1657_v12, %v1393_v28  ;;  %v4910_v12 = vld [vmem:[#allocation2 + $0x142] sm:$0xff] }
 0x155   : > { %v979_v5 = vpop.f32.mrf.mxu1  ;;  %3950 = vmatmul.msk.f32.gmra.mxu0 %vm301_vm1, %v4891_v34 }
 0x156   : > { %v4897_v50 = vadd.f32 %v1999_v59, %v1735_v7  ;;  %3882 = vmatmul.msk.f32.gmra.mxu2 %vm301_vm1, %v4893_v14  ;;  %v4908_v59 = vld [vmem:[#allocation2 + $0x159] sm:$0xff]  ;;  %v1053_v44 = vadd.f32 %v979_v5, %v4629_v52 }
 0x157   : > { %3916 = vmatmul.msk.f32.gmra.mxu3 %vm301_vm1, %v4427_v55  ;;  %5388 = vst [vmem:[#allocation43_spill] sm:$0xff] %v4908_v59 }
 0x158   : > { %5387 = vst [vmem:[#allocation42_spill] sm:$0xff] %v4897_v50  ;;  %3849 = vmatmul.msk.f32.gmra.mxu1 %vm301_vm1, %v4874_v10 }
 0x159   : > { %v1318_v37 = vpop.f32.mrf.mxu2 }
 0x15a   : > { %v1394_v31 = vadd.f32 %v1318_v37, %v1052_v27  ;;  %v1660_v41 = vpop.f32.mrf.mxu3  ;;  %v2005_v28 = vpop.f32.mrf.mxu0 }
 0x15c   : > { %v1736_v7 = vadd.f32 %v1660_v41, %v1394_v31  ;;  %v4923_v31 = vld [vmem:[#allocation2 + $0x169] sm:$0xff]  ;;  %v4925_v41 = vld [vmem:[#allocation2 + $0x152] sm:$0xff] }
 0x15d   : > { %v982_v50 = vpop.f32.mrf.mxu1  ;;  %3951 = vmatmul.msk.f32.gmra.mxu0 %vm301_vm1, %v4908_v59  ;;  %5390 = vst [vmem:[#allocation45_spill] sm:$0xff] %v4923_v31 }
 0x15e   : > { %v4914_v55 = vadd.f32 %v2002_v57, %v1736_v7  ;;  %3883 = vmatmul.msk.f32.gmra.mxu2 %vm301_vm1, %v4910_v12 }
 0x15f   : > { %3917 = vmatmul.msk.f32.gmra.mxu3 %vm301_vm1, %v4455_v62  ;;  %v1054_v62 = vadd.f32 %v982_v50, %v4649_v9 }
 0x160   : > { %5389 = vst [vmem:[#allocation44_spill] sm:$0xff] %v4914_v55  ;;  %3850 = vmatmul.msk.f32.gmra.mxu1 %vm301_vm1, %v4891_v34 }
 0x161   : > { %v1321_v58 = vpop.f32.mrf.mxu2 }
 0x162   : > { %v1395_v38 = vadd.f32 %v1321_v58, %v1053_v44  ;;  %v1663_v27 = vpop.f32.mrf.mxu3  ;;  %v2008_v37 = vpop.f32.mrf.mxu0 }
 0x164   : > { %v1737_v57 = vadd.f32 %v1663_v27, %v1395_v38  ;;  %v4938_v38 = vld [vmem:[#allocation2 + $0x171] sm:$0xff]  ;;  %v4940_v27 = vld [vmem:[#allocation2 + $0x15a] sm:$0xff] }
 0x165   : > { %v985_v7 = vpop.f32.mrf.mxu1  ;;  %3952 = vmatmul.msk.f32.gmra.mxu0 %vm301_vm1, %v4923_v31  ;;  %5392 = vst [vmem:[#allocation47_spill] sm:$0xff] %v4940_v27 }
 0x166   : > { %v4929_v55 = vadd.f32 %v2005_v28, %v1737_v57  ;;  %3884 = vmatmul.msk.f32.gmra.mxu2 %vm301_vm1, %v4925_v41 }
 0x167   : > { %3918 = vmatmul.msk.f32.gmra.mxu3 %vm301_vm1, %v4475_v4  ;;  %v1055_v4 = vadd.f32 %v985_v7, %v4669_v17 }
 0x168   : > { %5391 = vst [vmem:[#allocation46_spill] sm:$0xff] %v4929_v55  ;;  %3851 = vmatmul.msk.f32.gmra.mxu1 %vm301_vm1, %v4908_v59 }
 0x169   : > { %v1324_v52 = vpop.f32.mrf.mxu2 }
 0x16a   : > { %v1396_v5 = vadd.f32 %v1324_v52, %v1054_v62  ;;  %v1666_v44 = vpop.f32.mrf.mxu3  ;;  %v2011_v58 = vpop.f32.mrf.mxu0 }
 0x16c   : > { %v1738_v28 = vadd.f32 %v1666_v44, %v1396_v5  ;;  %v4953_v5 = vld [vmem:[#allocation2 + $0x181] sm:$0xff]  ;;  %v1136_v44 = vld [vmem:[#allocation2 + $0x16a] sm:$0xff] }
 0x16d   : > { %v988_v57 = vpop.f32.mrf.mxu1  ;;  %3953 = vmatmul.msk.f32.gmra.mxu0 %vm301_vm1, %v4938_v38  ;;  %5394 = vst [vmem:[#allocation49_spill] sm:$0xff] %v4953_v5 }
 0x16e   : > { %v4944_v55 = vadd.f32 %v2008_v37, %v1738_v28  ;;  %3885 = vmatmul.msk.f32.gmra.mxu2 %vm301_vm1, %v4940_v27  ;;  %v1478_v28 = vld [vmem:[#allocation2 + $0x180] sm:$0xff]  ;;  %v1479_v27 = vld [vmem:[#allocation2 + $0x188] sm:$0xff] }
 0x16f   : > { %3919 = vmatmul.msk.f32.gmra.mxu3 %vm301_vm1, %v4491_v8  ;;  %v1056_v8 = vadd.f32 %v988_v57, %v4689_v47 }
 0x170   : > { %5393 = vst [vmem:[#allocation48_spill] sm:$0xff] %v4944_v55  ;;  %3852 = vmatmul.msk.f32.gmra.mxu1 %vm301_vm1, %v4923_v31 }
 0x171   : > { %v1327_v9 = vpop.f32.mrf.mxu2 }
 0x172   : > { %v1397_v50 = vadd.f32 %v1327_v9, %v1055_v4  ;;  %v1669_v62 = vpop.f32.mrf.mxu3  ;;  %v2014_v52 = vpop.f32.mrf.mxu0 }
 0x174   : > { %v1739_v37 = vadd.f32 %v1669_v62, %v1397_v50  ;;  %v1821_v50 = vld [vmem:[#allocation2 + $0x189] sm:$0xff]  ;;  %v1137_v62 = vld [vmem:[#allocation2 + $0x172] sm:$0xff] }
 0x175   : > { %v991_v55 = vpop.f32.mrf.mxu1  ;;  %3954 = vmatmul.msk.f32.gmra.mxu0 %vm301_vm1, %v4953_v5 }
 0x176   : > { %v4957_v59 = vadd.f32 %v2011_v58, %v1739_v37  ;;  %3886 = vmatmul.msk.f32.gmra.mxu2 %vm301_vm1, %v1136_v44  ;;  %v1057_v47 = vadd.f32 %v991_v55, %v4709_v0 }
 0x177   : > { %3920 = vmatmul.msk.f32.gmra.mxu3 %vm301_vm1, %v1478_v28 }
 0x178   : > { %3853 = vmatmul.msk.f32.gmra.mxu1 %vm301_vm1, %v4938_v38 }
 0x179   : > { %v1330_v17 = vpop.f32.mrf.mxu2 }
 0x17a   : > { %v1398_v7 = vadd.f32 %v1330_v17, %v1056_v8  ;;  %v1672_v4 = vpop.f32.mrf.mxu3  ;;  %v2017_v9 = vpop.f32.mrf.mxu0 }
 0x17c   : > { %v1740_v31 = vadd.f32 %v1672_v4, %v1398_v7 }
 0x17d   : > { %v994_v5 = vpop.f32.mrf.mxu1  ;;  %3955 = vmatmul.msk.f32.gmra.mxu0 %vm301_vm1, %v1821_v50 }
 0x17e   : > { %v4965_v58 = vadd.f32 %v2014_v52, %v1740_v31  ;;  %3887 = vmatmul.msk.f32.gmra.mxu2 %vm301_vm1, %v1137_v62  ;;  %v1058_v0 = vadd.f32 %v994_v5, %v4597_v39 }
 0x17f   : > { %3921 = vmatmul.msk.f32.gmra.mxu3 %vm301_vm1, %v1479_v27 }
 0x180   : > { %3958 = vmatmul.msk.f32.vlgmr.msra.gmra.mxu1 %vm301_vm1, %v4512_v19 }
 0x181   : > { %v1333_v57 = vpop.f32.mrf.mxu2 }
 0x182   : > { %v1399_v44 = vadd.f32 %v1333_v57, %v1057_v47  ;;  %v1675_v37 = vpop.f32.mrf.mxu3  ;;  %v2020_v28 = vpop.f32.mrf.mxu0 }
 0x184   : > { %v1741_v8 = vadd.f32 %v1675_v37, %v1399_v44 }
 0x185   : > { %v997_v17 = vpop.f32.mrf.mxu1  ;;  %4060 = vmatmul.msk.f32.vlgmr.msra.gmra.mxu0 %vm301_vm1, %v4535_v23 }
 0x186   : > { %v4974_v31 = vadd.f32 %v2017_v9, %v1741_v8  ;;  %3992 = vmatmul.msk.f32.vlgmr.msra.gmra.mxu2 %vm301_vm1, %v4423_v53  ;;  %v1059_v53 = vadd.f32 %v997_v17, %v4619_v30  ;;  %v2479_v17 = vld [vmem:[#allocation2 + $0x60] sm:$0xff] }
 0x187   : > { %4026 = vmatmul.msk.f32.vlgmr.msra.gmra.mxu3 %vm301_vm1, %v4510_v18 }
 0x188   : > { %3959 = vmatmul.msk.f32.gmra.mxu1 %vm301_vm1, %v4523_v21 }
 0x189   : > { %v1336_v19 = vpop.f32.mrf.mxu2 }
 0x18a   : > { %v1400_v55 = vadd.f32 %v1336_v19, %v1058_v0  ;;  %v1678_v27 = vpop.f32.mrf.mxu3  ;;  %v2023_v52 = vpop.f32.mrf.mxu0 }
 0x18c   : > { %v1742_v7 = vadd.f32 %v1678_v27, %v1400_v55 }
 0x18d   : > { %v1000_v4 = vpop.f32.mrf.mxu1  ;;  %4061 = vmatmul.msk.f32.gmra.mxu0 %vm301_vm1, %v4547_v25 }
 0x18e   : > { %v4985_v9 = vadd.f32 %v2020_v28, %v1742_v7  ;;  %3993 = vmatmul.msk.f32.gmra.mxu2 %vm301_vm1, %v4451_v60  ;;  %v1060_v60 = vadd.f32 %v1000_v4, %v4639_v40  ;;  %v2480_v4 = vld [vmem:[#allocation2 + $0x68] sm:$0xff] }
 0x18f   : > { %4027 = vmatmul.msk.f32.gmra.mxu3 %vm301_vm1, %v4521_v20 }
 0x190   : > { %3960 = vmatmul.msk.f32.gmra.mxu1 %vm301_vm1, %v4535_v23 }
 0x191   : > { %v1339_v18 = vpop.f32.mrf.mxu2 }
 0x192   : > { %v1401_v21 = vadd.f32 %v1339_v18, %v1059_v53  ;;  %v1681_v39 = vpop.f32.mrf.mxu3  ;;  %v2026_v5 = vpop.f32.mrf.mxu0 }
 0x194   : > { %v1743_v50 = vadd.f32 %v1681_v39, %v1401_v21  ;;  %v5397_v21 = vld [vmem:[#allocation9_spill] sm:$0xff] }
 0x195   : > { %v1003_v62 = vpop.f32.mrf.mxu1  ;;  %4062 = vmatmul.msk.f32.gmra.mxu0 %vm301_vm1, %v4559_v29 }
 0x196   : > { %v4996_v47 = vadd.f32 %v2023_v52, %v1743_v50  ;;  %3994 = vmatmul.msk.f32.gmra.mxu2 %vm301_vm1, %v4471_v1  ;;  %v1061_v1 = vadd.f32 %v1003_v62, %v4659_v51  ;;  %v5399_v50 = vld [vmem:[#allocation23_spill] sm:$0xff] }
 0x197   : > { %4028 = vmatmul.msk.f32.gmra.mxu3 %vm301_vm1, %v4533_v22 }
 0x198   : > { %3961 = vmatmul.msk.f32.gmra.mxu1 %vm301_vm1, %v4547_v25 }
 0x199   : > { %v1342_v20 = vpop.f32.mrf.mxu2 }
 0x19a   : > { %v1402_v23 = vadd.f32 %v1342_v20, %v1060_v60  ;;  %v1684_v30 = vpop.f32.mrf.mxu3  ;;  %v2029_v57 = vpop.f32.mrf.mxu0 }
 0x19c   : > { %v1744_v44 = vadd.f32 %v1684_v30, %v1402_v23  ;;  %v2481_v30 = vld [vmem:[#allocation2 + $0x78] sm:$0xff] }
 0x19d   : > { %v1006_v37 = vpop.f32.mrf.mxu1  ;;  %4063 = vmatmul.msk.f32.gmra.mxu0 %vm301_vm1, %v4573_v33 }
 0x19e   : > { %v5007_v28 = vadd.f32 %v2026_v5, %v1744_v44  ;;  %3995 = vmatmul.msk.f32.gmra.mxu2 %vm301_vm1, %v4487_v6  ;;  %v5395_v6 = vld [vmem:[#allocation4_spill] sm:$0xff]  ;;  %v5398_v5 = vld [vmem:[#allocation5_spill] sm:$0xff] }
 0x19f   : > { %4029 = vmatmul.msk.f32.gmra.mxu3 %vm301_vm1, %v4545_v24  ;;  %v5396_v24 = vld [vmem:[#allocation19_spill] sm:$0xff] }
 0x1a0   : > { %3962 = vmatmul.msk.f32.gmra.mxu1 %vm301_vm1, %v4559_v29  ;;  %v1062_v51 = vadd.f32 %v1006_v37, %v5396_v24  ;;  %v5400_v37 = vld [vmem:[#allocation12_spill] sm:$0xff] }
 0x1a1   : > { %v1345_v22 = vpop.f32.mrf.mxu2 }
 0x1a2   : > { %v1403_v25 = vadd.f32 %v1345_v22, %v1061_v1  ;;  %v1687_v40 = vpop.f32.mrf.mxu3  ;;  %v2032_v8 = vpop.f32.mrf.mxu0  ;;  %v5401_v22 = vld [vmem:[#allocation6_spill] sm:$0xff] }
 0x1a4   : > { %v1745_v0 = vadd.f32 %v1687_v40, %v1403_v25  ;;  %v5402_v25 = vld [vmem:[#allocation27_spill] sm:$0xff] }
 0x1a5   : > { %v1009_v19 = vpop.f32.mrf.mxu1  ;;  %4064 = vmatmul.msk.f32.gmra.mxu0 %vm301_vm1, %v4587_v36 }
 0x1a6   : > { %v5018_v55 = vadd.f32 %v2029_v57, %v1745_v0  ;;  %3996 = vmatmul.msk.f32.gmra.mxu2 %vm301_vm1, %v2479_v17  ;;  %v1063_v62 = vadd.f32 %v1009_v19, %v5399_v50  ;;  %v2482_v19 = vld [vmem:[#allocation2 + $0x80] sm:$0xff] }
 0x1a7   : > { %4030 = vmatmul.msk.f32.gmra.mxu3 %vm301_vm1, %v5395_v6 }
 0x1a8   : > { %3963 = vmatmul.msk.f32.gmra.mxu1 %vm301_vm1, %v4573_v33 }
 0x1a9   : > { %v1348_v29 = vpop.f32.mrf.mxu2 }
 0x1aa   : > { %v1404_v27 = vadd.f32 %v1348_v29, %v1062_v51  ;;  %v1690_v52 = vpop.f32.mrf.mxu3  ;;  %v2035_v7 = vpop.f32.mrf.mxu0  ;;  %v5403_v51 = vld [vmem:[#allocation15_spill] sm:$0xff] }
 0x1ac   : > { %v1746_v53 = vadd.f32 %v1690_v52, %v1404_v27  ;;  %v5404_v27 = vld [vmem:[#allocation8_spill] sm:$0xff]  ;;  %v5405_v52 = vld [vmem:[#allocation30_spill] sm:$0xff] }
 0x1ad   : > { %v1012_v18 = vpop.f32.mrf.mxu1  ;;  %4065 = vmatmul.msk.f32.gmra.mxu0 %vm301_vm1, %v5397_v21 }
 0x1ae   : > { %v5028_v39 = vadd.f32 %v2032_v8, %v1746_v53  ;;  %3997 = vmatmul.msk.f32.gmra.mxu2 %vm301_vm1, %v2480_v4  ;;  %v1064_v40 = vadd.f32 %v1012_v18, %v5402_v25  ;;  %v2484_v25 = vld [vmem:[#allocation2 + $0x98] sm:$0xff] }
 0x1af   : > { %4031 = vmatmul.msk.f32.gmra.mxu3 %vm301_vm1, %v5398_v5  ;;  %v2483_v5 = vld [vmem:[#allocation2 + $0x90] sm:$0xff] }
 0x1b0   : > { %3964 = vmatmul.msk.f32.gmra.mxu1 %vm301_vm1, %v4587_v36 }
 0x1b1   : > { %v1351_v33 = vpop.f32.mrf.mxu2 }
 0x1b2   : > { %v1405_v60 = vadd.f32 %v1351_v33, %v1063_v62  ;;  %v1693_v20 = vpop.f32.mrf.mxu3  ;;  %v2038_v23 = vpop.f32.mrf.mxu0  ;;  %v5406_v33 = vld [vmem:[#allocation18_spill] sm:$0xff] }
 0x1b4   : > { %v1747_v57 = vadd.f32 %v1693_v20, %v1405_v60  ;;  %v5407_v20 = vld [vmem:[#allocation11_spill] sm:$0xff] }
 0x1b5   : > { %v1015_v44 = vpop.f32.mrf.mxu1  ;;  %4066 = vmatmul.msk.f32.gmra.mxu0 %vm301_vm1, %v5400_v37 }
 0x1b6   : > { %v5038_v1 = vadd.f32 %v2035_v7, %v1747_v57  ;;  %3998 = vmatmul.msk.f32.gmra.mxu2 %vm301_vm1, %v2481_v30  ;;  %v1065_v7 = vadd.f32 %v1015_v44, %v5405_v52 }
 0x1b7   : > { %4032 = vmatmul.msk.f32.gmra.mxu3 %vm301_vm1, %v5401_v22 }
 0x1b8   : > { %3965 = vmatmul.msk.f32.gmra.mxu1 %vm301_vm1, %v5397_v21 }
 0x1b9   : > { %v1354_v36 = vpop.f32.mrf.mxu2 }
 0x1ba   : > { %v1406_v8 = vadd.f32 %v1354_v36, %v1064_v40  ;;  %v1696_v17 = vpop.f32.mrf.mxu3  ;;  %v2041_v0 = vpop.f32.mrf.mxu0 }
 0x1bc   : > { %v1748_v6 = vadd.f32 %v1696_v17, %v1406_v8  ;;  %v5409_v8 = vld [vmem:[#allocation22_spill] sm:$0xff] }
 0x1bd   : > { %v1018_v24 = vpop.f32.mrf.mxu1  ;;  %4067 = vmatmul.msk.f32.gmra.mxu0 %vm301_vm1, %v5403_v51 }
 0x1be   : > { %v5048_v29 = vadd.f32 %v2038_v23, %v1748_v6  ;;  %3999 = vmatmul.msk.f32.gmra.mxu2 %vm301_vm1, %v2482_v19  ;;  %v5408_v23 = vld [vmem:[#allocation7_spill] sm:$0xff]  ;;  %v5411_v19 = vld [vmem:[#allocation10_spill] sm:$0xff] }
 0x1bf   : > { %4033 = vmatmul.msk.f32.gmra.mxu3 %vm301_vm1, %v5404_v27  ;;  %v1066_v30 = vadd.f32 %v1018_v24, %v5408_v23 }
 0x1c0   : > { %3966 = vmatmul.msk.f32.gmra.mxu1 %vm301_vm1, %v5400_v37 }
 0x1c1   : > { %v1357_v4 = vpop.f32.mrf.mxu2 }
 0x1c2   : > { %v1407_v53 = vadd.f32 %v1357_v4, %v1065_v7  ;;  %v1699_v18 = vpop.f32.mrf.mxu3  ;;  %v2044_v21 = vpop.f32.mrf.mxu0  ;;  %v2485_v7 = vld [vmem:[#allocation2 + $0xa8] sm:$0xff] }
 0x1c4   : > { %v1749_v50 = vadd.f32 %v1699_v18, %v1407_v53  ;;  %v5412_v18 = vld [vmem:[#allocation26_spill] sm:$0xff] }
 0x1c5   : > { %v1021_v62 = vpop.f32.mrf.mxu1  ;;  %4068 = vmatmul.msk.f32.gmra.mxu0 %vm301_vm1, %v5406_v33 }
 0x1c6   : > { %v5058_v60 = vadd.f32 %v2041_v0, %v1749_v50  ;;  %4000 = vmatmul.msk.f32.gmra.mxu2 %vm301_vm1, %v2483_v5  ;;  %v5410_v0 = vld [vmem:[#allocation14_spill] sm:$0xff]  ;;  %v1067_v6 = vadd.f32 %v1021_v62, %v5411_v19  ;;  %v5413_v5 = vld [vmem:[#allocation17_spill] sm:$0xff] }
 0x1c7   : > { %4034 = vmatmul.msk.f32.gmra.mxu3 %vm301_vm1, %v5407_v20  ;;  %v5414_v50 = vld [vmem:[#allocation13_spill] sm:$0xff] }
 0x1c8   : > { %3967 = vmatmul.msk.f32.gmra.mxu1 %vm301_vm1, %v5403_v51 }
 0x1c9   : > { %v1360_v57 = vpop.f32.mrf.mxu2 }
 0x1ca   : > { %v1408_v44 = vadd.f32 %v1360_v57, %v1066_v30  ;;  %v1702_v37 = vpop.f32.mrf.mxu3  ;;  %v2047_v22 = vpop.f32.mrf.mxu0  ;;  %v2486_v57 = vld [vmem:[#allocation2 + $0xb0] sm:$0xff] }
 0x1cc   : > { %v1750_v40 = vadd.f32 %v1702_v37, %v1408_v44 }
 0x1cd   : > { %v1024_v36 = vpop.f32.mrf.mxu1  ;;  %4069 = vmatmul.msk.f32.gmra.mxu0 %vm301_vm1, %v5409_v8 }
 0x1ce   : > { %v5068_v17 = vadd.f32 %v2044_v21, %v1750_v40  ;;  %4001 = vmatmul.msk.f32.gmra.mxu2 %vm301_vm1, %v2484_v25  ;;  %v1068_v62 = vadd.f32 %v1024_v36, %v5414_v50  ;;  %v5415_v25 = vld [vmem:[#allocation29_spill] sm:$0xff]  ;;  %v5417_v36 = vld [vmem:[#allocation16_spill] sm:$0xff] }
 0x1cf   : > { %4035 = vmatmul.msk.f32.gmra.mxu3 %vm301_vm1, %v5410_v0  ;;  %v5416_v40 = vld [vmem:[#allocation21_spill] sm:$0xff] }
 0x1d0   : > { %3968 = vmatmul.msk.f32.gmra.mxu1 %vm301_vm1, %v5406_v33 }
 0x1d1   : > { %v1363_v24 = vpop.f32.mrf.mxu2 }
 0x1d2   : > { %v1409_v51 = vadd.f32 %v1363_v24, %v1067_v6  ;;  %v1705_v27 = vpop.f32.mrf.mxu3  ;;  %v2050_v52 = vpop.f32.mrf.mxu0 }
 0x1d4   : > { %v1751_v4 = vadd.f32 %v1705_v27, %v1409_v51  ;;  %v2487_v51 = vld [vmem:[#allocation2 + $0xc0] sm:$0xff] }
 0x1d5   : > { %v1027_v53 = vpop.f32.mrf.mxu1  ;;  %4070 = vmatmul.msk.f32.gmra.mxu0 %vm301_vm1, %v5412_v18 }
 0x1d6   : > { %v5078_v21 = vadd.f32 %v2047_v22, %v1751_v4  ;;  %4002 = vmatmul.msk.f32.gmra.mxu2 %vm301_vm1, %v2485_v7  ;;  %v1069_v0 = vadd.f32 %v1027_v53, %v5417_v36  ;;  %v5418_v4 = vld [vmem:[#allocation32_spill] sm:$0xff] }
 0x1d7   : > { %4036 = vmatmul.msk.f32.gmra.mxu3 %vm301_vm1, %v5413_v5  ;;  %v5419_v5 = vld [vmem:[#allocation25_spill] sm:$0xff]  ;;  %v5420_v53 = vld [vmem:[#allocation20_spill] sm:$0xff] }
 0x1d8   : > { %3969 = vmatmul.msk.f32.gmra.mxu1 %vm301_vm1, %v5409_v8 }
 0x1d9   : > { %v1366_v33 = vpop.f32.mrf.mxu2 }
 0x1da   : > { %v1410_v20 = vadd.f32 %v1366_v33, %v1068_v62  ;;  %v1708_v23 = vpop.f32.mrf.mxu3  ;;  %v2053_v30 = vpop.f32.mrf.mxu0 }
 0x1dc   : > { %v1752_v44 = vadd.f32 %v1708_v23, %v1410_v20  ;;  %v2488_v23 = vld [vmem:[#allocation2 + $0xc8] sm:$0xff] }
 0x1dd   : > { %v1030_v37 = vpop.f32.mrf.mxu1  ;;  %4071 = vmatmul.msk.f32.gmra.mxu0 %vm301_vm1, %v5415_v25 }
 0x1de   : > { %v5088_v22 = vadd.f32 %v2050_v52, %v1752_v44  ;;  %4003 = vmatmul.msk.f32.gmra.mxu2 %vm301_vm1, %v2486_v57  ;;  %v1070_v50 = vadd.f32 %v1030_v37, %v5420_v53  ;;  %v5421_v37 = vld [vmem:[#allocation24_spill] sm:$0xff] }
 0x1df   : > { %4037 = vmatmul.msk.f32.gmra.mxu3 %vm301_vm1, %v5416_v40 }
 0x1e0   : > { %3970 = vmatmul.msk.f32.gmra.mxu1 %vm301_vm1, %v5412_v18 }
 0x1e1   : > { %v1369_v8 = vpop.f32.mrf.mxu2 }
 0x1e2   : > { %v1411_v19 = vadd.f32 %v1369_v8, %v1069_v0  ;;  %v1711_v6 = vpop.f32.mrf.mxu3  ;;  %v2056_v24 = vpop.f32.mrf.mxu0 }
 0x1e4   : > { %v1753_v27 = vadd.f32 %v1711_v6, %v1411_v19  ;;  %v2489_v19 = vld [vmem:[#allocation2 + $0xd8] sm:$0xff] }
 0x1e5   : > { %v1033_v7 = vpop.f32.mrf.mxu1  ;;  %4072 = vmatmul.msk.f32.gmra.mxu0 %vm301_vm1, %v5418_v4 }
 0x1e6   : > { %v5098_v52 = vadd.f32 %v2053_v30, %v1753_v27  ;;  %4004 = vmatmul.msk.f32.gmra.mxu2 %vm301_vm1, %v2487_v51  ;;  %v1071_v40 = vadd.f32 %v1033_v7, %v5421_v37  ;;  %v2491_v37 = vld [vmem:[#allocation2 + $0xf0] sm:$0xff] }
 0x1e7   : > { %4038 = vmatmul.msk.f32.gmra.mxu3 %vm301_vm1, %v5419_v5 }
 0x1e8   : > { %3971 = vmatmul.msk.f32.gmra.mxu1 %vm301_vm1, %v5415_v25 }
 0x1e9   : > { %v1372_v18 = vpop.f32.mrf.mxu2 }
 0x1ea   : > { %v1412_v62 = vadd.f32 %v1372_v18, %v1070_v50  ;;  %v1714_v33 = vpop.f32.mrf.mxu3  ;;  %v2059_v20 = vpop.f32.mrf.mxu0  ;;  %v2490_v50 = vld [vmem:[#allocation2 + $0xe0] sm:$0xff] }
 0x1ec   : > { %v1754_v57 = vadd.f32 %v1714_v33, %v1412_v62 }
 0x1ed   : > { %v1036_v44 = vpop.f32.mrf.mxu1  ;;  %4073 = vmatmul.msk.f32.gmra.mxu0 %vm301_vm1, %v4756_v43 }
 0x1ee   : > { %v5108_v30 = vadd.f32 %v2056_v24, %v1754_v57  ;;  %4005 = vmatmul.msk.f32.gmra.mxu2 %vm301_vm1, %v2488_v23 }
 0x1ef   : > { %4039 = vmatmul.msk.f32.gmra.mxu3 %vm301_vm1, %v4725_v15  ;;  %v5422_v15 = vld [vmem:[#allocation28_spill] sm:$0xff] }
 0x1f0   : > { %3972 = vmatmul.msk.f32.gmra.mxu1 %vm301_vm1, %v5418_v4  ;;  %v1072_v27 = vadd.f32 %v1036_v44, %v5422_v15 }
 0x1f1   : > { %v1375_v25 = vpop.f32.mrf.mxu2 }
 0x1f2   : > { %v1413_v36 = vadd.f32 %v1375_v25, %v1071_v40  ;;  %v1717_v0 = vpop.f32.mrf.mxu3  ;;  %v2062_v8 = vpop.f32.mrf.mxu0 }
 0x1f4   : > { %v1755_v6 = vadd.f32 %v1717_v0, %v1413_v36 }
 0x1f5   : > { %v1039_v51 = vpop.f32.mrf.mxu1  ;;  %4074 = vmatmul.msk.f32.gmra.mxu0 %vm301_vm1, %v4771_v26 }
 0x1f6   : > { %v5118_v24 = vadd.f32 %v2059_v20, %v1755_v6  ;;  %4006 = vmatmul.msk.f32.gmra.mxu2 %vm301_vm1, %v2489_v19 }
 0x1f7   : > { %4040 = vmatmul.msk.f32.gmra.mxu3 %vm301_vm1, %v4741_v42  ;;  %v5423_v42 = vld [vmem:[#allocation31_spill] sm:$0xff] }
 0x1f8   : > { %3973 = vmatmul.msk.f32.gmra.mxu1 %vm301_vm1, %v4756_v43  ;;  %v1073_v20 = vadd.f32 %v1039_v51, %v5423_v42  ;;  %v2492_v51 = vld [vmem:[#allocation2 + $0xf8] sm:$0xff] }
 0x1f9   : > { %v1378_v7 = vpop.f32.mrf.mxu2 }
 0x1fa   : > { %v1414_v4 = vadd.f32 %v1378_v7, %v1072_v27  ;;  %v1720_v5 = vpop.f32.mrf.mxu3  ;;  %v2065_v53 = vpop.f32.mrf.mxu0 }
 0x1fc   : > { %v1756_v18 = vadd.f32 %v1720_v5, %v1414_v4 }
 0x1fd   : > { %v2314_v62 = vpop.f32.mrf.mxu1  ;;  %4075 = vmatmul.msk.f32.gmra.mxu0 %vm301_vm1, %v4786_v3 }
 0x1fe   : > { %v5128_v33 = vadd.f32 %v2062_v8, %v1756_v18  ;;  %4007 = vmatmul.msk.f32.gmra.mxu2 %vm301_vm1, %v2490_v50  ;;  %v2493_v18 = vld [vmem:[#allocation2 + $0x108] sm:$0xff] }
 0x1ff   : > { %4041 = vmatmul.msk.f32.gmra.mxu3 %vm301_vm1, %v4754_v32  ;;  %v5424_v32 = vld [vmem:[#allocation33_spill] sm:$0xff] }
 0x200   : > { %3974 = vmatmul.msk.f32.gmra.mxu1 %vm301_vm1, %v4771_v26  ;;  %v2410_v26 = vadd.f32 %v2314_v62, %v5424_v32 }
 0x201   : > { %v1381_v43 = vpop.f32.mrf.mxu2 }
 0x202   : > { %v1415_v23 = vadd.f32 %v1381_v43, %v1073_v20  ;;  %v1723_v57 = vpop.f32.mrf.mxu3  ;;  %v3341_v44 = vpop.f32.mrf.mxu0 }
 0x204   : > { %v1757_v40 = vadd.f32 %v1723_v57, %v1415_v23 }
 0x205   : > { %v2317_v25 = vpop.f32.mrf.mxu1  ;;  %4076 = vmatmul.msk.f32.gmra.mxu0 %vm301_vm1, %v4801_v35 }
 0x206   : > { %v5138_v36 = vadd.f32 %v2065_v53, %v1757_v40  ;;  %4008 = vmatmul.msk.f32.gmra.mxu2 %vm301_vm1, %v2491_v37 }
 0x207   : > { %4042 = vmatmul.msk.f32.gmra.mxu3 %vm301_vm1, %v4769_v16 }
 0x208   : > { %3975 = vmatmul.msk.f32.gmra.mxu1 %vm301_vm1, %v4786_v3  ;;  %v5425_v3 = vld [vmem:[#allocation34_spill] sm:$0xff] }
 0x209   : > { %v2657_v0 = vpop.f32.mrf.mxu2  ;;  %v2411_v7 = vadd.f32 %v2317_v25, %v5425_v3 }
 0x20a   : > { %v2753_v8 = vadd.f32 %v2657_v0, %v2410_v26  ;;  %v2999_v19 = vpop.f32.mrf.mxu3  ;;  %v3344_v6 = vpop.f32.mrf.mxu0  ;;  %v2494_v26 = vld [vmem:[#allocation2 + $0x110] sm:$0xff] }
 0x20c   : > { %v3095_v15 = vadd.f32 %v2999_v19, %v2753_v8  ;;  %v5427_v19 = vld [vmem:[#allocation36_spill] sm:$0xff] }
 0x20d   : > { %v2320_v27 = vpop.f32.mrf.mxu1  ;;  %4077 = vmatmul.msk.f32.gmra.mxu0 %vm301_vm1, %v4816_v48 }
 0x20e   : > { %v3437_v16 = vadd.f32 %v3341_v44, %v3095_v15  ;;  %4009 = vmatmul.msk.f32.gmra.mxu2 %vm301_vm1, %v2492_v51 }
 0x20f   : > { %4043 = vmatmul.msk.f32.gmra.mxu3 %vm301_vm1, %v4784_v49  ;;  %v5426_v49 = vld [vmem:[#allocation35_spill] sm:$0xff] }
 0x210   : > { %3533 = vst [vmem:[%s5151_s3] sm:$0xff] %v3437_v16  ;;  %3976 = vmatmul.msk.f32.gmra.mxu1 %vm301_vm1, %v4801_v35  ;;  %v2412_v43 = vadd.f32 %v2320_v27, %v5426_v49  ;;  %v3603_v23 = vmul.f32 %v3437_v16, %v3437_v16 }
 0x211   : > { %v2660_v4 = vpop.f32.mrf.mxu2 }
 0x212   : > { %v2754_v5 = vadd.f32 %v2660_v4, %v2411_v7  ;;  %v3002_v53 = vpop.f32.mrf.mxu3  ;;  %v3347_v50 = vpop.f32.mrf.mxu0  ;;  %v2495_v4 = vld [vmem:[#allocation2 + $0x120] sm:$0xff] }
 0x214   : > { %v3096_v62 = vadd.f32 %v3002_v53, %v2754_v5 }
 0x215   : > { %v2323_v42 = vpop.f32.mrf.mxu1  ;;  %4078 = vmatmul.msk.f32.gmra.mxu0 %vm301_vm1, %v4831_v54 }
 0x216   : > { %v3438_v20 = vadd.f32 %v3344_v6, %v3096_v62  ;;  %4010 = vmatmul.msk.f32.gmra.mxu2 %vm301_vm1, %v2493_v18  ;;  %v2413_v6 = vadd.f32 %v2323_v42, %v5427_v19  ;;  %v2497_v19 = vld [vmem:[#allocation2 + $0x138] sm:$0xff] }
 0x217   : > { %4044 = vmatmul.msk.f32.gmra.mxu3 %vm301_vm1, %v4799_v63 }
 0x218   : > { %3534 = vst [vmem:[%s5151_s3 + $0x8] sm:$0xff] %v3438_v20  ;;  %v3565_v35 = vadd.f32 %v3438_v20, %v3437_v16  ;;  %v3604_v57 = vmul.f32 %v3438_v20, %v3438_v20  ;;  %3977 = vmatmul.msk.f32.gmra.mxu1 %vm301_vm1, %v4816_v48 }
 0x219   : > { %v2663_v44 = vpop.f32.mrf.mxu2 }
 0x21a   : > { %v3635_v37 = vadd.f32 %v3604_v57, %v3603_v23  ;;  %v2755_v40 = vadd.f32 %v2663_v44, %v2412_v43  ;;  %v3005_v25 = vpop.f32.mrf.mxu3  ;;  %v3350_v32 = vpop.f32.mrf.mxu0 }
 0x21c   : > { %v3097_v0 = vadd.f32 %v3005_v25, %v2755_v40 }
 0x21d   : > { %v2326_v8 = vpop.f32.mrf.mxu1  ;;  %4079 = vmatmul.msk.f32.gmra.mxu0 %vm301_vm1, %v4846_v61 }
 0x21e   : > { %v3439_v63 = vadd.f32 %v3347_v50, %v3097_v0  ;;  %4011 = vmatmul.msk.f32.gmra.mxu2 %vm301_vm1, %v2494_v26  ;;  %v5428_v50 = vld [vmem:[#allocation37_spill] sm:$0xff] }
 0x21f   : > { %4045 = vmatmul.msk.f32.gmra.mxu3 %vm301_vm1, %v4814_v46  ;;  %v2414_v18 = vadd.f32 %v2326_v8, %v5428_v50  ;;  %v2156_v50 = vld [vmem:[#allocation2 + $0x13a] sm:$0xff] }
 0x220   : > { %3535 = vst [vmem:[%s5151_s3 + $0x10] sm:$0xff] %v3439_v63  ;;  %v3566_v48 = vadd.f32 %v3565_v35, %v3439_v63  ;;  %v3605_v51 = vmul.f32 %v3439_v63, %v3439_v63  ;;  %3978 = vmatmul.msk.f32.gmra.mxu1 %vm301_vm1, %v4831_v54  ;;  %v2496_v35 = vld [vmem:[#allocation2 + $0x128] sm:$0xff] }
 0x221   : > { %v2666_v15 = vpop.f32.mrf.mxu2 }
 0x222   : > { %v3636_v27 = vadd.f32 %v3635_v37, %v3605_v51  ;;  %v2756_v16 = vadd.f32 %v2666_v15, %v2413_v6  ;;  %v3008_v3 = vpop.f32.mrf.mxu3  ;;  %v3353_v7 = vpop.f32.mrf.mxu0  ;;  %v5429_v37 = vld [vmem:[#allocation38_spill] sm:$0xff]  ;;  %v5430_v51 = vld [vmem:[#allocation39_spill] sm:$0xff] }
 0x224   : > { %v3098_v5 = vadd.f32 %v3008_v3, %v2756_v16 }
 0x225   : > { %v2329_v53 = vpop.f32.mrf.mxu1  ;;  %4080 = vmatmul.msk.f32.gmra.mxu0 %vm301_vm1, %v4861_v2 }
 0x226   : > { %v3440_v46 = vadd.f32 %v3350_v32, %v3098_v5  ;;  %4012 = vmatmul.msk.f32.gmra.mxu2 %vm301_vm1, %v2495_v4  ;;  %v2415_v40 = vadd.f32 %v2329_v53, %v5429_v37  ;;  %v2498_v5 = vld [vmem:[#allocation2 + $0x140] sm:$0xff] }
 0x227   : > { %4046 = vmatmul.msk.f32.gmra.mxu3 %vm301_vm1, %v4829_v56 }
 0x228   : > { %3536 = vst [vmem:[%s5151_s3 + $0x18] sm:$0xff] %v3440_v46  ;;  %v3567_v54 = vadd.f32 %v3566_v48, %v3440_v46  ;;  %v3606_v62 = vmul.f32 %v3440_v46, %v3440_v46  ;;  %3979 = vmatmul.msk.f32.gmra.mxu1 %vm301_vm1, %v4846_v61 }
 0x229   : > { %v2669_v42 = vpop.f32.mrf.mxu2 }
 0x22a   : > { %v3637_v20 = vadd.f32 %v3636_v27, %v3606_v62  ;;  %v2757_v49 = vadd.f32 %v2669_v42, %v2414_v18  ;;  %v3011_v43 = vpop.f32.mrf.mxu3  ;;  %v3356_v23 = vpop.f32.mrf.mxu0  ;;  %v5431_v18 = vld [vmem:[#allocation40_spill] sm:$0xff] }
 0x22c   : > { %v3099_v57 = vadd.f32 %v3011_v43, %v2757_v49 }
 0x22d   : > { %v2332_v44 = vpop.f32.mrf.mxu1  ;;  %4081 = vmatmul.msk.f32.gmra.mxu0 %vm301_vm1, %v4876_v11 }
 0x22e   : > { %v3441_v56 = vadd.f32 %v3353_v7, %v3099_v57  ;;  %4013 = vmatmul.msk.f32.gmra.mxu2 %vm301_vm1, %v2496_v35  ;;  %v2416_v15 = vadd.f32 %v2332_v44, %v5430_v51  ;;  %v2157_v44 = vld [vmem:[#allocation2 + $0x142] sm:$0xff] }
 0x22f   : > { %4047 = vmatmul.msk.f32.gmra.mxu3 %vm301_vm1, %v4844_v45  ;;  %v5435_v51 = vld [vmem:[#allocation42_spill] sm:$0xff] }
 0x230   : > { %3537 = vst [vmem:[%s5151_s3 + $0x20] sm:$0xff] %v3441_v56  ;;  %v3568_v61 = vadd.f32 %v3567_v54, %v3441_v56  ;;  %v3607_v25 = vmul.f32 %v3441_v56, %v3441_v56  ;;  %3980 = vmatmul.msk.f32.gmra.mxu1 %vm301_vm1, %v4861_v2  ;;  %v5432_v56 = vld [vmem:[#allocation41_spill] sm:$0xff] }
 0x231   : > { %v2672_v32 = vpop.f32.mrf.mxu2 }
 0x232   : > { %v3638_v26 = vadd.f32 %v3637_v20, %v3607_v25  ;;  %v2758_v0 = vadd.f32 %v2672_v32, %v2415_v40  ;;  %v3014_v8 = vpop.f32.mrf.mxu3  ;;  %v3359_v63 = vpop.f32.mrf.mxu0 }
 0x234   : > { %v3100_v6 = vadd.f32 %v3014_v8, %v2758_v0 }
 0x235   : > { %v2335_v48 = vpop.f32.mrf.mxu1  ;;  %4082 = vmatmul.msk.f32.gmra.mxu0 %vm301_vm1, %v4893_v14 }
 0x236   : > { %v3442_v45 = vadd.f32 %v3356_v23, %v3100_v6  ;;  %4014 = vmatmul.msk.f32.gmra.mxu2 %vm301_vm1, %v2497_v19  ;;  %v2158_v6 = vld [vmem:[#allocation2 + $0x152] sm:$0xff] }
 0x237   : > { %4048 = vmatmul.msk.f32.gmra.mxu3 %vm301_vm1, %v4859_v13 }
 0x238   : > { %3538 = vst [vmem:[%s5151_s3 + $0x28] sm:$0xff] %v3442_v45  ;;  %v3569_v2 = vadd.f32 %v3568_v61, %v3442_v45  ;;  %v3608_v27 = vmul.f32 %v3442_v45, %v3442_v45  ;;  %3981 = vmatmul.msk.f32.gmra.mxu1 %vm301_vm1, %v4876_v11  ;;  %v2417_v11 = vadd.f32 %v2335_v48, %v5431_v18  ;;  %v5433_v48 = vld [vmem:[#allocation47_spill] sm:$0xff] }
 0x239   : > { %v2675_v16 = vpop.f32.mrf.mxu2  ;;  %v5434_v45 = vld [vmem:[#allocation43_spill] sm:$0xff] }
 0x23a   : > { %v3639_v3 = vadd.f32 %v3638_v26, %v3608_v27  ;;  %v2759_v7 = vadd.f32 %v2675_v16, %v2416_v15  ;;  %v3017_v4 = vpop.f32.mrf.mxu3  ;;  %v3362_v14 = vpop.f32.mrf.mxu0 }
 0x23c   : > { %v3101_v53 = vadd.f32 %v3017_v4, %v2759_v7 }
 0x23d   : > { %v2338_v46 = vpop.f32.mrf.mxu1  ;;  %4083 = vmatmul.msk.f32.gmra.mxu0 %vm301_vm1, %v4910_v12  ;;  %v2499_v12 = vld [vmem:[#allocation2 + $0x150] sm:$0xff] }
 0x23e   : > { %v3443_v13 = vadd.f32 %v3359_v63, %v3101_v53  ;;  %4015 = vmatmul.msk.f32.gmra.mxu2 %vm301_vm1, %v2498_v5  ;;  %v2418_v37 = vadd.f32 %v2338_v46, %v5432_v56  ;;  %v3185_v5 = vld [vmem:[#allocation2 + $0x16a] sm:$0xff] }
 0x23f   : > { %4049 = vmatmul.msk.f32.gmra.mxu3 %vm301_vm1, %v4874_v10  ;;  %v2501_v53 = vld [vmem:[#allocation2 + $0x168] sm:$0xff] }
 0x240   : > { %3539 = vst [vmem:[%s5151_s3 + $0x30] sm:$0xff] %v3443_v13  ;;  %v3570_v54 = vadd.f32 %v3569_v2, %v3443_v13  ;;  %v3609_v62 = vmul.f32 %v3443_v13, %v3443_v13  ;;  %3982 = vmatmul.msk.f32.gmra.mxu1 %vm301_vm1, %v2156_v50  ;;  %v2159_v13 = vld [vmem:[#allocation2 + $0x15a] sm:$0xff] }
 0x241   : > { %v2678_v42 = vpop.f32.mrf.mxu2 }
 0x242   : > { %v3640_v20 = vadd.f32 %v3639_v3, %v3609_v62  ;;  %v2760_v49 = vadd.f32 %v2678_v42, %v2417_v11  ;;  %v3020_v43 = vpop.f32.mrf.mxu3  ;;  %v3365_v23 = vpop.f32.mrf.mxu0  ;;  %v5436_v11 = vld [vmem:[#allocation45_spill] sm:$0xff] }
 0x244   : > { %v3102_v35 = vadd.f32 %v3020_v43, %v2760_v49 }
 0x245   : > { %v2341_v57 = vpop.f32.mrf.mxu1  ;;  %4084 = vmatmul.msk.f32.gmra.mxu0 %vm301_vm1, %v4925_v41  ;;  %v2500_v41 = vld [vmem:[#allocation2 + $0x158] sm:$0xff] }
 0x246   : > { %v3444_v10 = vadd.f32 %v3362_v14, %v3102_v35  ;;  %4016 = vmatmul.msk.f32.gmra.mxu2 %vm301_vm1, %v2499_v12  ;;  %v2419_v15 = vadd.f32 %v2341_v57, %v5435_v51  ;;  %v3186_v57 = vld [vmem:[#allocation2 + $0x172] sm:$0xff] }
 0x247   : > { %4050 = vmatmul.msk.f32.gmra.mxu3 %vm301_vm1, %v4891_v34  ;;  %v5440_v51 = vld [vmem:[#allocation48_spill] sm:$0xff] }
 0x248   : > { %3540 = vst [vmem:[%s5151_s3 + $0x38] sm:$0xff] %v3444_v10  ;;  %v3571_v40 = vadd.f32 %v3570_v54, %v3444_v10  ;;  %v3610_v61 = vmul.f32 %v3444_v10, %v3444_v10  ;;  %3983 = vmatmul.msk.f32.gmra.mxu1 %vm301_vm1, %v2157_v44  ;;  %v5437_v54 = vld [vmem:[#allocation44_spill] sm:$0xff] }
 0x249   : > { %v2681_v25 = vpop.f32.mrf.mxu2  ;;  %v2502_v44 = vld [vmem:[#allocation2 + $0x170] sm:$0xff] }
 0x24a   : > { %v3641_v32 = vadd.f32 %v3640_v20, %v3610_v61  ;;  %v2761_v26 = vadd.f32 %v2681_v25, %v2418_v37  ;;  %v3023_v0 = vpop.f32.mrf.mxu3  ;;  %v3368_v8 = vpop.f32.mrf.mxu0 }
 0x24c   : > { %v3103_v63 = vadd.f32 %v3023_v0, %v2761_v26 }
 0x24d   : > { %v2344_v19 = vpop.f32.mrf.mxu1  ;;  %4085 = vmatmul.msk.f32.gmra.mxu0 %vm301_vm1, %v5433_v48 }
 0x24e   : > { %v3445_v34 = vadd.f32 %v3365_v23, %v3103_v63  ;;  %4017 = vmatmul.msk.f32.gmra.mxu2 %vm301_vm1, %v2500_v41  ;;  %v2420_v62 = vadd.f32 %v2344_v19, %v5437_v54  ;;  %v3187_v19 = vld [vmem:[#allocation2 + $0x182] sm:$0xff] }
 0x24f   : > { %4051 = vmatmul.msk.f32.gmra.mxu3 %vm301_vm1, %v5434_v45  ;;  %v5439_v45 = vld [vmem:[#allocation49_spill] sm:$0xff] }
 0x250   : > { %3541 = vst [vmem:[%s5151_s3 + $0x40] sm:$0xff] %v3445_v34  ;;  %v3572_v2 = vadd.f32 %v3571_v40, %v3445_v34  ;;  %v3611_v27 = vmul.f32 %v3445_v34, %v3445_v34  ;;  %3984 = vmatmul.msk.f32.gmra.mxu1 %vm301_vm1, %v2158_v6  ;;  %v5438_v40 = vld [vmem:[#allocation46_spill] sm:$0xff] }
 0x251   : > { %v2684_v16 = vpop.f32.mrf.mxu2  ;;  %v2503_v6 = vld [vmem:[#allocation2 + $0x180] sm:$0xff] }
 0x252   : > { %v3642_v3 = vadd.f32 %v3641_v32, %v3611_v27  ;;  %v2762_v7 = vadd.f32 %v2684_v16, %v2419_v15  ;;  %v3026_v4 = vpop.f32.mrf.mxu3  ;;  %v3371_v14 = vpop.f32.mrf.mxu0 }
 0x254   : > { %v3104_v46 = vadd.f32 %v3026_v4, %v2762_v7 }
 0x255   : > { %v2347_v50 = vpop.f32.mrf.mxu1  ;;  %4086 = vmatmul.msk.f32.gmra.mxu0 %vm301_vm1, %v3185_v5 }
 0x256   : > { %v3446_v18 = vadd.f32 %v3368_v8, %v3104_v46  ;;  %4018 = vmatmul.msk.f32.gmra.mxu2 %vm301_vm1, %v2501_v53  ;;  %v2421_v61 = vadd.f32 %v2347_v50, %v5438_v40  ;;  %v2504_v53 = vld [vmem:[#allocation2 + $0x188] sm:$0xff] }
 0x257   : > { %4052 = vmatmul.msk.f32.gmra.mxu3 %vm301_vm1, %v5436_v11  ;;  %v2846_v50 = vld [vmem:[#allocation2 + $0x189] sm:$0xff] }
 0x258   : > { %3542 = vst [vmem:[%s5151_s3 + $0x48] sm:$0xff] %v3446_v18  ;;  %v3573_v42 = vadd.f32 %v3572_v2, %v3446_v18  ;;  %v3612_v20 = vmul.f32 %v3446_v18, %v3446_v18  ;;  %3985 = vmatmul.msk.f32.gmra.mxu1 %vm301_vm1, %v2159_v13 }
 0x259   : > { %v2687_v49 = vpop.f32.mrf.mxu2 }
 0x25a   : > { %v3643_v43 = vadd.f32 %v3642_v3, %v3612_v20  ;;  %v2763_v23 = vadd.f32 %v2687_v49, %v2420_v62  ;;  %v3029_v12 = vpop.f32.mrf.mxu3  ;;  %v3374_v35 = vpop.f32.mrf.mxu0 }
 0x25c   : > { %v3105_v10 = vadd.f32 %v3029_v12, %v2763_v23  ;;  %v3189_v12 = vld [vmem:[#allocation2 + $0x19a] sm:$0xff] }
 0x25d   : > { %v2350_v56 = vpop.f32.mrf.mxu1  ;;  %4087 = vmatmul.msk.f32.gmra.mxu0 %vm301_vm1, %v3186_v57 }
 0x25e   : > { %v3447_v37 = vadd.f32 %v3371_v14, %v3105_v10  ;;  %4019 = vmatmul.msk.f32.gmra.mxu2 %vm301_vm1, %v2502_v44  ;;  %v2422_v15 = vadd.f32 %v2350_v56, %v5440_v51  ;;  %v2847_v44 = vld [vmem:[#allocation2 + $0x199] sm:$0xff] }
 0x25f   : > { %4053 = vmatmul.msk.f32.gmra.mxu3 %vm301_vm1, %v4938_v38 }
 0x260   : > { %3543 = vst [vmem:[%s5151_s3 + $0x50] sm:$0xff] %v3447_v37  ;;  %v3574_v25 = vadd.f32 %v3573_v42, %v3447_v37  ;;  %v3613_v32 = vmul.f32 %v3447_v37, %v3447_v37  ;;  %3986 = vmatmul.msk.f32.gmra.mxu1 %vm301_vm1, %v3185_v5  ;;  %v3188_v5 = vld [vmem:[#allocation2 + $0x18a] sm:$0xff] }
 0x261   : > { %v2690_v26 = vpop.f32.mrf.mxu2 }
 0x262   : > { %v3644_v0 = vadd.f32 %v3643_v43, %v3613_v32  ;;  %v2764_v8 = vadd.f32 %v2690_v26, %v2421_v61  ;;  %v3032_v41 = vpop.f32.mrf.mxu3  ;;  %v3377_v63 = vpop.f32.mrf.mxu0 }
 0x264   : > { %v3106_v48 = vadd.f32 %v3032_v41, %v2764_v8  ;;  %v3190_v8 = vld [vmem:[#allocation2 + $0x1a2] sm:$0xff] }
 0x265   : > { %v2353_v34 = vpop.f32.mrf.mxu1  ;;  %4088 = vmatmul.msk.f32.gmra.mxu0 %vm301_vm1, %v3187_v19  ;;  %v2506_v41 = vld [vmem:[#allocation2 + $0x1a0] sm:$0xff] }
 0x266   : > { %v3448_v38 = vadd.f32 %v3374_v35, %v3106_v48  ;;  %4020 = vmatmul.msk.f32.gmra.mxu2 %vm301_vm1, %v2503_v6  ;;  %v2423_v11 = vadd.f32 %v2353_v34, %v4957_v59  ;;  %v2505_v35 = vld [vmem:[#allocation2 + $0x198] sm:$0xff] }
 0x267   : > { %4054 = vmatmul.msk.f32.gmra.mxu3 %vm301_vm1, %v5439_v45 }
 0x268   : > { %3544 = vst [vmem:[%s5151_s3 + $0x58] sm:$0xff] %v3448_v38  ;;  %v3575_v2 = vadd.f32 %v3574_v25, %v3448_v38  ;;  %v3614_v27 = vmul.f32 %v3448_v38, %v3448_v38  ;;  %3987 = vmatmul.msk.f32.gmra.mxu1 %vm301_vm1, %v3186_v57 }
 0x269   : > { %v2693_v16 = vpop.f32.mrf.mxu2 }
 0x26a   : > { %v3645_v3 = vadd.f32 %v3644_v0, %v3614_v27  ;;  %v2765_v7 = vadd.f32 %v2693_v16, %v2422_v15  ;;  %v3035_v4 = vpop.f32.mrf.mxu3  ;;  %v3380_v14 = vpop.f32.mrf.mxu0 }
 0x26c   : > { %v3107_v46 = vadd.f32 %v3035_v4, %v2765_v7 }
 0x26d   : > { %v2356_v13 = vpop.f32.mrf.mxu1  ;;  %4089 = vmatmul.msk.f32.gmra.mxu0 %vm301_vm1, %v3188_v5 }
 0x26e   : > { %v3449_v18 = vadd.f32 %v3377_v63, %v3107_v46  ;;  %4021 = vmatmul.msk.f32.gmra.mxu2 %vm301_vm1, %v2504_v53  ;;  %v2424_v59 = vadd.f32 %v2356_v13, %v4965_v58 }
 0x26f   : > { %4055 = vmatmul.msk.f32.gmra.mxu3 %vm301_vm1, %v2846_v50 }
 0x270   : > { %3545 = vst [vmem:[%s5151_s3 + $0x60] sm:$0xff] %v3449_v18  ;;  %v3576_v54 = vadd.f32 %v3575_v2, %v3449_v18  ;;  %v3615_v62 = vmul.f32 %v3449_v18, %v3449_v18  ;;  %3988 = vmatmul.msk.f32.gmra.mxu1 %vm301_vm1, %v3187_v19  ;;  %v2848_v19 = vld [vmem:[#allocation2 + $0x1a1] sm:$0xff] }
 0x271   : > { %v2696_v42 = vpop.f32.mrf.mxu2 }
 0x272   : > { %v3646_v20 = vadd.f32 %v3645_v3, %v3615_v62  ;;  %v2766_v49 = vadd.f32 %v2696_v42, %v2423_v11  ;;  %v3038_v43 = vpop.f32.mrf.mxu3  ;;  %v3383_v23 = vpop.f32.mrf.mxu0 }
 0x274   : > { %v3108_v57 = vadd.f32 %v3038_v43, %v2766_v49 }
 0x275   : > { %v2359_v10 = vpop.f32.mrf.mxu1  ;;  %4090 = vmatmul.msk.f32.gmra.mxu0 %vm301_vm1, %v3189_v12 }
 0x276   : > { %v3450_v56 = vadd.f32 %v3380_v14, %v3108_v57  ;;  %4022 = vmatmul.msk.f32.gmra.mxu2 %vm301_vm1, %v2505_v35  ;;  %v2425_v58 = vadd.f32 %v2359_v10, %v4974_v31 }
 0x277   : > { %4056 = vmatmul.msk.f32.gmra.mxu3 %vm301_vm1, %v2847_v44 }
 0x278   : > { %3546 = vst [vmem:[%s5151_s3 + $0x68] sm:$0xff] %v3450_v56  ;;  %v3577_v37 = vadd.f32 %v3576_v54, %v3450_v56  ;;  %v3616_v40 = vmul.f32 %v3450_v56, %v3450_v56  ;;  %3989 = vmatmul.msk.f32.gmra.mxu1 %vm301_vm1, %v3188_v5 }
 0x279   : > { %v2699_v61 = vpop.f32.mrf.mxu2 }
 0x27a   : > { %v3647_v25 = vadd.f32 %v3646_v20, %v3616_v40  ;;  %v2767_v32 = vadd.f32 %v2699_v61, %v2424_v59  ;;  %v3041_v26 = vpop.f32.mrf.mxu3  ;;  %v3386_v0 = vpop.f32.mrf.mxu0 }
 0x27c   : > { %v3109_v63 = vadd.f32 %v3041_v26, %v2767_v32 }
 0x27d   : > { %v2362_v6 = vpop.f32.mrf.mxu1  ;;  %4091 = vmatmul.msk.f32.gmra.mxu0 %vm301_vm1, %v3190_v8 }
 0x27e   : > { %v3451_v48 = vadd.f32 %v3383_v23, %v3109_v63  ;;  %4023 = vmatmul.msk.f32.gmra.mxu2 %vm301_vm1, %v2506_v41  ;;  %v2426_v4 = vadd.f32 %v2362_v6, %v4985_v9 }
 0x27f   : > { %4057 = vmatmul.msk.f32.gmra.mxu3 %vm301_vm1, %v2848_v19 }
 0x280   : > { %3547 = vst [vmem:[%s5151_s3 + $0x70] sm:$0xff] %v3451_v48  ;;  %v3578_v34 = vadd.f32 %v3577_v37, %v3451_v48  ;;  %v3617_v38 = vmul.f32 %v3451_v48, %v3451_v48 }
 0x281   : > { %v2702_v45 = vpop.f32.mrf.mxu2 }
 0x282   : > { %v3648_v51 = vadd.f32 %v3647_v25, %v3617_v38  ;;  %v2768_v15 = vadd.f32 %v2702_v45, %v2425_v58  ;;  %v3044_v2 = vpop.f32.mrf.mxu3  ;;  %v3389_v27 = vpop.f32.mrf.mxu0 }
 0x284   : > { %v3110_v16 = vadd.f32 %v3044_v2, %v2768_v15 }
 0x285   : > { %v2365_v3 = vpop.f32.mrf.mxu1 }
 0x286   : > { %v3452_v7 = vadd.f32 %v3386_v0, %v3110_v16  ;;  %v2427_v62 = vadd.f32 %v2365_v3, %v4996_v47 }
 0x288   : > { %3548 = vst [vmem:[%s5151_s3 + $0x78] sm:$0xff] %v3452_v7  ;;  %v3579_v14 = vadd.f32 %v3578_v34, %v3452_v7  ;;  %v3618_v5 = vmul.f32 %v3452_v7, %v3452_v7 }
 0x289   : > { %v2705_v53 = vpop.f32.mrf.mxu2 }
 0x28a   : > { %v3649_v46 = vadd.f32 %v3648_v51, %v3618_v5  ;;  %v2769_v31 = vadd.f32 %v2705_v53, %v2426_v4  ;;  %v3047_v50 = vpop.f32.mrf.mxu3  ;;  %v3392_v13 = vpop.f32.mrf.mxu0 }
 0x28c   : > { %v3111_v18 = vadd.f32 %v3047_v50, %v2769_v31 }
 0x28d   : > { %v2368_v11 = vpop.f32.mrf.mxu1 }
 0x28e   : > { %v3453_v54 = vadd.f32 %v3389_v27, %v3111_v18  ;;  %v2428_v10 = vadd.f32 %v2368_v11, %v5007_v28 }
 0x290   : > { %3549 = vst [vmem:[%s5151_s3 + $0x80] sm:$0xff] %v3453_v54  ;;  %v3580_v42 = vadd.f32 %v3579_v14, %v3453_v54  ;;  %v3619_v20 = vmul.f32 %v3453_v54, %v3453_v54 }
 0x291   : > { %v2708_v49 = vpop.f32.mrf.mxu2 }
 0x292   : > { %v3650_v43 = vadd.f32 %v3649_v46, %v3619_v20  ;;  %v2770_v9 = vadd.f32 %v2708_v49, %v2427_v62  ;;  %v3050_v23 = vpop.f32.mrf.mxu3  ;;  %v3395_v12 = vpop.f32.mrf.mxu0 }
 0x294   : > { %v3112_v35 = vadd.f32 %v3050_v23, %v2770_v9 }
 0x295   : > { %v2371_v57 = vpop.f32.mrf.mxu1 }
 0x296   : > { %v3454_v44 = vadd.f32 %v3392_v13, %v3112_v35  ;;  %v2429_v8 = vadd.f32 %v2371_v57, %v5018_v55 }
 0x298   : > { %3550 = vst [vmem:[%s5151_s3 + $0x88] sm:$0xff] %v3454_v44  ;;  %v3581_v56 = vadd.f32 %v3580_v42, %v3454_v44  ;;  %v3620_v59 = vmul.f32 %v3454_v44, %v3454_v44 }
 0x299   : > { %v2711_v37 = vpop.f32.mrf.mxu2 }
 0x29a   : > { %v3651_v40 = vadd.f32 %v3650_v43, %v3620_v59  ;;  %v2771_v47 = vadd.f32 %v2711_v37, %v2428_v10  ;;  %v3053_v61 = vpop.f32.mrf.mxu3  ;;  %v3398_v25 = vpop.f32.mrf.mxu0 }
 0x29c   : > { %v3113_v32 = vadd.f32 %v3053_v61, %v2771_v47 }
 0x29d   : > { %v2374_v26 = vpop.f32.mrf.mxu1 }
 0x29e   : > { %v3455_v0 = vadd.f32 %v3395_v12, %v3113_v32  ;;  %v2430_v51 = vadd.f32 %v2374_v26, %v5028_v39 }
 0x2a0   : > { %3551 = vst [vmem:[%s5151_s3 + $0x90] sm:$0xff] %v3455_v0  ;;  %v3582_v41 = vadd.f32 %v3581_v56, %v3455_v0  ;;  %v3621_v63 = vmul.f32 %v3455_v0, %v3455_v0 }
 0x2a1   : > { %v2714_v19 = vpop.f32.mrf.mxu2 }
 0x2a2   : > { %v3652_v6 = vadd.f32 %v3651_v40, %v3621_v63  ;;  %v2772_v28 = vadd.f32 %v2714_v19, %v2429_v8  ;;  %v3056_v48 = vpop.f32.mrf.mxu3  ;;  %v3401_v58 = vpop.f32.mrf.mxu0 }
 0x2a4   : > { %v3114_v34 = vadd.f32 %v3056_v48, %v2772_v28 }
 0x2a5   : > { %v2377_v38 = vpop.f32.mrf.mxu1 }
 0x2a6   : > { %v3456_v45 = vadd.f32 %v3398_v25, %v3114_v34  ;;  %v2431_v53 = vadd.f32 %v2377_v38, %v5038_v1 }
 0x2a8   : > { %3552 = vst [vmem:[%s5151_s3 + $0x98] sm:$0xff] %v3456_v45  ;;  %v3583_v15 = vadd.f32 %v3582_v41, %v3456_v45  ;;  %v3622_v2 = vmul.f32 %v3456_v45, %v3456_v45 }
 0x2a9   : > { %v2717_v27 = vpop.f32.mrf.mxu2 }
 0x2aa   : > { %v3653_v16 = vadd.f32 %v3652_v6, %v3622_v2  ;;  %v2773_v55 = vadd.f32 %v2717_v27, %v2430_v51  ;;  %v3059_v3 = vpop.f32.mrf.mxu3  ;;  %v3404_v7 = vpop.f32.mrf.mxu0 }
 0x2ac   : > { %v3115_v4 = vadd.f32 %v3059_v3, %v2773_v55 }
 0x2ad   : > { %v2380_v14 = vpop.f32.mrf.mxu1 }
 0x2ae   : > { %v3457_v5 = vadd.f32 %v3401_v58, %v3115_v4  ;;  %v2432_v20 = vadd.f32 %v2380_v14, %v5048_v29 }
 0x2b0   : > { %3553 = vst [vmem:[%s5151_s3 + $0xa0] sm:$0xff] %v3457_v5  ;;  %v3584_v46 = vadd.f32 %v3583_v15, %v3457_v5  ;;  %v3623_v31 = vmul.f32 %v3457_v5, %v3457_v5 }
 0x2b1   : > { %v2720_v50 = vpop.f32.mrf.mxu2 }
 0x2b2   : > { %v3654_v13 = vadd.f32 %v3653_v16, %v3623_v31  ;;  %v2774_v39 = vadd.f32 %v2720_v50, %v2431_v53  ;;  %v3062_v18 = vpop.f32.mrf.mxu3  ;;  %v3407_v11 = vpop.f32.mrf.mxu0 }
 0x2b4   : > { %v3116_v54 = vadd.f32 %v3062_v18, %v2774_v39 }
 0x2b5   : > { %v2383_v62 = vpop.f32.mrf.mxu1 }
 0x2b6   : > { %v3458_v42 = vadd.f32 %v3404_v7, %v3116_v54  ;;  %v2433_v56 = vadd.f32 %v2383_v62, %v5058_v60 }
 0x2b8   : > { %3554 = vst [vmem:[%s5151_s3 + $0xa8] sm:$0xff] %v3458_v42  ;;  %v3585_v49 = vadd.f32 %v3584_v46, %v3458_v42  ;;  %v3624_v43 = vmul.f32 %v3458_v42, %v3458_v42 }
 0x2b9   : > { %v2723_v9 = vpop.f32.mrf.mxu2 }
 0x2ba   : > { %v3655_v23 = vadd.f32 %v3654_v13, %v3624_v43  ;;  %v2775_v1 = vadd.f32 %v2723_v9, %v2432_v20  ;;  %v3065_v12 = vpop.f32.mrf.mxu3  ;;  %v3410_v35 = vpop.f32.mrf.mxu0 }
 0x2bc   : > { %v3117_v57 = vadd.f32 %v3065_v12, %v2775_v1 }
 0x2bd   : > { %v2386_v44 = vpop.f32.mrf.mxu1 }
 0x2be   : > { %v3459_v10 = vadd.f32 %v3407_v11, %v3117_v57  ;;  %v2434_v8 = vadd.f32 %v2386_v44, %v5068_v17 }
 0x2c0   : > { %3555 = vst [vmem:[%s5151_s3 + $0xb0] sm:$0xff] %v3459_v10  ;;  %v3586_v59 = vadd.f32 %v3585_v49, %v3459_v10  ;;  %v3625_v37 = vmul.f32 %v3459_v10, %v3459_v10 }
 0x2c1   : > { %v2726_v40 = vpop.f32.mrf.mxu2 }
 0x2c2   : > { %v3656_v47 = vadd.f32 %v3655_v23, %v3625_v37  ;;  %v2776_v29 = vadd.f32 %v2726_v40, %v2433_v56  ;;  %v3068_v61 = vpop.f32.mrf.mxu3  ;;  %v3413_v25 = vpop.f32.mrf.mxu0 }
 0x2c4   : > { %v3118_v32 = vadd.f32 %v3068_v61, %v2776_v29 }
 0x2c5   : > { %v2389_v26 = vpop.f32.mrf.mxu1 }
 0x2c6   : > { %v3460_v0 = vadd.f32 %v3410_v35, %v3118_v32  ;;  %v2435_v45 = vadd.f32 %v2389_v26, %v5078_v21 }
 0x2c8   : > { %3556 = vst [vmem:[%s5151_s3 + $0xb8] sm:$0xff] %v3460_v0  ;;  %v3587_v41 = vadd.f32 %v3586_v59, %v3460_v0  ;;  %v3626_v63 = vmul.f32 %v3460_v0, %v3460_v0 }
 0x2c9   : > { %v2729_v19 = vpop.f32.mrf.mxu2 }
 0x2ca   : > { %v3657_v6 = vadd.f32 %v3656_v47, %v3626_v63  ;;  %v2777_v60 = vadd.f32 %v2729_v19, %v2434_v8  ;;  %v3071_v28 = vpop.f32.mrf.mxu3  ;;  %v3416_v48 = vpop.f32.mrf.mxu0 }
 0x2cc   : > { %v3119_v58 = vadd.f32 %v3071_v28, %v2777_v60 }
 0x2cd   : > { %v2392_v34 = vpop.f32.mrf.mxu1 }
 0x2ce   : > { %v3461_v38 = vadd.f32 %v3413_v25, %v3119_v58  ;;  %v2436_v14 = vadd.f32 %v2392_v34, %v5088_v22 }
 0x2d0   : > { %3557 = vst [vmem:[%s5151_s3 + $0xc0] sm:$0xff] %v3461_v38  ;;  %v3588_v51 = vadd.f32 %v3587_v41, %v3461_v38  ;;  %v3627_v15 = vmul.f32 %v3461_v38, %v3461_v38 }
 0x2d1   : > { %v2732_v2 = vpop.f32.mrf.mxu2 }
 0x2d2   : > { %v3658_v27 = vadd.f32 %v3657_v6, %v3627_v15  ;;  %v2778_v17 = vadd.f32 %v2732_v2, %v2435_v45  ;;  %v3074_v16 = vpop.f32.mrf.mxu3  ;;  %v3419_v55 = vpop.f32.mrf.mxu0 }
 0x2d4   : > { %v3120_v3 = vadd.f32 %v3074_v16, %v2778_v17 }
 0x2d5   : > { %v2395_v7 = vpop.f32.mrf.mxu1 }
 0x2d6   : > { %v3462_v4 = vadd.f32 %v3416_v48, %v3120_v3  ;;  %v2437_v54 = vadd.f32 %v2395_v7, %v5098_v52 }
 0x2d8   : > { %3558 = vst [vmem:[%s5151_s3 + $0xc8] sm:$0xff] %v3462_v4  ;;  %v3589_v5 = vadd.f32 %v3588_v51, %v3462_v4  ;;  %v3628_v53 = vmul.f32 %v3462_v4, %v3462_v4 }
 0x2d9   : > { %v2735_v46 = vpop.f32.mrf.mxu2 }
 0x2da   : > { %v3659_v31 = vadd.f32 %v3658_v27, %v3628_v53  ;;  %v2779_v21 = vadd.f32 %v2735_v46, %v2436_v14  ;;  %v3077_v50 = vpop.f32.mrf.mxu3  ;;  %v3422_v13 = vpop.f32.mrf.mxu0 }
 0x2dc   : > { %v3121_v39 = vadd.f32 %v3077_v50, %v2779_v21 }
 0x2dd   : > { %v2398_v11 = vpop.f32.mrf.mxu1 }
 0x2de   : > { %v3463_v18 = vadd.f32 %v3419_v55, %v3121_v39  ;;  %v2438_v12 = vadd.f32 %v2398_v11, %v5108_v30 }
 0x2e0   : > { %3559 = vst [vmem:[%s5151_s3 + $0xd0] sm:$0xff] %v3463_v18  ;;  %v3590_v62 = vadd.f32 %v3589_v5, %v3463_v18  ;;  %v3629_v42 = vmul.f32 %v3463_v18, %v3463_v18 }
 0x2e1   : > { %v2738_v20 = vpop.f32.mrf.mxu2 }
 0x2e2   : > { %v3660_v49 = vadd.f32 %v3659_v31, %v3629_v42  ;;  %v2780_v22 = vadd.f32 %v2738_v20, %v2437_v54  ;;  %v3080_v43 = vpop.f32.mrf.mxu3  ;;  %v3425_v23 = vpop.f32.mrf.mxu0 }
 0x2e4   : > { %v3122_v9 = vadd.f32 %v3080_v43, %v2780_v22 }
 0x2e5   : > { %v2401_v10 = vpop.f32.mrf.mxu1 }
 0x2e6   : > { %v3464_v1 = vadd.f32 %v3422_v13, %v3122_v9  ;;  %v2439_v29 = vadd.f32 %v2401_v10, %v5118_v24 }
 0x2e8   : > { %3560 = vst [vmem:[%s5151_s3 + $0xd8] sm:$0xff] %v3464_v1  ;;  %v3591_v35 = vadd.f32 %v3590_v62, %v3464_v1  ;;  %v3630_v57 = vmul.f32 %v3464_v1, %v3464_v1 }
 0x2e9   : > { %v2741_v44 = vpop.f32.mrf.mxu2 }
 0x2ea   : > { %v3661_v56 = vadd.f32 %v3660_v49, %v3630_v57  ;;  %v2781_v52 = vadd.f32 %v2741_v44, %v2438_v12  ;;  %v3083_v59 = vpop.f32.mrf.mxu3  ;;  %v3428_v47 = vpop.f32.mrf.mxu0 }
 0x2ec   : > { %v3123_v37 = vadd.f32 %v3083_v59, %v2781_v52 }
 0x2ed   : > { %v2404_v8 = vpop.f32.mrf.mxu1 }
 0x2ee   : > { %v3465_v40 = vadd.f32 %v3425_v23, %v3123_v37  ;;  %v2440_v19 = vadd.f32 %v2404_v8, %v5128_v33 }
 0x2f0   : > { %3561 = vst [vmem:[%s5151_s3 + $0xe0] sm:$0xff] %v3465_v40  ;;  %v3592_v61 = vadd.f32 %v3591_v35, %v3465_v40  ;;  %v3631_v25 = vmul.f32 %v3465_v40, %v3465_v40 }
 0x2f1   : > { %v2744_v32 = vpop.f32.mrf.mxu2 }
 0x2f2   : > { %v3662_v26 = vadd.f32 %v3661_v56, %v3631_v25  ;;  %v2782_v30 = vadd.f32 %v2744_v32, %v2439_v29  ;;  %v3086_v0 = vpop.f32.mrf.mxu3  ;;  %v3431_v48 = vpop.f32.mrf.mxu0 }
 0x2f4   : > { %v3124_v41 = vadd.f32 %v3086_v0, %v2782_v30 }
 0x2f5   : > { %v2407_v45 = vpop.f32.mrf.mxu1 }
 0x2f6   : > { %v3466_v63 = vadd.f32 %v3428_v47, %v3124_v41  ;;  %v2441_v15 = vadd.f32 %v2407_v45, %v5138_v36 }
 0x2f8   : > { %3562 = vst [vmem:[%s5151_s3 + $0xe8] sm:$0xff] %v3466_v63  ;;  %v3593_v6 = vadd.f32 %v3592_v61, %v3466_v63  ;;  %v3632_v60 = vmul.f32 %v3466_v63, %v3466_v63 }
 0x2f9   : > { %v2747_v28 = vpop.f32.mrf.mxu2 }
 0x2fa   : > { %v3663_v58 = vadd.f32 %v3662_v26, %v3632_v60  ;;  %v2783_v24 = vadd.f32 %v2747_v28, %v2440_v19  ;;  %v3089_v34 = vpop.f32.mrf.mxu3  ;;  %v3434_v3 = vpop.f32.mrf.mxu0 }
 0x2fc   : > { %v3125_v38 = vadd.f32 %v3089_v34, %v2783_v24 }
 0x2fe   : > { %v3467_v51 = vadd.f32 %v3431_v48, %v3125_v38 }
 0x300   : > { %3563 = vst [vmem:[%s5151_s3 + $0xf0] sm:$0xff] %v3467_v51  ;;  %v3594_v2 = vadd.f32 %v3593_v6, %v3467_v51  ;;  %v3633_v27 = vmul.f32 %v3467_v51, %v3467_v51 }
 0x301   : > { %v2750_v17 = vpop.f32.mrf.mxu2 }
 0x302   : > { %v3664_v16 = vadd.f32 %v3663_v58, %v3633_v27  ;;  %v2784_v33 = vadd.f32 %v2750_v17, %v2441_v15  ;;  %v3092_v55 = vpop.f32.mrf.mxu3 }
 0x304   : > { %v3126_v7 = vadd.f32 %v3092_v55, %v2784_v33 }
 0x306   : > { %v3468_v4 = vadd.f32 %v3434_v3, %v3126_v7 }
 0x308   : > { %3564 = vst [vmem:[%s5151_s3 + $0xf8] sm:$0xff] %v3468_v4  ;;  %v3595_v14 = vadd.f32 %v3594_v2, %v3468_v4  ;;  %v3634_v5 = vmul.f32 %v3468_v4, %v3468_v4 }
 0x30a   : > { %v3596_v53 = vrot.slane %v3595_v14, 4  ;;  %v3665_v46 = vadd.f32 %v3664_v16, %v3634_v5 }
 0x30c   : > { %v3597_v31 = vadd.f32 %v3596_v53, %v3595_v14  ;;  %v3666_v21 = vrot.slane %v3665_v46, 4 }
 0x30e   : > { %v3598_v36 = vrot.slane %v3597_v31, 2  ;;  %v3667_v50 = vadd.f32 %v3666_v21, %v3665_v46 }
 0x310   : > { %v3599_v13 = vadd.f32 %v3598_v36, %v3597_v31  ;;  %v3668_v39 = vrot.slane %v3667_v50, 2 }
 0x312   : > { %v3600_v18 = vrot.slane %v3599_v13, 1  ;;  %v3669_v11 = vadd.f32 %v3668_v39, %v3667_v50 }
 0x314   : > { %v3601_v54 = vadd.f32 %v3600_v18, %v3599_v13  ;;  %v3670_v62 = vrot.slane %v3669_v11, 1 }
 0x316   : > { %3602 = vst [vmem:[%s265_s24] sm:$0x1] %v3601_v54  ;;  %v3671_v42 = vadd.f32 %v3670_v62, %v3669_v11 }
 0x318   : > { %3672 = vst [vmem:[%s268_s27] sm:$0x1] %v3671_v42 }
 0x319 PF: > { %s17_s21 = sadd.s32 1, %s4114_s21  }
 0x31a   : > { %p14_p4 = scmp.ge.s32.totalorder %s17_s21, 4  }
 0x31c   :  { %16 = sbr.rel (!%p14_p4) target bundleno = 1 (0x1), region = 100 }

// kernel: conv_block.4
= control target key start
LH: loop header
LB: loop body
LE: loop exit
PB: predicated region body
PF: predicated region fallthrough
CT: control target
= control target key end

     0   :  { %s3370_s21 = smov 0   ;;  %s4415_s0 = inlined_call_operand.vmem [shape: f32[2,16,16,128], index: 0, kind: input, shape index: {}]   ;;  %s4416_s1 = inlined_call_operand.vmem [shape: f32[9,128,128], index: 1, kind: input, shape index: {}]   ;;  %s4417_s2 = inlined_call_operand.vmem [shape: f32[1,128], index: 2, kind: input, shape index: {}]   ;;  %s4418_s3 = inlined_call_operand.vmem [shape: f32[1,128], index: 3, kind: input, shape index: {}]   ;;  %s4419_s4 = inlined_call_operand.vmem [shape: f32[2,16,16,128], index: 4, kind: output, shape index: {0}]   ;;  %s4420_s5 = inlined_call_operand.vmem [shape: f32[2,1,128], index: 5, kind: output, shape index: {1}]   ;;  %s4421_s6 = inlined_call_operand.vmem [shape: f32[2,1,128], index: 6, kind: output, shape index: {2}]  }
   0x1 LB: > { %s3123_s22 = sadd.s32 4294967295, %s3332_s21   ;;  %p3127_p0 = scmp.ge.s32.totalorder %s3332_s21, 1  ;;  %s3332_s21 = sphi %s3370_s21, %s17_s21  }
   0x2   : > { %p217_p1 = scmp.lt.s32.totalorder %s3332_s21, 3 }
   0x4   : > { %p218_p2 = pnand %p3127_p0, %p217_p1 }
   0x5   : > { %p253_p3 = scmp.lt.s32.totalorder (!%p218_p2), %s3123_s22, 1 }
   0x6   : > { %221 = sbr.rel (%p218_p2) target bundleno = 798 (0x31e), region = 36 }
   0xb   : > { %v603_v0 = vld [vmem:[%s4416_s1 + $0x78] sm:$0xff]  ;;  %v602_v1 = vld [vmem:[%s4416_s1 + $0x70] sm:$0xff]  ;;  %v3334_v2 = vmov 0.0   ;;  %v601_v3 = vld [vmem:[%s4416_s1 + $0x68] sm:$0xff]  ;;  %s4423_s22 = smov (!%p253_p3, %s3123_s22), 1 }
   0xc   : > { %3264 = vmatpush.msra.mxu1 %v603_v0  ;;  %3265 = vmatpush.msra.mxu2 %v603_v0  ;;  %417 = vst [vmem:[#allocation2 + $0x60] sm:$0xff] %v3334_v2  ;;  %v600_v4 = vld [vmem:[%s4416_s1 + $0x60] sm:$0xff]  ;;  %s3262_s7 = sshll.u32 %s4423_s22, 8  ;;  %v599_v5 = vld [vmem:[%s4416_s1 + $0x58] sm:$0xff]  ;;  %v598_v9 = vld [vmem:[%s4416_s1 + $0x50] sm:$0xff]  ;;  %s265_s24 = scalar_lea.vmem %s4420_s5, %s4423_s22 }
   0xd   : > { %3266 = vmatpush.msra.mxu3 %v603_v0  ;;  %604 = vmatpush.msra.mxu0 %v603_v0  ;;  %418 = vst [vmem:[#allocation2 + $0x68] sm:$0xff] %v3334_v2  ;;  %s3405_s12 = scalar_lea.vmem %s4415_s0, %s3262_s7  ;;  %v3412_v7 = vld [vmem:[%s4417_s2] ss:$0 sm:$0xff]  ;;  %v597_v11 = vld [vmem:[%s4416_s1 + $0x48] sm:$0xff]  ;;  %v595_v15 = vld [vmem:[%s4416_s1 + $0x38] sm:$0xff]  ;;  %s4339_s20 = scalar_lea.vmem %s4419_s4, %s3262_s7 }
   0xe   : > { %3267 = vmatpush.msra.mxu1 %v602_v1  ;;  %3268 = vmatpush.msra.mxu2 %v602_v1  ;;  %405 = vst [vmem:[#allocation2] sm:$0xff] %v3334_v2  ;;  %v275_v6 = vld [vmem:[%s3405_s12 + $0x30] sm:$0xff]  ;;  %v3417_v8 = vld [vmem:[%s4418_s3] ss:$0 sm:$0xff]  ;;  %v593_v17 = vld [vmem:[%s4416_s1 + $0x28] sm:$0xff]  ;;  %s268_s27 = scalar_lea.vmem %s4421_s6, %s4423_s22 }
   0xf   : > { %3269 = vmatpush.msra.mxu3 %v602_v1  ;;  %605 = vmatpush.msra.mxu0 %v602_v1  ;;  %406 = vst [vmem:[#allocation2 + $0x8] sm:$0xff] %v3334_v2  ;;  %v312_v10 = vmul.f32 %v3412_v7, %v275_v6  ;;  %v596_v13 = vld [vmem:[%s4416_s1 + $0x40] sm:$0xff]  ;;  %v594_v16 = vld [vmem:[%s4416_s1 + $0x30] sm:$0xff]  ;;  %v591_v19 = vld [vmem:[%s4416_s1 + $0x18] sm:$0xff] }
  0x10   : > { %3270 = vmatpush.msra.mxu1 %v601_v3  ;;  %3271 = vmatpush.msra.mxu2 %v601_v3  ;;  %408 = vst [vmem:[#allocation2 + $0x18] sm:$0xff] %v3334_v2  ;;  %v592_v18 = vld [vmem:[%s4416_s1 + $0x20] sm:$0xff]  ;;  %v590_v20 = vld [vmem:[%s4416_s1 + $0x10] sm:$0xff]  ;;  %v589_v21 = vld [vmem:[%s4416_s1 + $0x8] sm:$0xff] }
  0x11   : > { %3272 = vmatpush.msra.mxu3 %v601_v3  ;;  %606 = vmatpush.msra.mxu0 %v601_v3  ;;  %409 = vst [vmem:[#allocation2 + $0x20] sm:$0xff] %v3334_v2  ;;  %v347_v12 = vadd.f32 %v3417_v8, %v312_v10  ;;  %v588_v22 = vld [vmem:[%s4416_s1] sm:$0xff]  ;;  %v3163_v24 = vld [vmem:[%s4416_s1 + $0x178] sm:$0xff]  ;;  %v3162_v27 = vld [vmem:[%s4416_s1 + $0x170] sm:$0xff] }
  0x12   : > { %3273 = vmatpush.msra.mxu1 %v600_v4  ;;  %3274 = vmatpush.msra.mxu2 %v600_v4  ;;  %407 = vst [vmem:[#allocation2 + $0x10] sm:$0x3] %v3334_v2  ;;  %v3179_v25 = vld [vmem:[%s4416_s1 + $0x1f8] sm:$0xff]  ;;  %v3178_v28 = vld [vmem:[%s4416_s1 + $0x1f0] sm:$0xff]  ;;  %v3161_v32 = vld [vmem:[%s4416_s1 + $0x168] sm:$0xff] }
  0x13   : > { %3275 = vmatpush.msra.mxu3 %v600_v4  ;;  %607 = vmatpush.msra.mxu0 %v600_v4  ;;  %410 = vst [vmem:[#allocation2 + $0x28] sm:$0x3] %v3334_v2  ;;  %v3436_v14 = vmax.f32 %v347_v12, 0.0  ;;  %v3147_v26 = vld [vmem:[%s4416_s1 + $0xf8] sm:$0xff]  ;;  %v283_v29 = vld [vmem:[%s3405_s12 + $0x70] sm:$0xff]  ;;  %v3177_v33 = vld [vmem:[%s4416_s1 + $0x1e8] sm:$0xff] }
  0x14   : > { %3276 = vmatpush.msra.mxu1 %v599_v5  ;;  %3277 = vmatpush.msra.mxu2 %v599_v5  ;;  %411 = vst [vmem:[#allocation2 + $0x30] sm:$0xff] %v3334_v2  ;;  %v291_v30 = vld [vmem:[%s3405_s12 + $0xb0] sm:$0xff]  ;;  %v3195_v34 = vld [vmem:[%s4416_s1 + $0x278] sm:$0xff]  ;;  %v3145_v35 = vld [vmem:[%s4416_s1 + $0xe8] sm:$0xff]  ;;  %v320_v40 = vmul.f32 %v3412_v7, %v283_v29 }
  0x15   : > { %3278 = vmatpush.msra.mxu3 %v599_v5  ;;  %608 = vmatpush.msra.mxu0 %v599_v5  ;;  %412 = vst [vmem:[#allocation2 + $0x38] sm:$0xff] %v3334_v2  ;;  %v3146_v31 = vld [vmem:[%s4416_s1 + $0xf0] sm:$0xff]  ;;  %v3160_v36 = vld [vmem:[%s4416_s1 + $0x160] sm:$0xff]  ;;  %v276_v39 = vld [vmem:[%s3405_s12 + $0x38] sm:$0xff]  ;;  %v328_v42 = vmul.f32 %v3412_v7, %v291_v30 }
  0x16   : > { %3279 = vmatpush.msra.mxu1 %v598_v9  ;;  %3280 = vmatpush.msra.mxu2 %v598_v9  ;;  %413 = vst [vmem:[#allocation2 + $0x40] sm:$0x3] %v3334_v2  ;;  %v3176_v37 = vld [vmem:[%s4416_s1 + $0x1e0] sm:$0xff]  ;;  %v3194_v38 = vld [vmem:[%s4416_s1 + $0x270] sm:$0xff]  ;;  %v284_v41 = vld [vmem:[%s3405_s12 + $0x78] sm:$0xff]  ;;  %v313_v44 = vmul.f32 %v3412_v7, %v276_v39  ;;  %v355_v50 = vadd.f32 %v3417_v8, %v320_v40 }
  0x17   : > { %3281 = vmatpush.msra.mxu3 %v598_v9  ;;  %609 = vmatpush.msra.mxu0 %v598_v9  ;;  %414 = vst [vmem:[#allocation2 + $0x48] sm:$0xff] %v3334_v2  ;;  %v292_v43 = vld [vmem:[%s3405_s12 + $0xb8] sm:$0xff]  ;;  %v277_v45 = vld [vmem:[%s3405_s12 + $0x40] sm:$0xff]  ;;  %v321_v46 = vmul.f32 %v3412_v7, %v284_v41  ;;  %v278_v49 = vld [vmem:[%s3405_s12 + $0x48] sm:$0xff]  ;;  %v363_v55 = vadd.f32 %v3417_v8, %v328_v42 }
  0x18   : > { %3282 = vmatpush.msra.mxu1 %v597_v11  ;;  %3283 = vmatpush.msra.mxu2 %v597_v11  ;;  %415 = vst [vmem:[#allocation2 + $0x50] sm:$0xff] %v3334_v2  ;;  %v285_v47 = vld [vmem:[%s3405_s12 + $0x80] sm:$0xff]  ;;  %v329_v51 = vmul.f32 %v3412_v7, %v292_v43  ;;  %v3159_v53 = vld [vmem:[%s4416_s1 + $0x158] sm:$0xff]  ;;  %v286_v54 = vld [vmem:[%s3405_s12 + $0x88] sm:$0xff]  ;;  %v314_v56 = vmul.f32 %v3412_v7, %v277_v45  ;;  %v387_v5 = vmax.f32 %v355_v50, 0.0 }
  0x19   : > { %3284 = vmatpush.msra.mxu3 %v597_v11  ;;  %610 = vmatpush.msra.mxu0 %v597_v11  ;;  %466 = vst [vmem:[#allocation2 + $0x61] sm:$0xff] %v3436_v14  ;;  %v293_v48 = vld [vmem:[%s3405_s12 + $0xc0] sm:$0xff]  ;;  %v3175_v57 = vld [vmem:[%s4416_s1 + $0x1d8] sm:$0xff]  ;;  %v3193_v58 = vld [vmem:[%s4416_s1 + $0x268] sm:$0xff]  ;;  %v348_v60 = vadd.f32 %v3417_v8, %v313_v44  ;;  %v322_v61 = vmul.f32 %v3412_v7, %v285_v47  ;;  %v395_v11 = vmax.f32 %v363_v55, 0.0 }
  0x1a   : > { %3285 = vmatpush.msra.mxu1 %v596_v13  ;;  %3286 = vmatpush.msra.mxu2 %v596_v13  ;;  %416 = vst [vmem:[#allocation2 + $0x58] sm:$0x3] %v3334_v2  ;;  %v3144_v52 = vld [vmem:[%s4416_s1 + $0xe0] sm:$0xff]  ;;  %v3143_v59 = vld [vmem:[%s4416_s1 + $0xd8] sm:$0xff]  ;;  %v3158_v62 = vld [vmem:[%s4416_s1 + $0x150] sm:$0xff]  ;;  %v356_v1 = vadd.f32 %v3417_v8, %v321_v46  ;;  %v330_v3 = vmul.f32 %v3412_v7, %v293_v48 }
  0x1b   : > { %3287 = vmatpush.msra.mxu3 %v596_v13  ;;  %611 = vmatpush.msra.mxu0 %v596_v13  ;;  %419 = vst [vmem:[#allocation2 + $0x70] sm:$0x3] %v3334_v2  ;;  %v3174_v63 = vld [vmem:[%s4416_s1 + $0x1d0] sm:$0xff]  ;;  %v3192_v0 = vld [vmem:[%s4416_s1 + $0x260] sm:$0xff]  ;;  %v364_v6 = vadd.f32 %v3417_v8, %v329_v51  ;;  %v315_v9 = vmul.f32 %v3412_v7, %v278_v49  ;;  %v294_v10 = vld [vmem:[%s3405_s12 + $0xc8] sm:$0xff] }
  0x1c   : > { %3288 = vmatpush.msra.mxu1 %v595_v15  ;;  %3289 = vmatpush.msra.mxu2 %v595_v15  ;;  %420 = vst [vmem:[#allocation2 + $0x78] sm:$0xff] %v3334_v2  ;;  %v269_v4 = vld [vmem:[%s3405_s12] sm:$0xff]  ;;  %v349_v12 = vadd.f32 %v3417_v8, %v314_v56  ;;  %v323_v13 = vmul.f32 %v3412_v7, %v286_v54  ;;  %v295_v29 = vld [vmem:[%s3405_s12 + $0xd0] sm:$0xff]  ;;  %v280_v45 = vld [vmem:[%s3405_s12 + $0x58] sm:$0xff] }
  0x1d   : > { %3290 = vmatpush.msra.mxu3 %v595_v15  ;;  %612 = vmatpush.msra.mxu0 %v595_v15  ;;  %421 = vst [vmem:[#allocation2 + $0x80] sm:$0xff] %v3334_v2  ;;  %v279_v15 = vld [vmem:[%s3405_s12 + $0x50] sm:$0xff]  ;;  %v3172_v39 = vld [vmem:[%s4416_s1 + $0x1c0] sm:$0xff]  ;;  %v332_v44 = vmul.f32 %v3412_v7, %v295_v29  ;;  %v288_v46 = vld [vmem:[%s3405_s12 + $0x98] sm:$0xff]  ;;  %v317_v50 = vmul.f32 %v3412_v7, %v280_v45 }
  0x1e   : > { %3291 = vmatpush.msra.mxu1 %v594_v16  ;;  %3292 = vmatpush.msra.mxu2 %v594_v16  ;;  %422 = vst [vmem:[#allocation2 + $0x88] sm:$0x3] %v3334_v2  ;;  %v3620_v30 = vmax.f32 %v349_v12, 0.0  ;;  %v3190_v40 = vld [vmem:[%s4416_s1 + $0x250] sm:$0xff]  ;;  %v296_v51 = vld [vmem:[%s3405_s12 + $0xd8] sm:$0xff]  ;;  %v325_v54 = vmul.f32 %v3412_v7, %v288_v46  ;;  %v297_v29 = vld [vmem:[%s3405_s12 + $0xe0] sm:$0xff] }
  0x1f   : > { %3293 = vmatpush.msra.mxu3 %v594_v16  ;;  %613 = vmatpush.msra.mxu0 %v594_v16  ;;  %423 = vst [vmem:[#allocation2 + $0x90] sm:$0xff] %v3334_v2  ;;  %v3602_v16 = vmax.f32 %v348_v60, 0.0  ;;  %v271_v47 = vld [vmem:[%s3405_s12 + $0x10] sm:$0xff]  ;;  %v367_v60 = vadd.f32 %v3417_v8, %v332_v44  ;;  %v3139_v12 = vld [vmem:[%s4416_s1 + $0xb8] sm:$0xff]  ;;  %v3169_v44 = vld [vmem:[%s4416_s1 + $0x1a8] sm:$0xff] }
  0x20   : > { %3294 = vmatpush.msra.mxu1 %v593_v17  ;;  %3295 = vmatpush.msra.mxu2 %v593_v17  ;;  %424 = vst [vmem:[#allocation2 + $0x98] sm:$0xff] %v3334_v2  ;;  %v3479_v23 = vld [vmem:[#allocation2 + $0x60] sm:$0xff]  ;;  %v3187_v45 = vld [vmem:[%s4416_s1 + $0x238] sm:$0xff] }
  0x21   : > { %3296 = vmatpush.msra.mxu3 %v593_v17  ;;  %614 = vmatpush.msra.mxu0 %v593_v17  ;;  %425 = vst [vmem:[#allocation2 + $0xa0] sm:$0x3] %v3334_v2  ;;  %v357_v17 = vadd.f32 %v3417_v8, %v322_v61  ;;  %v333_v61 = vmul.f32 %v3412_v7, %v296_v51 }
  0x22   : > { %3297 = vmatpush.msra.mxu1 %v592_v18  ;;  %3298 = vmatpush.msra.mxu2 %v592_v18  ;;  %426 = vst [vmem:[#allocation2 + $0xa8] sm:$0xff] %v3334_v2 }
  0x23   : > { %3299 = vmatpush.msra.mxu3 %v592_v18  ;;  %427 = vst [vmem:[#allocation2 + $0xb0] sm:$0xff] %v3334_v2  ;;  %615 = vmatpush.msra.mxu0 %v592_v18  ;;  %v306_v18 = vmul.f32 %v3412_v7, %v269_v4 }
  0x24   : > { %3300 = vmatpush.msra.mxu1 %v591_v19  ;;  %3301 = vmatpush.msra.mxu2 %v591_v19  ;;  %428 = vst [vmem:[#allocation2 + $0xb8] sm:$0x3] %v3334_v2 }
  0x25   : > { %3302 = vmatpush.msra.mxu3 %v591_v19  ;;  %429 = vst [vmem:[#allocation2 + $0xc0] sm:$0xff] %v3334_v2  ;;  %616 = vmatpush.msra.mxu0 %v591_v19  ;;  %v287_v19 = vld [vmem:[%s3405_s12 + $0x90] sm:$0xff] }
  0x26   : > { %3303 = vmatpush.msra.mxu1 %v590_v20  ;;  %3304 = vmatpush.msra.mxu2 %v590_v20  ;;  %430 = vst [vmem:[#allocation2 + $0xc8] sm:$0xff] %v3334_v2 }
  0x27   : > { %3305 = vmatpush.msra.mxu3 %v590_v20  ;;  %431 = vst [vmem:[#allocation2 + $0xd0] sm:$0x3] %v3334_v2  ;;  %617 = vmatpush.msra.mxu0 %v590_v20  ;;  %v388_v20 = vmax.f32 %v356_v1, 0.0  ;;  %v3155_v1 = vld [vmem:[%s4416_s1 + $0x138] sm:$0xff] }
  0x28   : > { %3306 = vmatpush.msra.mxu1 %v589_v21  ;;  %3307 = vmatpush.msra.mxu2 %v589_v21  ;;  %432 = vst [vmem:[#allocation2 + $0xd8] sm:$0xff] %v3334_v2 }
  0x29   : > { %3308 = vmatpush.msra.mxu3 %v589_v21  ;;  %433 = vst [vmem:[#allocation2 + $0xe0] sm:$0xff] %v3334_v2  ;;  %618 = vmatpush.msra.mxu0 %v589_v21  ;;  %v365_v21 = vadd.f32 %v3417_v8, %v330_v3  ;;  %v352_v3 = vadd.f32 %v3417_v8, %v317_v50  ;;  %v3152_v50 = vld [vmem:[%s4416_s1 + $0x120] sm:$0xff] }
  0x2a   : > { %3309 = vmatpush.msra.mxu1 %v588_v22  ;;  %3310 = vmatpush.msra.mxu2 %v588_v22  ;;  %434 = vst [vmem:[#allocation2 + $0xe8] sm:$0x3] %v3334_v2 }
  0x2b   : > { %644 = vmatmul.f32.vlgmr.msra.gmra.mxu1 %v3479_v23  ;;  %435 = vst [vmem:[#allocation2 + $0xf0] sm:$0xff] %v3334_v2  ;;  %3311 = vmatpush.msra.mxu3 %v588_v22  ;;  %v397_v42 = vmax.f32 %v365_v21, 0.0  ;;  %v3707_v21 = vmax.f32 %v352_v3, 0.0 }
  0x2c   : > { %436 = vst [vmem:[#allocation2 + $0xf8] sm:$0xff] %v3334_v2  ;;  %1120 = vmatpush.msrb.mxu2 %v3163_v24  ;;  %619 = vmatpush.msra.mxu0 %v588_v22  ;;  %v331_v22 = vmul.f32 %v3412_v7, %v294_v10  ;;  %v270_v24 = vld [vmem:[%s3405_s12 + $0x8] sm:$0xff]  ;;  %v360_v10 = vadd.f32 %v3417_v8, %v325_v54  ;;  %v3186_v54 = vld [vmem:[%s4416_s1 + $0x230] sm:$0xff] }
  0x2d   : > { %437 = vst [vmem:[#allocation2 + $0x100] sm:$0x3] %v3334_v2  ;;  %1378 = vmatpush.msrb.mxu3 %v3179_v25  ;;  %862 = vmatpush.msrb.mxu1 %v3147_v26  ;;  %v396_v25 = vmax.f32 %v364_v6, 0.0  ;;  %v350_v26 = vadd.f32 %v3417_v8, %v315_v9  ;;  %v307_v41 = vmul.f32 %v3412_v7, %v270_v24  ;;  %v3171_v6 = vld [vmem:[%s4416_s1 + $0x1b8] sm:$0xff]  ;;  %v3189_v9 = vld [vmem:[%s4416_s1 + $0x248] sm:$0xff]  ;;  %v289_v24 = vld [vmem:[%s3405_s12 + $0xa0] sm:$0xff] }
  0x2e   : > { %438 = vst [vmem:[#allocation2 + $0x108] sm:$0xff] %v3334_v2  ;;  %1121 = vmatpush.msrb.mxu2 %v3162_v27  ;;  %620 = vmatmul.f32.vlgmr.msra.gmra.mxu0 %v3334_v2  ;;  %v3142_v27 = vld [vmem:[%s4416_s1 + $0xd0] sm:$0xff]  ;;  %v366_v43 = vadd.f32 %v3417_v8, %v331_v22  ;;  %v281_v22 = vld [vmem:[%s3405_s12 + $0x60] sm:$0xff] }
  0x2f   : > { %439 = vst [vmem:[#allocation2 + $0x110] sm:$0xff] %v3334_v2  ;;  %1379 = vmatpush.msrb.mxu3 %v3178_v28  ;;  %863 = vmatpush.msrb.mxu1 %v3146_v31  ;;  %v3157_v28 = vld [vmem:[%s4416_s1 + $0x148] sm:$0xff]  ;;  %v358_v31 = vadd.f32 %v3417_v8, %v323_v13  ;;  %v3650_v48 = vmax.f32 %v350_v26, 0.0  ;;  %v342_v56 = vadd.f32 %v3417_v8, %v307_v41  ;;  %v3154_v13 = vld [vmem:[%s4416_s1 + $0x130] sm:$0xff]  ;;  %v3712_v26 = vmax.f32 %v360_v10, 0.0 }
  0x30   : > { %440 = vst [vmem:[#allocation2 + $0x118] sm:$0x3] %v3334_v2  ;;  %1122 = vmatpush.msrb.mxu2 %v3161_v32  ;;  %1636 = vmatpush.msrb.mxu0 %v3195_v34  ;;  %v3173_v32 = vld [vmem:[%s4416_s1 + $0x1c8] sm:$0xff] }
  0x31   : > { %441 = vst [vmem:[#allocation2 + $0x120] sm:$0xff] %v3334_v2  ;;  %1380 = vmatpush.msrb.mxu3 %v3177_v33  ;;  %864 = vmatpush.msrb.mxu1 %v3145_v35  ;;  %v3191_v33 = vld [vmem:[%s4416_s1 + $0x258] sm:$0xff]  ;;  %v3141_v34 = vld [vmem:[%s4416_s1 + $0xc8] sm:$0xff]  ;;  %v324_v35 = vmul.f32 %v3412_v7, %v287_v19  ;;  %v3188_v19 = vld [vmem:[%s4416_s1 + $0x240] sm:$0xff] }
  0x32   : > { %442 = vst [vmem:[#allocation2 + $0x128] sm:$0xff] %v3334_v2  ;;  %1123 = vmatpush.msrb.mxu2 %v3160_v36  ;;  %1637 = vmatpush.msrb.mxu0 %v3194_v38  ;;  %v389_v36 = vmax.f32 %v357_v17, 0.0  ;;  %v3156_v38 = vld [vmem:[%s4416_s1 + $0x140] sm:$0xff]  ;;  %v399_v17 = vmax.f32 %v367_v60, 0.0 }
  0x33   : > { %443 = vst [vmem:[#allocation2 + $0x130] sm:$0x3] %v3334_v2  ;;  %1381 = vmatpush.msrb.mxu3 %v3176_v37  ;;  %865 = vmatpush.msrb.mxu1 %v3144_v52  ;;  %v341_v37 = vadd.f32 %v3417_v8, %v306_v18  ;;  %v3656_v52 = vmax.f32 %v358_v31, 0.0  ;;  %v3170_v18 = vld [vmem:[%s4416_s1 + $0x1b0] sm:$0xff] }
  0x34   : > { %444 = vst [vmem:[#allocation2 + $0x138] sm:$0xff] %v3334_v2  ;;  %1124 = vmatpush.msrb.mxu2 %v3159_v53  ;;  %1638 = vmatpush.msrb.mxu0 %v3193_v58  ;;  %v359_v53 = vadd.f32 %v3417_v8, %v324_v35 }
  0x35   : > { %445 = vst [vmem:[#allocation2 + $0x140] sm:$0xff] %v3334_v2  ;;  %1382 = vmatpush.msrb.mxu3 %v3175_v57  ;;  %866 = vmatpush.msrb.mxu1 %v3143_v59  ;;  %v3660_v55 = vmax.f32 %v341_v37, 0.0  ;;  %v308_v57 = vmul.f32 %v3412_v7, %v271_v47  ;;  %v398_v59 = vmax.f32 %v366_v43, 0.0 }
  0x36   : > { %446 = vst [vmem:[#allocation2 + $0x148] sm:$0x3] %v3334_v2  ;;  %623 = vmatmul.f32.gmra.mxu0 %v3334_v2  ;;  %1125 = vmatpush.msrb.mxu2 %v3158_v62 }
  0x37   : > { %447 = vst [vmem:[#allocation2 + $0x150] sm:$0xff] %v3334_v2  ;;  %1383 = vmatpush.msrb.mxu3 %v3174_v63  ;;  %1639 = vmatpush.msrb.mxu0 %v3192_v0  ;;  %v3140_v0 = vld [vmem:[%s4416_s1 + $0xc0] sm:$0xff] }
  0x38   : > { %448 = vst [vmem:[#allocation2 + $0x158] sm:$0xff] %v3334_v2  ;;  %867 = vmatpush.msrb.mxu1 %v3142_v27  ;;  %1126 = vmatpush.msrb.mxu2 %v3157_v28  ;;  %v318_v27 = vmul.f32 %v3412_v7, %v281_v22  ;;  %v326_v28 = vmul.f32 %v3412_v7, %v289_v24  ;;  %v3185_v22 = vld [vmem:[%s4416_s1 + $0x228] sm:$0xff] }
  0x39   : > { %449 = vst [vmem:[#allocation2 + $0x160] sm:$0x3] %v3334_v2  ;;  %1384 = vmatpush.msrb.mxu3 %v3173_v32  ;;  %1640 = vmatpush.msrb.mxu0 %v3191_v33 }
  0x3a   : > { %450 = vst [vmem:[#allocation2 + $0x168] sm:$0xff] %v3334_v2  ;;  %868 = vmatpush.msrb.mxu1 %v3141_v34  ;;  %1127 = vmatpush.msrb.mxu2 %v3156_v38  ;;  %v334_v34 = vmul.f32 %v3412_v7, %v297_v29  ;;  %v353_v37 = vadd.f32 %v3417_v8, %v318_v27  ;;  %v3135_v27 = vld [vmem:[%s4416_s1 + $0x98] sm:$0xff] }
  0x3b   : > { %451 = vst [vmem:[#allocation2 + $0x170] sm:$0xff] %v3334_v2  ;;  %1385 = vmatpush.msrb.mxu3 %v3172_v39  ;;  %1641 = vmatpush.msrb.mxu0 %v3190_v40  ;;  %v361_v38 = vadd.f32 %v3417_v8, %v326_v28  ;;  %v3138_v39 = vld [vmem:[%s4416_s1 + $0xb0] sm:$0xff]  ;;  %v3153_v40 = vld [vmem:[%s4416_s1 + $0x128] sm:$0xff] }
  0x3c   : > { %452 = vst [vmem:[#allocation2 + $0x178] sm:$0x3] %v3334_v2  ;;  %869 = vmatpush.msrb.mxu1 %v3140_v0  ;;  %1128 = vmatpush.msrb.mxu2 %v3155_v1  ;;  %v3745_v46 = vmax.f32 %v353_v37, 0.0  ;;  %v298_v0 = vld [vmem:[%s3405_s12 + $0xe8] sm:$0xff]  ;;  %v3150_v28 = vld [vmem:[%s4416_s1 + $0x110] sm:$0xff] }
  0x3d   : > { %453 = vst [vmem:[#allocation2 + $0x180] sm:$0xff] %v3334_v2  ;;  %1386 = vmatpush.msrb.mxu3 %v3171_v6  ;;  %1642 = vmatpush.msrb.mxu0 %v3189_v9  ;;  %v3747_v47 = vmax.f32 %v361_v38, 0.0  ;;  %v335_v6 = vmul.f32 %v3412_v7, %v298_v0  ;;  %v3181_v0 = vld [vmem:[%s4416_s1 + $0x208] sm:$0xff] }
  0x3e   : > { %454 = vst [vmem:[#allocation2 + $0x188] sm:$0xff] %v3334_v2  ;;  %870 = vmatpush.msrb.mxu1 %v3139_v12  ;;  %1129 = vmatpush.msrb.mxu2 %v3154_v13 }
  0x3f   : > { %455 = vst [vmem:[#allocation2 + $0x190] sm:$0x3] %v3334_v2  ;;  %1387 = vmatpush.msrb.mxu3 %v3170_v18  ;;  %1643 = vmatpush.msrb.mxu0 %v3188_v19  ;;  %v370_v19 = vadd.f32 %v3417_v8, %v335_v6  ;;  %v3180_v6 = vld [vmem:[%s4416_s1 + $0x200] sm:$0xff] }
  0x40   : > { %456 = vst [vmem:[#allocation2 + $0x198] sm:$0xff] %v3334_v2  ;;  %871 = vmatpush.msrb.mxu1 %v3138_v39  ;;  %1130 = vmatpush.msrb.mxu2 %v3153_v40 }
  0x41   : > { %457 = vst [vmem:[#allocation2 + $0x1a0] sm:$0xff] %v3334_v2  ;;  %1388 = vmatpush.msrb.mxu3 %v3169_v44  ;;  %1644 = vmatpush.msrb.mxu0 %v3187_v45  ;;  %v402_v29 = vmax.f32 %v370_v19, 0.0  ;;  %v3149_v44 = vld [vmem:[%s4416_s1 + $0x108] sm:$0xff] }
  0x42   : > { %458 = vst [vmem:[#allocation2 + $0x1a8] sm:$0x3] %v3334_v2  ;;  %v316_v2 = vmul.f32 %v3412_v7, %v279_v15  ;;  %v343_v15 = vadd.f32 %v3417_v8, %v308_v57  ;;  %v282_v57 = vld [vmem:[%s3405_s12 + $0x68] sm:$0xff]  ;;  %1131 = vmatpush.msrb.mxu2 %v3152_v50  ;;  %v3148_v50 = vld [vmem:[%s4416_s1 + $0x100] sm:$0xff] }
  0x43   : > { %474 = vst [vmem:[#allocation2 + $0xc1] sm:$0xff] %v387_v5  ;;  %v3679_v5 = vmax.f32 %v359_v53, 0.0  ;;  %v3168_v53 = vld [vmem:[%s4416_s1 + $0x1a0] sm:$0xff]  ;;  %v319_v60 = vmul.f32 %v3412_v7, %v282_v57  ;;  %1645 = vmatpush.msrb.mxu0 %v3186_v54  ;;  %v3133_v45 = vld [vmem:[%s4416_s1 + $0x88] sm:$0xff]  ;;  %v3182_v54 = vld [vmem:[%s4416_s1 + $0x210] sm:$0xff] }
  0x44   : > { %482 = vst [vmem:[#allocation2 + $0x121] sm:$0xff] %v395_v11  ;;  %v351_v49 = vadd.f32 %v3417_v8, %v316_v2  ;;  %v3690_v11 = vmax.f32 %v342_v56, 0.0  ;;  %v272_v2 = vld [vmem:[%s3405_s12 + $0x18] sm:$0xff]  ;;  %v3719_v32 = vmax.f32 %v343_v15, 0.0  ;;  %1389 = vmatpush.msrb.mxu3 %v3168_v53  ;;  %v3136_v15 = vld [vmem:[%s4416_s1 + $0xa0] sm:$0xff] }
  0x45   : > { %467 = vst [vmem:[#allocation2 + $0x69] sm:$0xff] %v3602_v16  ;;  %v309_v33 = vmul.f32 %v3412_v7, %v272_v2  ;;  %v354_v12 = vadd.f32 %v3417_v8, %v319_v60  ;;  %1646 = vmatpush.msrb.mxu0 %v3185_v22  ;;  %v3164_v53 = vld [vmem:[%s4416_s1 + $0x180] sm:$0xff] }
  0x46   : > { %475 = vst [vmem:[#allocation2 + $0xc9] sm:$0xff] %v388_v20  ;;  %v3667_v63 = vmax.f32 %v351_v49, 0.0  ;;  %v368_v20 = vadd.f32 %v3417_v8, %v333_v61  ;;  %v3137_v49 = vld [vmem:[%s4416_s1 + $0xa8] sm:$0xff] }
  0x47   : > { %483 = vst [vmem:[#allocation2 + $0x129] sm:$0xff] %v396_v25  ;;  %v344_v41 = vadd.f32 %v3417_v8, %v309_v33  ;;  %872 = vmatpush.msrb.mxu1 %v3137_v49  ;;  %v3800_v24 = vmax.f32 %v354_v12, 0.0  ;;  %v3184_v33 = vld [vmem:[%s4416_s1 + $0x220] sm:$0xff] }
  0x48   : > { %468 = vst [vmem:[#allocation2 + $0x79] sm:$0xff] %v3620_v30  ;;  %1647 = vmatpush.msrb.mxu0 %v3184_v33 }
  0x49   : > { %476 = vst [vmem:[#allocation2 + $0xd9] sm:$0xff] %v389_v36  ;;  %v400_v36 = vmax.f32 %v368_v20, 0.0  ;;  %v3758_v51 = vmax.f32 %v344_v41, 0.0  ;;  %873 = vmatpush.msrb.mxu1 %v3136_v15  ;;  %v3167_v20 = vld [vmem:[%s4416_s1 + $0x198] sm:$0xff] }
  0x4a   : > { %v540_v58 = vld [vmem:[#allocation2 + $0xc0] sm:$0xff]  ;;  %484 = vst [vmem:[#allocation2 + $0x139] sm:$0xff] %v397_v42  ;;  %v369_v42 = vadd.f32 %v3417_v8, %v334_v34  ;;  %1390 = vmatpush.msrb.mxu3 %v3167_v20  ;;  %v274_v34 = vld [vmem:[%s3405_s12 + $0x28] sm:$0xff] }
  0x4b   : > { %668 = vmatmul.f32.vlgmr.msra.gmra.mxu2 %v540_v58  ;;  %v548_v62 = vld [vmem:[#allocation2 + $0x120] sm:$0xff]  ;;  %469 = vst [vmem:[#allocation2 + $0x81] sm:$0xff] %v3650_v48  ;;  %v290_v58 = vld [vmem:[%s3405_s12 + $0xa8] sm:$0xff]  ;;  %874 = vmatpush.msrb.mxu1 %v3135_v27  ;;  %v311_v37 = vmul.f32 %v3412_v7, %v274_v34 }
  0x4c   : > { %692 = vmatmul.f32.vlgmr.msra.gmra.mxu3 %v548_v62  ;;  %v3676_v4 = vld [vmem:[#allocation2 + $0x68] sm:$0xff]  ;;  %477 = vst [vmem:[#allocation2 + $0xe1] sm:$0xff] %v3656_v52  ;;  %v401_v56 = vmax.f32 %v369_v42, 0.0  ;;  %v327_v61 = vmul.f32 %v3412_v7, %v290_v58  ;;  %v273_v62 = vld [vmem:[%s3405_s12 + $0x20] sm:$0xff]  ;;  %v3134_v42 = vld [vmem:[%s4416_s1 + $0x90] sm:$0xff] }
  0x4d   : > { %647 = vmatmul.f32.gmra.mxu1 %v3676_v4  ;;  %460 = vst [vmem:[#allocation2 + $0x19] sm:$0xff] %v3660_v55  ;;  %v541_v25 = vld [vmem:[#allocation2 + $0xc8] sm:$0xff]  ;;  %v310_v3 = vmul.f32 %v3412_v7, %v273_v62  ;;  %v346_v41 = vadd.f32 %v3417_v8, %v311_v37  ;;  %v3227_v62 = vld [vmem:[%s4416_s1 + $0x378] sm:$0xff] }
  0x4e   : > { %485 = vst [vmem:[#allocation2 + $0x141] sm:$0xff] %v398_v59  ;;  %v549_v31 = vld [vmem:[#allocation2 + $0x128] sm:$0xff]  ;;  %v362_v13 = vadd.f32 %v3417_v8, %v327_v61  ;;  %875 = vmatpush.msrb.mxu1 %v3134_v42 }
  0x4f   : > { %470 = vst [vmem:[#allocation2 + $0x91] sm:$0xff] %v3667_v63  ;;  %v3723_v35 = vld [vmem:[#allocation2 + $0x78] sm:$0xff]  ;;  %v345_v18 = vadd.f32 %v3417_v8, %v310_v3  ;;  %v3165_v7 = vld [vmem:[%s4416_s1 + $0x188] sm:$0xff]  ;;  %v3848_v49 = vmax.f32 %v346_v41, 0.0 }
  0x50   : > { %478 = vst [vmem:[#allocation2 + $0xf1] sm:$0xff] %v3679_v5  ;;  %v3769_v59 = vld [vmem:[#allocation2 + $0xd8] sm:$0xff]  ;;  %876 = vmatpush.msrb.mxu1 %v3133_v45  ;;  %v781_v37 = vld [vmem:[#allocation2 + $0x1] sm:$0xff]  ;;  %v782_v42 = vld [vmem:[#allocation2 + $0x9] sm:$0xff] }
  0x51   : > { %461 = vst [vmem:[#allocation2 + $0x21] sm:$0xff] %v3690_v11  ;;  %v550_v1 = vld [vmem:[#allocation2 + $0x138] sm:$0xff]  ;;  %v3812_v2 = vmax.f32 %v345_v18, 0.0  ;;  %v1039_v41 = vld [vmem:[#allocation2 + $0x2] sm:$0xff]  ;;  %v1040_v45 = vld [vmem:[#allocation2 + $0xa] sm:$0xff] }
  0x52   : > { %486 = vst [vmem:[#allocation2 + $0x151] sm:$0xff] %v399_v17  ;;  %v3779_v9 = vld [vmem:[#allocation2 + $0x80] sm:$0xff]  ;;  %v3151_v17 = vld [vmem:[%s4416_s1 + $0x118] sm:$0xff] }
  0x53   : > { %671 = vmatmul.f32.gmra.mxu2 %v541_v25  ;;  %471 = vst [vmem:[#allocation2 + $0x99] sm:$0xff] %v3707_v21  ;;  %v3802_v25 = vmax.f32 %v362_v13, 0.0  ;;  %v3183_v8 = vld [vmem:[%s4416_s1 + $0x218] sm:$0xff] }
  0x54   : > { %695 = vmatmul.f32.gmra.mxu3 %v549_v31  ;;  %v3736_v43 = vld [vmem:[#allocation2 + $0x18] sm:$0xff]  ;;  %479 = vst [vmem:[#allocation2 + $0xf9] sm:$0xff] %v3712_v26  ;;  %1132 = vmatpush.msrb.mxu2 %v3151_v17  ;;  %v3166_v31 = vld [vmem:[%s4416_s1 + $0x190] sm:$0xff] }
  0x55   : > { %650 = vmatmul.f32.gmra.mxu1 %v3723_v35  ;;  %626 = vmatmul.f32.gmra.mxu0 %v3736_v43  ;;  %462 = vst [vmem:[#allocation2 + $0x31] sm:$0xff] %v3719_v32  ;;  %v551_v38 = vld [vmem:[#allocation2 + $0x140] sm:$0xff]  ;;  %v3211_v3 = vld [vmem:[%s4416_s1 + $0x2f8] sm:$0xff] }
  0x56   : > { %487 = vst [vmem:[#allocation2 + $0x159] sm:$0xff] %v400_v36  ;;  %v3823_v36 = vld [vmem:[#allocation2 + $0xe0] sm:$0xff]  ;;  %1133 = vmatpush.msrb.mxu2 %v3150_v28  ;;  %1391 = vmatpush.msrb.mxu3 %v3166_v31  ;;  %v3827_v39 = vld [vmem:[#allocation2 + $0x90] sm:$0xff]  ;;  %v3259_v18 = vld [vmem:[%s4416_s1 + $0x478] sm:$0xff] }
  0x57   : > { %472 = vst [vmem:[#allocation2 + $0xa9] sm:$0xff] %v3745_v46  ;;  %1648 = vmatpush.msrb.mxu0 %v3183_v8  ;;  %v3865_v57 = vld [vmem:[#allocation2 + $0xf0] sm:$0xff]  ;;  %v3209_v8 = vld [vmem:[%s4416_s1 + $0x2e8] sm:$0xff] }
  0x58   : > { %480 = vst [vmem:[#allocation2 + $0x109] sm:$0xff] %v3747_v47  ;;  %v3781_v10 = vld [vmem:[#allocation2 + $0x20] sm:$0xff]  ;;  %1134 = vmatpush.msrb.mxu2 %v3149_v44  ;;  %1392 = vmatpush.msrb.mxu3 %v3165_v7  ;;  %v3226_v28 = vld [vmem:[%s4416_s1 + $0x370] sm:$0xff]  ;;  %v3225_v44 = vld [vmem:[%s4416_s1 + $0x368] sm:$0xff] }
  0x59   : > { %463 = vst [vmem:[#allocation2 + $0x39] sm:$0xff] %v3758_v51  ;;  %v552_v58 = vld [vmem:[#allocation2 + $0x150] sm:$0xff]  ;;  %1649 = vmatpush.msrb.mxu0 %v3182_v54  ;;  %v3241_v7 = vld [vmem:[%s4416_s1 + $0x3e8] sm:$0xff] }
  0x5a   : > { %488 = vst [vmem:[#allocation2 + $0x169] sm:$0xff] %v401_v56  ;;  %v3132_v56 = vld [vmem:[%s4416_s1 + $0x80] sm:$0xff]  ;;  %1135 = vmatpush.msrb.mxu2 %v3148_v50  ;;  %1393 = vmatpush.msrb.mxu3 %v3164_v53  ;;  %v3867_v60 = vld [vmem:[#allocation2 + $0x98] sm:$0xff]  ;;  %v3210_v31 = vld [vmem:[%s4416_s1 + $0x2f0] sm:$0xff] }
  0x5b   : > { %674 = vmatmul.f32.gmra.mxu2 %v3769_v59  ;;  %473 = vst [vmem:[#allocation2 + $0xb1] sm:$0xff] %v3800_v24  ;;  %877 = vmatpush.msrb.mxu1 %v3132_v56  ;;  %v3889_v12 = vld [vmem:[#allocation2 + $0xf8] sm:$0xff]  ;;  %v3224_v53 = vld [vmem:[%s4416_s1 + $0x360] sm:$0xff] }
  0x5c   : > { %698 = vmatmul.f32.gmra.mxu3 %v550_v1  ;;  %481 = vst [vmem:[#allocation2 + $0x111] sm:$0xff] %v3802_v25  ;;  %v3829_v40 = vld [vmem:[#allocation2 + $0x30] sm:$0xff]  ;;  %2153 = vmatpush.msra.mxu2 %v3227_v62  ;;  %v3243_v1 = vld [vmem:[%s4416_s1 + $0x3f8] sm:$0xff]  ;;  %v1042_v54 = vld [vmem:[#allocation2 + $0x22] sm:$0xff] }
  0x5d   : > { %653 = vmatmul.f32.gmra.mxu1 %v3779_v9  ;;  %629 = vmatmul.f32.gmra.mxu0 %v3781_v10  ;;  %464 = vst [vmem:[#allocation2 + $0x49] sm:$0xff] %v3812_v2  ;;  %v553_v13 = vld [vmem:[#allocation2 + $0x158] sm:$0xff] }
  0x5e   : > { %489 = vst [vmem:[#allocation2 + $0x171] sm:$0xff] %v402_v29  ;;  %1650 = vmatpush.msrb.mxu0 %v3181_v0  ;;  %2411 = vmatpush.msra.mxu3 %v3243_v1  ;;  %v3891_v15 = vld [vmem:[#allocation2 + $0xa8] sm:$0xff]  ;;  %v3242_v29 = vld [vmem:[%s4416_s1 + $0x3f0] sm:$0xff]  ;;  %v1041_v50 = vld [vmem:[#allocation2 + $0x1a] sm:$0xff] }
  0x5f   : > { %465 = vst [vmem:[#allocation2 + $0x51] sm:$0xff] %v3848_v49  ;;  %1894 = vmatpush.msra.mxu1 %v3211_v3  ;;  %v3901_v19 = vld [vmem:[#allocation2 + $0x108] sm:$0xff]  ;;  %2154 = vmatpush.msra.mxu2 %v3226_v28  ;;  %v3255_v62 = vld [vmem:[%s4416_s1 + $0x458] sm:$0xff]  ;;  %v3222_v0 = vld [vmem:[%s4416_s1 + $0x350] sm:$0xff] }
  0x60   : > { %v3869_v61 = vld [vmem:[#allocation2 + $0x38] sm:$0xff]  ;;  %1651 = vmatpush.msrb.mxu0 %v3180_v6  ;;  %2412 = vmatpush.msra.mxu3 %v3242_v29  ;;  %v3238_v1 = vld [vmem:[%s4416_s1 + $0x3d0] sm:$0xff] }
  0x61   : > { %v554_v20 = vld [vmem:[#allocation2 + $0x168] sm:$0xff]  ;;  %1895 = vmatpush.msra.mxu1 %v3210_v31  ;;  %2155 = vmatpush.msra.mxu2 %v3225_v44  ;;  %v1043_v56 = vld [vmem:[#allocation2 + $0x32] sm:$0xff] }
  0x62   : > { %2669 = vmatpush.msra.mxu0 %v3259_v18  ;;  %v3903_v22 = vld [vmem:[#allocation2 + $0xb0] sm:$0xff]  ;;  %2413 = vmatpush.msra.mxu3 %v3241_v7  ;;  %v3204_v7 = vld [vmem:[%s4416_s1 + $0x2c0] sm:$0xff] }
  0x63   : > { %677 = vmatmul.f32.gmra.mxu2 %v3823_v36  ;;  %v3919_v33 = vld [vmem:[#allocation2 + $0x110] sm:$0xff]  ;;  %1896 = vmatpush.msra.mxu1 %v3209_v8 }
  0x64   : > { %701 = vmatmul.f32.gmra.mxu3 %v551_v38  ;;  %v3893_v17 = vld [vmem:[#allocation2 + $0x48] sm:$0xff]  ;;  %v3258_v38 = vld [vmem:[%s4416_s1 + $0x470] sm:$0xff]  ;;  %2156 = vmatpush.msra.mxu2 %v3224_v53 }
  0x65   : > { %656 = vmatmul.f32.gmra.mxu1 %v3827_v39  ;;  %632 = vmatmul.f32.gmra.mxu0 %v3829_v40  ;;  %v555_v34 = vld [vmem:[#allocation2 + $0x170] sm:$0xff] }
  0x66   : > { %v3905_v27 = vld [vmem:[#allocation2 + $0x50] sm:$0xff]  ;;  %2670 = vmatpush.msra.mxu0 %v3258_v38  ;;  %v1049_v38 = vld [vmem:[#allocation2 + $0x7a] sm:$0xff] }
  0x67   : > { %v3206_v3 = vld [vmem:[%s4416_s1 + $0x2d0] sm:$0xff] }
  0x68   : > { %v1046_v6 = vld [vmem:[#allocation2 + $0x52] sm:$0xff] }
  0x6b   : > { %680 = vmatmul.f32.gmra.mxu2 %v3865_v57 }
  0x6c   : > { %704 = vmatmul.f32.gmra.mxu3 %v552_v58  ;;  %v3239_v58 = vld [vmem:[%s4416_s1 + $0x3d8] sm:$0xff] }
  0x6d   : > { %659 = vmatmul.f32.gmra.mxu1 %v3867_v60  ;;  %635 = vmatmul.f32.gmra.mxu0 %v3869_v61 }
  0x73   : > { %683 = vmatmul.f32.gmra.mxu2 %v3889_v12 }
  0x74   : > { %707 = vmatmul.f32.gmra.mxu3 %v553_v13 }
  0x75   : > { %662 = vmatmul.f32.gmra.mxu1 %v3891_v15  ;;  %638 = vmatmul.f32.gmra.mxu0 %v3893_v17 }
  0x7b   : > { %686 = vmatmul.f32.gmra.mxu2 %v3901_v19 }
  0x7c   : > { %710 = vmatmul.f32.gmra.mxu3 %v554_v20  ;;  %v3221_v20 = vld [vmem:[%s4416_s1 + $0x348] sm:$0xff] }
  0x7d   : > { %665 = vmatmul.f32.gmra.mxu1 %v3903_v22  ;;  %641 = vmatmul.f32.gmra.mxu0 %v3905_v27 }
  0x83   : > { %689 = vmatmul.f32.gmra.mxu2 %v3919_v33 }
  0x84   : > { %713 = vmatmul.f32.gmra.mxu3 %v555_v34 }
  0x85   : > { %878 = vmatmul.f32.vlgmr.msrb.gmra.mxu1 %v781_v37  ;;  %1652 = vmatmul.f32.vlgmr.msrb.gmra.mxu0 %v3660_v55 }
  0x8b   : > { %1136 = vmatmul.f32.vlgmr.msrb.gmra.mxu2 %v1039_v41 }
  0x8c   : > { %1394 = vmatmul.f32.vlgmr.msrb.gmra.mxu3 %v3736_v43  ;;  %v3257_v43 = vld [vmem:[%s4416_s1 + $0x468] sm:$0xff] }
  0x8d   : > { %881 = vmatmul.f32.gmra.mxu1 %v782_v42  ;;  %1655 = vmatmul.f32.gmra.mxu0 %v3690_v11 }
  0x8e   : > { %2671 = vmatpush.msra.mxu0 %v3257_v43 }
  0x93   : > { %1139 = vmatmul.f32.gmra.mxu2 %v1040_v45 }
  0x94   : > { %1397 = vmatmul.f32.gmra.mxu3 %v3781_v10  ;;  %v3240_v10 = vld [vmem:[%s4416_s1 + $0x3e0] sm:$0xff] }
  0x95   : > { %884 = vmatmul.f32.gmra.mxu1 %v3660_v55  ;;  %1658 = vmatmul.f32.gmra.mxu0 %v3719_v32  ;;  %v3208_v55 = vld [vmem:[%s4416_s1 + $0x2e0] sm:$0xff] }
  0x96   : > { %2414 = vmatpush.msra.mxu3 %v3240_v10  ;;  %1897 = vmatpush.msra.mxu1 %v3208_v55  ;;  %v1051_v10 = vld [vmem:[#allocation2 + $0x92] sm:$0xff] }
  0x98   : > { %2415 = vmatpush.msra.mxu3 %v3239_v58  ;;  %v1052_v58 = vld [vmem:[#allocation2 + $0x9a] sm:$0xff] }
  0x9a   : > { %2416 = vmatpush.msra.mxu3 %v3238_v1  ;;  %v1311_v1 = vld [vmem:[#allocation2 + $0xc0] sm:$0xff] }
  0x9b   : > { %1142 = vmatmul.f32.gmra.mxu2 %v1041_v50 }
  0x9c   : > { %1400 = vmatmul.f32.gmra.mxu3 %v3829_v40  ;;  %v3256_v40 = vld [vmem:[%s4416_s1 + $0x460] sm:$0xff] }
  0x9d   : > { %887 = vmatmul.f32.gmra.mxu1 %v3690_v11  ;;  %1661 = vmatmul.f32.gmra.mxu0 %v3758_v51  ;;  %v3223_v11 = vld [vmem:[%s4416_s1 + $0x358] sm:$0xff] }
  0x9e   : > { %2672 = vmatpush.msra.mxu0 %v3256_v40  ;;  %2157 = vmatpush.msra.mxu2 %v3223_v11  ;;  %v3203_v11 = vld [vmem:[%s4416_s1 + $0x2b8] sm:$0xff] }
  0xa0   : > { %2673 = vmatpush.msra.mxu0 %v3255_v62  ;;  %2158 = vmatpush.msra.mxu2 %v3222_v0  ;;  %v1053_v0 = vld [vmem:[#allocation2 + $0xaa] sm:$0xff] }
  0xa2   : > { %2159 = vmatpush.msra.mxu2 %v3221_v20 }
  0xa3   : > { %1145 = vmatmul.f32.gmra.mxu2 %v1042_v54 }
  0xa4   : > { %1403 = vmatmul.f32.gmra.mxu3 %v3869_v61  ;;  %v1044_v61 = vld [vmem:[#allocation2 + $0x3a] sm:$0xff] }
  0xa5   : > { %890 = vmatmul.f32.gmra.mxu1 %v3719_v32  ;;  %1664 = vmatmul.f32.gmra.mxu0 %v3812_v2  ;;  %v3207_v32 = vld [vmem:[%s4416_s1 + $0x2d8] sm:$0xff] }
  0xa6   : > { %1898 = vmatpush.msra.mxu1 %v3207_v32 }
  0xa8   : > { %1899 = vmatpush.msra.mxu1 %v3206_v3  ;;  %v3993_v13 = vpop.f32.mrf.mxu1 }
  0xab   : > { %1148 = vmatmul.f32.gmra.mxu2 %v1043_v56 }
  0xac   : > { %1406 = vmatmul.f32.gmra.mxu3 %v3893_v17 }
  0xad   : > { %893 = vmatmul.f32.gmra.mxu1 %v3758_v51  ;;  %1667 = vmatmul.f32.gmra.mxu0 %v3848_v49  ;;  %v1045_v51 = vld [vmem:[#allocation2 + $0x4a] sm:$0xff] }
  0xb3   : > { %1151 = vmatmul.f32.gmra.mxu2 %v1044_v61  ;;  %v1569_v61 = vld [vmem:[#allocation2 + $0xc1] sm:$0xff] }
  0xb4   : > { %1409 = vmatmul.f32.gmra.mxu3 %v3905_v27  ;;  %v3205_v27 = vld [vmem:[%s4416_s1 + $0x2c8] sm:$0xff] }
  0xb5   : > { %896 = vmatmul.f32.gmra.mxu1 %v3812_v2  ;;  %1670 = vmatmul.f32.gmra.mxu0 %v3436_v14  ;;  %v3988_v2 = vpop.f32.mrf.mxu0 }
  0xb6   : > { %1900 = vmatpush.msra.mxu1 %v3205_v27  ;;  %v1054_v27 = vld [vmem:[#allocation2 + $0xb2] sm:$0xff] }
  0xb8   : > { %1901 = vmatpush.msra.mxu1 %v3204_v7 }
  0xba   : > { %1902 = vmatpush.msra.mxu1 %v3203_v11 }
  0xbb   : > { %1154 = vmatmul.f32.gmra.mxu2 %v1045_v51 }
  0xbc   : > { %1412 = vmatmul.f32.gmra.mxu3 %v3479_v23  ;;  %v3254_v23 = vld [vmem:[%s4416_s1 + $0x450] sm:$0xff] }
  0xbd   : > { %899 = vmatmul.f32.gmra.mxu1 %v3848_v49  ;;  %1673 = vmatmul.f32.gmra.mxu0 %v3602_v16  ;;  %v1047_v49 = vld [vmem:[#allocation2 + $0x62] sm:$0xff]  ;;  %v4001_v17 = vpop.f32.mrf.mxu0 }
  0xbe   : > { %2674 = vmatpush.msra.mxu0 %v3254_v23  ;;  %v1570_v23 = vld [vmem:[#allocation2 + $0xc9] sm:$0xff] }
  0xc3   : > { %1157 = vmatmul.f32.gmra.mxu2 %v1046_v6 }
  0xc4   : > { %1415 = vmatmul.f32.gmra.mxu3 %v3676_v4 }
  0xc5   : > { %902 = vmatmul.f32.gmra.mxu1 %v3436_v14  ;;  %1676 = vmatmul.f32.gmra.mxu0 %v3620_v30  ;;  %v3237_v14 = vld [vmem:[%s4416_s1 + $0x3c8] sm:$0xff] }
  0xc6   : > { %2417 = vmatpush.msra.mxu3 %v3237_v14  ;;  %v3202_v14 = vld [vmem:[%s4416_s1 + $0x2b0] sm:$0xff] }
  0xc7   : > { %1903 = vmatpush.msra.mxu1 %v3202_v14 }
  0xca   : > { %v4003_v18 = vpop.f32.mrf.mxu1 }
  0xcb   : > { %1160 = vmatmul.f32.gmra.mxu2 %v1047_v49 }
  0xcc   : > { %1418 = vmatmul.f32.gmra.mxu3 %v3723_v35  ;;  %v1048_v35 = vld [vmem:[#allocation2 + $0x6a] sm:$0xff] }
  0xcd   : > { %905 = vmatmul.f32.gmra.mxu1 %v3602_v16  ;;  %1679 = vmatmul.f32.gmra.mxu0 %v3650_v48  ;;  %v3253_v16 = vld [vmem:[%s4416_s1 + $0x448] sm:$0xff] }
  0xce   : > { %v4014_v4 = vpop.f32.mrf.mxu2  ;;  %2675 = vmatpush.msra.mxu0 %v3253_v16 }
  0xcf   : > { %v4019_v28 = vpop.f32.mrf.mxu3 }
  0xd2   : > { %v4021_v29 = vpop.f32.mrf.mxu1  ;;  %v4023_v31 = vpop.f32.mrf.mxu0 }
  0xd3   : > { %1163 = vmatmul.f32.gmra.mxu2 %v1048_v35  ;;  %v1312_v35 = vld [vmem:[#allocation2 + $0xc8] sm:$0xff] }
  0xd4   : > { %1421 = vmatmul.f32.gmra.mxu3 %v3779_v9  ;;  %v3220_v9 = vld [vmem:[%s4416_s1 + $0x340] sm:$0xff] }
  0xd5   : > { %908 = vmatmul.f32.gmra.mxu1 %v3620_v30  ;;  %1682 = vmatmul.f32.gmra.mxu0 %v3667_v63  ;;  %v3236_v30 = vld [vmem:[%s4416_s1 + $0x3c0] sm:$0xff] }
  0xd6   : > { %v4031_v34 = vpop.f32.mrf.mxu2  ;;  %2160 = vmatpush.msra.mxu2 %v3220_v9  ;;  %2418 = vmatpush.msra.mxu3 %v3236_v30  ;;  %v1571_v9 = vld [vmem:[#allocation2 + $0xd9] sm:$0xff] }
  0xd7   : > { %v4033_v37 = vpop.f32.mrf.mxu3 }
  0xda   : > { %v4035_v41 = vpop.f32.mrf.mxu1  ;;  %v4037_v42 = vpop.f32.mrf.mxu0 }
  0xdb   : > { %1166 = vmatmul.f32.gmra.mxu2 %v1049_v38 }
  0xdc   : > { %1424 = vmatmul.f32.gmra.mxu3 %v3827_v39  ;;  %v1050_v39 = vld [vmem:[#allocation2 + $0x82] sm:$0xff] }
  0xdd   : > { %911 = vmatmul.f32.gmra.mxu1 %v3650_v48  ;;  %1685 = vmatmul.f32.gmra.mxu0 %v3707_v21  ;;  %v3252_v48 = vld [vmem:[%s4416_s1 + $0x440] sm:$0xff] }
  0xde   : > { %v4048_v44 = vpop.f32.mrf.mxu2  ;;  %2676 = vmatpush.msra.mxu0 %v3252_v48 }
  0xdf   : > { %v4053_v8 = vpop.f32.mrf.mxu3 }
  0xe2   : > { %v4055_v45 = vpop.f32.mrf.mxu1  ;;  %v4057_v43 = vpop.f32.mrf.mxu0 }
  0xe3   : > { %1169 = vmatmul.f32.gmra.mxu2 %v1050_v39  ;;  %v1055_v39 = vld [vmem:[#allocation2 + $0xc2] sm:$0xff] }
  0xe4   : > { %1427 = vmatmul.f32.gmra.mxu3 %v3867_v60  ;;  %v3219_v60 = vld [vmem:[%s4416_s1 + $0x338] sm:$0xff] }
  0xe5   : > { %914 = vmatmul.f32.gmra.mxu1 %v3667_v63  ;;  %1688 = vmatmul.f32.gmra.mxu0 %v3745_v46  ;;  %v3235_v63 = vld [vmem:[%s4416_s1 + $0x3b8] sm:$0xff] }
  0xe6   : > { %v4065_v50 = vpop.f32.mrf.mxu2  ;;  %2161 = vmatpush.msra.mxu2 %v3219_v60  ;;  %2419 = vmatpush.msra.mxu3 %v3235_v63  ;;  %v3217_v60 = vld [vmem:[%s4416_s1 + $0x328] sm:$0xff] }
  0xe7   : > { %v4067_v53 = vpop.f32.mrf.mxu3  ;;  %v3233_v63 = vld [vmem:[%s4416_s1 + $0x3a8] sm:$0xff] }
  0xea   : > { %v4069_v55 = vpop.f32.mrf.mxu1  ;;  %v4071_v54 = vpop.f32.mrf.mxu0 }
  0xeb   : > { %1172 = vmatmul.f32.gmra.mxu2 %v1051_v10 }
  0xec   : > { %1430 = vmatmul.f32.gmra.mxu3 %v3891_v15 }
  0xed   : > { %917 = vmatmul.f32.gmra.mxu1 %v3707_v21  ;;  %1691 = vmatmul.f32.gmra.mxu0 %v3800_v24  ;;  %v3251_v21 = vld [vmem:[%s4416_s1 + $0x438] sm:$0xff] }
  0xee   : > { %v4082_v40 = vpop.f32.mrf.mxu2  ;;  %2677 = vmatpush.msra.mxu0 %v3251_v21 }
  0xef   : > { %v4084_v56 = vpop.f32.mrf.mxu3 }
  0xf2   : > { %v4089_v15 = vpop.f32.mrf.mxu1  ;;  %v4091_v32 = vpop.f32.mrf.mxu0 }
  0xf3   : > { %1175 = vmatmul.f32.gmra.mxu2 %v1052_v58 }
  0xf4   : > { %1433 = vmatmul.f32.gmra.mxu3 %v3903_v22  ;;  %v3218_v22 = vld [vmem:[%s4416_s1 + $0x330] sm:$0xff] }
  0xf5   : > { %920 = vmatmul.f32.gmra.mxu1 %v3745_v46  ;;  %1694 = vmatmul.f32.gmra.mxu0 %v1569_v61  ;;  %v3234_v46 = vld [vmem:[%s4416_s1 + $0x3b0] sm:$0xff] }
  0xf6   : > { %v4098_v62 = vpop.f32.mrf.mxu2  ;;  %2162 = vmatpush.msra.mxu2 %v3218_v22  ;;  %2420 = vmatpush.msra.mxu3 %v3234_v46 }
  0xf7   : > { %v4100_v51 = vpop.f32.mrf.mxu3 }
  0xf8   : > { %2163 = vmatpush.msra.mxu2 %v3217_v60  ;;  %2421 = vmatpush.msra.mxu3 %v3233_v63 }
  0xfa   : > { %v4102_v3 = vpop.f32.mrf.mxu1  ;;  %v4104_v6 = vpop.f32.mrf.mxu0 }
  0xfb   : > { %1178 = vmatmul.f32.gmra.mxu2 %v1053_v0  ;;  %v3201_v0 = vld [vmem:[%s4416_s1 + $0x2a8] sm:$0xff] }
  0xfc   : > { %1436 = vmatmul.f32.gmra.mxu3 %v1311_v1  ;;  %v1056_v1 = vld [vmem:[#allocation2 + $0xca] sm:$0xff]  ;;  %1904 = vmatpush.msra.mxu1 %v3201_v0 }
  0xfd   : > { %923 = vmatmul.f32.gmra.mxu1 %v3800_v24  ;;  %1697 = vmatmul.f32.gmra.mxu0 %v1570_v23  ;;  %v3250_v24 = vld [vmem:[%s4416_s1 + $0x430] sm:$0xff] }
  0xfe   : > { %v4113_v49 = vpop.f32.mrf.mxu2  ;;  %2678 = vmatpush.msra.mxu0 %v3250_v24  ;;  %v1057_v24 = vld [vmem:[#allocation2 + $0xda] sm:$0xff] }
  0xff   : > { %v4115_v20 = vpop.f32.mrf.mxu3 }
 0x102   : > { %v879_v16 = vpop.f32.mrf.mxu1  ;;  %v1653_v38 = vpop.f32.mrf.mxu0 }
 0x103   : > { %1181 = vmatmul.f32.gmra.mxu2 %v1054_v27  ;;  %v975_v11 = vadd.f32 %v879_v16, %v3988_v2  ;;  %v3249_v2 = vld [vmem:[%s4416_s1 + $0x428] sm:$0xff] }
 0x104   : > { %1439 = vmatmul.f32.gmra.mxu3 %v1312_v35  ;;  %2679 = vmatpush.msra.mxu0 %v3249_v2 }
 0x105   : > { %926 = vmatmul.f32.gmra.mxu1 %v1569_v61  ;;  %1700 = vmatmul.f32.gmra.mxu0 %v1571_v9 }
 0x106   : > { %v4123_v30 = vpop.f32.mrf.mxu2 }
 0x107   : > { %v4125_v7 = vpop.f32.mrf.mxu3 }
 0x10a   : > { %v882_v48 = vpop.f32.mrf.mxu1  ;;  %v1656_v10 = vpop.f32.mrf.mxu0 }
 0x10b   : > { %1184 = vmatmul.f32.gmra.mxu2 %v1055_v39 }
 0x10c   : > { %1442 = vmatmul.f32.gmra.mxu3 %v3769_v59 }
 0x10d   : > { %929 = vmatmul.f32.gmra.mxu1 %v1570_v23  ;;  %1703 = vmatmul.f32.gmra.mxu0 %v3656_v52  ;;  %v976_v23 = vadd.f32 %v882_v48, %v4001_v17  ;;  %v3232_v17 = vld [vmem:[%s4416_s1 + $0x3a0] sm:$0xff] }
 0x10e   : > { %v1137_v58 = vpop.f32.mrf.mxu2  ;;  %2422 = vmatpush.msra.mxu3 %v3232_v17 }
 0x10f   : > { %v1233_v61 = vadd.f32 %v1137_v58, %v975_v11  ;;  %v1395_v21 = vpop.f32.mrf.mxu3  ;;  %v3200_v58 = vld [vmem:[%s4416_s1 + $0x2a0] sm:$0xff] }
 0x110   : > { %1905 = vmatpush.msra.mxu1 %v3200_v58 }
 0x111   : > { %v1491_v59 = vadd.f32 %v1395_v21, %v1233_v61 }
 0x112   : > { %v885_v22 = vpop.f32.mrf.mxu1  ;;  %v1659_v46 = vpop.f32.mrf.mxu0 }
 0x113   : > { %v4139_v14 = vadd.f32 %v1653_v38, %v1491_v59  ;;  %1187 = vmatmul.f32.gmra.mxu2 %v1056_v1 }
 0x114   : > { %1445 = vmatmul.f32.gmra.mxu3 %v3823_v36  ;;  %v3216_v36 = vld [vmem:[%s4416_s1 + $0x320] sm:$0xff] }
 0x115   : > { %932 = vmatmul.f32.gmra.mxu1 %v1571_v9  ;;  %1706 = vmatmul.f32.gmra.mxu0 %v3679_v5  ;;  %v977_v9 = vadd.f32 %v885_v22, %v4023_v31 }
 0x116   : > { %v1140_v27 = vpop.f32.mrf.mxu2  ;;  %2164 = vmatpush.msra.mxu2 %v3216_v36 }
 0x117   : > { %v1234_v35 = vadd.f32 %v1140_v27, %v976_v23  ;;  %v1398_v16 = vpop.f32.mrf.mxu3  ;;  %v1059_v23 = vld [vmem:[#allocation2 + $0xf2] sm:$0xff] }
 0x119   : > { %v1492_v39 = vadd.f32 %v1398_v16, %v1234_v35 }
 0x11a   : > { %v888_v38 = vpop.f32.mrf.mxu1  ;;  %v1662_v60 = vpop.f32.mrf.mxu0 }
 0x11b   : > { %v4147_v63 = vadd.f32 %v1656_v10, %v1492_v39  ;;  %1190 = vmatmul.f32.gmra.mxu2 %v1057_v24  ;;  %v978_v31 = vadd.f32 %v888_v38, %v4037_v42 }
 0x11c   : > { %1448 = vmatmul.f32.gmra.mxu3 %v3865_v57  ;;  %v1058_v57 = vld [vmem:[#allocation2 + $0xe2] sm:$0xff] }
 0x11d   : > { %935 = vmatmul.f32.gmra.mxu1 %v3656_v52  ;;  %1709 = vmatmul.f32.gmra.mxu0 %v3712_v26  ;;  %v3248_v52 = vld [vmem:[%s4416_s1 + $0x420] sm:$0xff] }
 0x11e   : > { %v1143_v48 = vpop.f32.mrf.mxu2  ;;  %2680 = vmatpush.msra.mxu0 %v3248_v52 }
 0x11f   : > { %v1235_v10 = vadd.f32 %v1143_v48, %v977_v9  ;;  %v1401_v11 = vpop.f32.mrf.mxu3  ;;  %v1577_v48 = vld [vmem:[#allocation2 + $0x121] sm:$0xff] }
 0x121   : > { %v1493_v61 = vadd.f32 %v1401_v11, %v1235_v10 }
 0x122   : > { %v891_v21 = vpop.f32.mrf.mxu1  ;;  %v1665_v0 = vpop.f32.mrf.mxu0 }
 0x123   : > { %v4162_v1 = vadd.f32 %v1659_v46, %v1493_v61  ;;  %1193 = vmatmul.f32.gmra.mxu2 %v1058_v57  ;;  %v979_v42 = vadd.f32 %v891_v21, %v4057_v43  ;;  %v1061_v61 = vld [vmem:[#allocation2 + $0x10a] sm:$0xff] }
 0x124   : > { %1451 = vmatmul.f32.gmra.mxu3 %v3889_v12  ;;  %v3215_v12 = vld [vmem:[%s4416_s1 + $0x318] sm:$0xff] }
 0x125   : > { %938 = vmatmul.f32.gmra.mxu1 %v3679_v5  ;;  %1712 = vmatmul.f32.gmra.mxu0 %v3747_v47  ;;  %v3231_v5 = vld [vmem:[%s4416_s1 + $0x398] sm:$0xff] }
 0x126   : > { %v1146_v59 = vpop.f32.mrf.mxu2  ;;  %2165 = vmatpush.msra.mxu2 %v3215_v12  ;;  %2423 = vmatpush.msra.mxu3 %v3231_v5  ;;  %v1320_v5 = vld [vmem:[#allocation2 + $0x128] sm:$0xff] }
 0x127   : > { %v1236_v22 = vadd.f32 %v1146_v59, %v978_v31  ;;  %v1404_v2 = vpop.f32.mrf.mxu3  ;;  %v1578_v59 = vld [vmem:[#allocation2 + $0x129] sm:$0xff] }
 0x129   : > { %v1494_v46 = vadd.f32 %v1404_v2, %v1236_v22 }
 0x12a   : > { %v894_v27 = vpop.f32.mrf.mxu1  ;;  %v1668_v35 = vpop.f32.mrf.mxu0 }
 0x12b   : > { %v4171_v16 = vadd.f32 %v1662_v60, %v1494_v46  ;;  %1196 = vmatmul.f32.gmra.mxu2 %v1059_v23  ;;  %v3199_v60 = vld [vmem:[%s4416_s1 + $0x298] sm:$0xff]  ;;  %v980_v43 = vadd.f32 %v894_v27, %v4071_v54  ;;  %v3214_v54 = vld [vmem:[%s4416_s1 + $0x310] sm:$0xff] }
 0x12c   : > { %1454 = vmatmul.f32.gmra.mxu3 %v3901_v19  ;;  %v1060_v19 = vld [vmem:[#allocation2 + $0xfa] sm:$0xff]  ;;  %1906 = vmatpush.msra.mxu1 %v3199_v60  ;;  %v3198_v27 = vld [vmem:[%s4416_s1 + $0x290] sm:$0xff] }
 0x12d   : > { %941 = vmatmul.f32.gmra.mxu1 %v3712_v26  ;;  %1715 = vmatmul.f32.gmra.mxu0 %v3802_v25  ;;  %v3247_v26 = vld [vmem:[%s4416_s1 + $0x418] sm:$0xff] }
 0x12e   : > { %v1149_v24 = vpop.f32.mrf.mxu2  ;;  %2681 = vmatpush.msra.mxu0 %v3247_v26  ;;  %2166 = vmatpush.msra.mxu2 %v3214_v54  ;;  %v3197_v54 = vld [vmem:[%s4416_s1 + $0x288] sm:$0xff] }
 0x12f   : > { %v1237_v39 = vadd.f32 %v1149_v24, %v979_v42  ;;  %v1407_v38 = vpop.f32.mrf.mxu3  ;;  %1907 = vmatpush.msra.mxu1 %v3198_v27 }
 0x131   : > { %v1495_v36 = vadd.f32 %v1407_v38, %v1237_v39  ;;  %v1579_v39 = vld [vmem:[#allocation2 + $0x139] sm:$0xff]  ;;  %1908 = vmatpush.msra.mxu1 %v3197_v54 }
 0x132   : > { %v897_v17 = vpop.f32.mrf.mxu1  ;;  %v1671_v9 = vpop.f32.mrf.mxu0 }
 0x133   : > { %v4186_v10 = vadd.f32 %v1665_v0, %v1495_v36  ;;  %1199 = vmatmul.f32.gmra.mxu2 %v1060_v19  ;;  %v1319_v0 = vld [vmem:[#allocation2 + $0x120] sm:$0xff]  ;;  %v981_v22 = vadd.f32 %v897_v17, %v4091_v32 }
 0x134   : > { %1457 = vmatmul.f32.gmra.mxu3 %v3919_v33  ;;  %v1063_v17 = vld [vmem:[#allocation2 + $0x122] sm:$0xff] }
 0x135   : > { %944 = vmatmul.f32.gmra.mxu1 %v3747_v47  ;;  %1718 = vmatmul.f32.gmra.mxu0 %v1577_v48  ;;  %v3230_v47 = vld [vmem:[%s4416_s1 + $0x390] sm:$0xff] }
 0x136   : > { %v1152_v11 = vpop.f32.mrf.mxu2  ;;  %2424 = vmatpush.msra.mxu3 %v3230_v47  ;;  %v3323_v47 = vld [vmem:[%s4417_s2] ss:$0 sm:$0xff] }
 0x137   : > { %v1238_v58 = vadd.f32 %v1152_v11, %v980_v43  ;;  %v1410_v57 = vpop.f32.mrf.mxu3  ;;  %v1321_v43 = vld [vmem:[#allocation2 + $0x138] sm:$0xff] }
 0x139   : > { %v1496_v21 = vadd.f32 %v1410_v57, %v1238_v58  ;;  %v1580_v58 = vld [vmem:[#allocation2 + $0x141] sm:$0xff] }
 0x13a   : > { %v900_v52 = vpop.f32.mrf.mxu1  ;;  %v1674_v31 = vpop.f32.mrf.mxu0 }
 0x13b   : > { %v4194_v33 = vadd.f32 %v1668_v35, %v1496_v21  ;;  %1202 = vmatmul.f32.gmra.mxu2 %v1061_v61  ;;  %v1062_v35 = vld [vmem:[#allocation2 + $0x112] sm:$0xff]  ;;  %v982_v32 = vadd.f32 %v900_v52, %v4104_v6  ;;  %v3213_v6 = vld [vmem:[%s4416_s1 + $0x308] sm:$0xff] }
 0x13c   : > { %1460 = vmatmul.f32.gmra.mxu3 %v1319_v0  ;;  %2167 = vmatpush.msra.mxu2 %v3213_v6  ;;  %v299_v0 = vld [vmem:[%s3405_s12 + $0xf0] sm:$0xff] }
 0x13d   : > { %947 = vmatmul.f32.gmra.mxu1 %v3802_v25  ;;  %1721 = vmatmul.f32.gmra.mxu0 %v1578_v59  ;;  %v3246_v25 = vld [vmem:[%s4416_s1 + $0x410] sm:$0xff] }
 0x13e   : > { %v1155_v2 = vpop.f32.mrf.mxu2  ;;  %2682 = vmatpush.msra.mxu0 %v3246_v25  ;;  %v3245_v25 = vld [vmem:[%s4416_s1 + $0x408] sm:$0xff]  ;;  %v1323_v6 = vld [vmem:[#allocation2 + $0x150] sm:$0xff] }
 0x13f   : > { %v1239_v23 = vadd.f32 %v1155_v2, %v981_v22  ;;  %v1413_v46 = vpop.f32.mrf.mxu3  ;;  %v336_v22 = vmul.f32 %v3323_v47, %v299_v0  ;;  %v1064_v2 = vld [vmem:[#allocation2 + $0x12a] sm:$0xff]  ;;  %v1582_v0 = vld [vmem:[#allocation2 + $0x159] sm:$0xff] }
 0x140   : > { %2683 = vmatpush.msra.mxu0 %v3245_v25 }
 0x141   : > { %v1497_v12 = vadd.f32 %v1413_v46, %v1239_v23 }
 0x142   : > { %v903_v42 = vpop.f32.mrf.mxu1  ;;  %v1677_v24 = vpop.f32.mrf.mxu0 }
 0x143   : > { %v4207_v38 = vadd.f32 %v1671_v9, %v1497_v12  ;;  %1205 = vmatmul.f32.gmra.mxu2 %v1062_v35  ;;  %v983_v61 = vadd.f32 %v903_v42, %v3993_v13  ;;  %v1322_v13 = vld [vmem:[#allocation2 + $0x140] sm:$0xff]  ;;  %v1581_v12 = vld [vmem:[#allocation2 + $0x151] sm:$0xff] }
 0x144   : > { %1463 = vmatmul.f32.gmra.mxu3 %v1320_v5 }
 0x145   : > { %950 = vmatmul.f32.gmra.mxu1 %v1577_v48  ;;  %1724 = vmatmul.f32.gmra.mxu0 %v1579_v39  ;;  %v3229_v48 = vld [vmem:[%s4416_s1 + $0x388] sm:$0xff] }
 0x146   : > { %v1158_v60 = vpop.f32.mrf.mxu2  ;;  %2425 = vmatpush.msra.mxu3 %v3229_v48 }
 0x147   : > { %v1240_v19 = vadd.f32 %v1158_v60, %v982_v32  ;;  %v1416_v36 = vpop.f32.mrf.mxu3 }
 0x149   : > { %v1498_v26 = vadd.f32 %v1416_v36, %v1240_v19  ;;  %v300_v19 = vld [vmem:[%s3405_s12 + $0xf8] sm:$0xff] }
 0x14a   : > { %v906_v9 = vpop.f32.mrf.mxu1  ;;  %v1680_v11 = vpop.f32.mrf.mxu0 }
 0x14b   : > { %v4213_v57 = vadd.f32 %v1674_v31, %v1498_v26  ;;  %1208 = vmatmul.f32.gmra.mxu2 %v1063_v17  ;;  %v984_v32 = vadd.f32 %v906_v9, %v4003_v18  ;;  %v337_v17 = vmul.f32 %v3323_v47, %v300_v19  ;;  %v1065_v26 = vld [vmem:[#allocation2 + $0x13a] sm:$0xff] }
 0x14c   : > { %1466 = vmatmul.f32.gmra.mxu3 %v1321_v43 }
 0x14d   : > { %953 = vmatmul.f32.gmra.mxu1 %v1578_v59  ;;  %1727 = vmatmul.f32.gmra.mxu0 %v1580_v58  ;;  %v3324_v59 = vld [vmem:[%s4418_s3] ss:$0 sm:$0xff] }
 0x14e   : > { %v1161_v21 = vpop.f32.mrf.mxu2  ;;  %v4232_v46 = vadd.f32 %v3324_v59, %v336_v22  ;;  %v4244_v48 = vadd.f32 %v3324_v59, %v337_v17  ;;  %v3196_v22 = vld [vmem:[%s4416_s1 + $0x280] sm:$0xff] }
 0x14f   : > { %v1241_v52 = vadd.f32 %v1161_v21, %v983_v61  ;;  %v1419_v31 = vpop.f32.mrf.mxu3  ;;  %1909 = vmatpush.msra.mxu1 %v3196_v22 }
 0x150   : > { %v403_v42 = vmax.f32 %v4232_v46, 0.0  ;;  %v404_v9 = vmax.f32 %v4244_v48, 0.0 }
 0x151   : > { %v1499_v23 = vadd.f32 %v1419_v31, %v1241_v52  ;;  %v3228_v52 = vld [vmem:[%s4416_s1 + $0x380] sm:$0xff] }
 0x152   : > { %v909_v27 = vpop.f32.mrf.mxu1  ;;  %v1683_v35 = vpop.f32.mrf.mxu0  ;;  %490 = vst [vmem:[#allocation2 + $0x181] sm:$0xff] %v403_v42  ;;  %2426 = vmatpush.msra.mxu3 %v3228_v52 }
 0x153   : > { %v4234_v5 = vadd.f32 %v1677_v24, %v1499_v23  ;;  %1211 = vmatmul.f32.gmra.mxu2 %v1064_v2  ;;  %v985_v31 = vadd.f32 %v909_v27, %v4021_v29  ;;  %491 = vst [vmem:[#allocation2 + $0x189] sm:$0xff] %v404_v9  ;;  %v1066_v2 = vld [vmem:[#allocation2 + $0x142] sm:$0xff] }
 0x154   : > { %1469 = vmatmul.f32.gmra.mxu3 %v1322_v13  ;;  %v1324_v13 = vld [vmem:[#allocation2 + $0x158] sm:$0xff]  ;;  %v1583_v29 = vld [vmem:[#allocation2 + $0x169] sm:$0xff]  ;;  %v3244_v27 = vld [vmem:[%s4416_s1 + $0x400] sm:$0xff] }
 0x155   : > { %956 = vmatmul.f32.gmra.mxu1 %v1579_v39  ;;  %1730 = vmatmul.f32.gmra.mxu0 %v1581_v12  ;;  %v3212_v39 = vld [vmem:[%s4416_s1 + $0x300] sm:$0xff] }
 0x156   : > { %v1164_v60 = vpop.f32.mrf.mxu2  ;;  %2168 = vmatpush.msra.mxu2 %v3212_v39  ;;  %2684 = vmatpush.msra.mxu0 %v3244_v27 }
 0x157   : > { %v1242_v24 = vadd.f32 %v1164_v60, %v984_v32  ;;  %v1422_v36 = vpop.f32.mrf.mxu3 }
 0x159   : > { %v1500_v43 = vadd.f32 %v1422_v36, %v1242_v24  ;;  %v1067_v36 = vld [vmem:[#allocation2 + $0x152] sm:$0xff]  ;;  %v1327_v27 = vld [vmem:[#allocation2 + $0x180] sm:$0xff] }
 0x15a   : > { %v912_v61 = vpop.f32.mrf.mxu1  ;;  %v1686_v21 = vpop.f32.mrf.mxu0 }
 0x15b   : > { %v4246_v18 = vadd.f32 %v1680_v11, %v1500_v43  ;;  %1214 = vmatmul.f32.gmra.mxu2 %v1065_v26  ;;  %v986_v32 = vadd.f32 %v912_v61, %v4035_v41  ;;  %v1325_v26 = vld [vmem:[#allocation2 + $0x168] sm:$0xff] }
 0x15c   : > { %1472 = vmatmul.f32.gmra.mxu3 %v1323_v6  ;;  %v1584_v6 = vld [vmem:[#allocation2 + $0x171] sm:$0xff] }
 0x15d   : > { %959 = vmatmul.f32.gmra.mxu1 %v1580_v58  ;;  %1733 = vmatmul.f32.gmra.mxu0 %v1582_v0 }
 0x15e   : > { %v1167_v11 = vpop.f32.mrf.mxu2 }
 0x15f   : > { %v1243_v54 = vadd.f32 %v1167_v11, %v985_v31  ;;  %v1425_v47 = vpop.f32.mrf.mxu3  ;;  %v1068_v31 = vld [vmem:[#allocation2 + $0x15a] sm:$0xff] }
 0x161   : > { %v1501_v23 = vadd.f32 %v1425_v47, %v1243_v54  ;;  %v1326_v54 = vld [vmem:[#allocation2 + $0x170] sm:$0xff] }
 0x162   : > { %v915_v59 = vpop.f32.mrf.mxu1  ;;  %v1689_v25 = vpop.f32.mrf.mxu0 }
 0x163   : > { %v4261_v58 = vadd.f32 %v1683_v35, %v1501_v23  ;;  %1217 = vmatmul.f32.gmra.mxu2 %v1066_v2  ;;  %v987_v52 = vadd.f32 %v915_v59, %v4055_v45 }
 0x164   : > { %1475 = vmatmul.f32.gmra.mxu3 %v1324_v13  ;;  %v1069_v13 = vld [vmem:[#allocation2 + $0x16a] sm:$0xff] }
 0x165   : > { %962 = vmatmul.f32.gmra.mxu1 %v1581_v12  ;;  %1736 = vmatmul.f32.gmra.mxu0 %v1583_v29 }
 0x166   : > { %v1170_v60 = vpop.f32.mrf.mxu2 }
 0x167   : > { %v1244_v19 = vadd.f32 %v1170_v60, %v986_v32  ;;  %v1428_v24 = vpop.f32.mrf.mxu3 }
 0x169   : > { %v1502_v17 = vadd.f32 %v1428_v24, %v1244_v19 }
 0x16a   : > { %v918_v43 = vpop.f32.mrf.mxu1  ;;  %v1692_v35 = vpop.f32.mrf.mxu0 }
 0x16b   : > { %v4267_v39 = vadd.f32 %v1686_v21, %v1502_v17  ;;  %1220 = vmatmul.f32.gmra.mxu2 %v1067_v36  ;;  %v988_v21 = vadd.f32 %v918_v43, %v4069_v55  ;;  %v1328_v36 = vld [vmem:[#allocation2 + $0x188] sm:$0xff] }
 0x16c   : > { %1478 = vmatmul.f32.gmra.mxu3 %v1325_v26  ;;  %v1813_v26 = vld [vmem:[#allocation2 + $0x1a] sm:$0xff] }
 0x16d   : > { %965 = vmatmul.f32.gmra.mxu1 %v1582_v0  ;;  %1739 = vmatmul.f32.gmra.mxu0 %v1584_v6 }
 0x16e   : > { %v1173_v41 = vpop.f32.mrf.mxu2 }
 0x16f   : > { %v1245_v12 = vadd.f32 %v1173_v41, %v987_v52  ;;  %v1431_v61 = vpop.f32.mrf.mxu3  ;;  %v2588_v52 = vld [vmem:[#allocation2 + $0x32] sm:$0xff] }
 0x170   : > { %v2072_v41 = vld [vmem:[#allocation2 + $0x30] sm:$0xff] }
 0x171   : > { %v1503_v11 = vadd.f32 %v1431_v61, %v1245_v12  ;;  %v2330_v61 = vld [vmem:[#allocation2 + $0x31] sm:$0xff] }
 0x172   : > { %v921_v47 = vpop.f32.mrf.mxu1  ;;  %v1695_v22 = vpop.f32.mrf.mxu0 }
 0x173   : > { %v4270_v2 = vadd.f32 %v1689_v25, %v1503_v11  ;;  %1223 = vmatmul.f32.gmra.mxu2 %v1068_v31  ;;  %v989_v25 = vadd.f32 %v921_v47, %v4089_v15  ;;  %v1814_v11 = vld [vmem:[#allocation2 + $0x22] sm:$0xff]  ;;  %v2589_v47 = vld [vmem:[#allocation2 + $0x3a] sm:$0xff] }
 0x174   : > { %1481 = vmatmul.f32.gmra.mxu3 %v1326_v54 }
 0x175   : > { %968 = vmatmul.f32.gmra.mxu1 %v1583_v29  ;;  %1742 = vmatmul.f32.gmra.mxu0 %v403_v42  ;;  %v1070_v29 = vld [vmem:[#allocation2 + $0x172] sm:$0xff] }
 0x176   : > { %v1176_v45 = vpop.f32.mrf.mxu2 }
 0x177   : > { %v1246_v0 = vadd.f32 %v1176_v45, %v988_v21  ;;  %v1434_v23 = vpop.f32.mrf.mxu3 }
 0x179   : > { %v1504_v59 = vadd.f32 %v1434_v23, %v1246_v0  ;;  %v2073_v23 = vld [vmem:[#allocation2 + $0x38] sm:$0xff] }
 0x17a   : > { %v924_v32 = vpop.f32.mrf.mxu1  ;;  %v1698_v60 = vpop.f32.mrf.mxu0 }
 0x17b   : > { %v4275_v19 = vadd.f32 %v1692_v35, %v1504_v59  ;;  %1226 = vmatmul.f32.gmra.mxu2 %v1069_v13  ;;  %v990_v15 = vadd.f32 %v924_v32, %v4102_v3  ;;  %v2331_v59 = vld [vmem:[#allocation2 + $0x39] sm:$0xff] }
 0x17c   : > { %1484 = vmatmul.f32.gmra.mxu3 %v1327_v27 }
 0x17d   : > { %971 = vmatmul.f32.gmra.mxu1 %v1584_v6  ;;  %1745 = vmatmul.f32.gmra.mxu0 %v404_v9 }
 0x17e   : > { %v1179_v55 = vpop.f32.mrf.mxu2 }
 0x17f   : > { %v1247_v46 = vadd.f32 %v1179_v55, %v989_v25  ;;  %v1437_v42 = vpop.f32.mrf.mxu3  ;;  %v2590_v25 = vld [vmem:[#allocation2 + $0x4a] sm:$0xff] }
 0x181   : > { %v1505_v24 = vadd.f32 %v1437_v42, %v1247_v46 }
 0x182   : > { %v927_v17 = vpop.f32.mrf.mxu1  ;;  %v1701_v43 = vpop.f32.mrf.mxu0 }
 0x183   : > { %v4280_v35 = vadd.f32 %v1695_v22, %v1505_v24  ;;  %1229 = vmatmul.f32.gmra.mxu2 %v1070_v29  ;;  %v991_v22 = vadd.f32 %v927_v17, %v4014_v4  ;;  %v2074_v29 = vld [vmem:[#allocation2 + $0x48] sm:$0xff] }
 0x184   : > { %1487 = vmatmul.f32.gmra.mxu3 %v1328_v36  ;;  %v2332_v36 = vld [vmem:[#allocation2 + $0x49] sm:$0xff] }
 0x185   : > { %1910 = vmatmul.f32.vlgmr.msra.gmra.mxu1 %v1813_v26  ;;  %2685 = vmatmul.f32.vlgmr.msra.gmra.mxu0 %v2588_v52 }
 0x186   : > { %v1182_v48 = vpop.f32.mrf.mxu2 }
 0x187   : > { %v1248_v9 = vadd.f32 %v1182_v48, %v990_v15  ;;  %v1440_v6 = vpop.f32.mrf.mxu3  ;;  %v2591_v15 = vld [vmem:[#allocation2 + $0x52] sm:$0xff] }
 0x189   : > { %v1506_v12 = vadd.f32 %v1440_v6, %v1248_v9  ;;  %v2075_v6 = vld [vmem:[#allocation2 + $0x50] sm:$0xff] }
 0x18a   : > { %v930_v31 = vpop.f32.mrf.mxu1  ;;  %v1704_v54 = vpop.f32.mrf.mxu0 }
 0x18b   : > { %v4283_v21 = vadd.f32 %v1698_v60, %v1506_v12  ;;  %2169 = vmatmul.f32.vlgmr.msra.gmra.mxu2 %v2072_v41  ;;  %v992_v60 = vadd.f32 %v930_v31, %v4031_v34  ;;  %v2333_v12 = vld [vmem:[#allocation2 + $0x51] sm:$0xff] }
 0x18c   : > { %2427 = vmatmul.f32.vlgmr.msra.gmra.mxu3 %v2330_v61 }
 0x18d   : > { %1913 = vmatmul.f32.gmra.mxu1 %v1814_v11  ;;  %2688 = vmatmul.f32.gmra.mxu0 %v2589_v47  ;;  %v2592_v11 = vld [vmem:[#allocation2 + $0x62] sm:$0xff] }
 0x18e   : > { %v1185_v3 = vpop.f32.mrf.mxu2 }
 0x18f   : > { %v1249_v45 = vadd.f32 %v1185_v3, %v991_v22  ;;  %v1443_v0 = vpop.f32.mrf.mxu3 }
 0x191   : > { %v1507_v13 = vadd.f32 %v1443_v0, %v1249_v45  ;;  %v2076_v45 = vld [vmem:[#allocation2 + $0x60] sm:$0xff] }
 0x192   : > { %v933_v27 = vpop.f32.mrf.mxu1  ;;  %v1707_v32 = vpop.f32.mrf.mxu0 }
 0x193   : > { %v4286_v55 = vadd.f32 %v1701_v43, %v1507_v13  ;;  %2172 = vmatmul.f32.gmra.mxu2 %v2073_v23  ;;  %v993_v43 = vadd.f32 %v933_v27, %v4048_v44  ;;  %v2334_v23 = vld [vmem:[#allocation2 + $0x61] sm:$0xff]  ;;  %v2593_v27 = vld [vmem:[#allocation2 + $0x6a] sm:$0xff] }
 0x194   : > { %2430 = vmatmul.f32.gmra.mxu3 %v2331_v59 }
 0x195   : > { %1916 = vmatmul.f32.gmra.mxu1 %v2588_v52  ;;  %2691 = vmatmul.f32.gmra.mxu0 %v2590_v25 }
 0x196   : > { %v1188_v4 = vpop.f32.mrf.mxu2 }
 0x197   : > { %v1250_v46 = vadd.f32 %v1188_v4, %v992_v60  ;;  %v1446_v42 = vpop.f32.mrf.mxu3 }
 0x199   : > { %v1508_v24 = vadd.f32 %v1446_v42, %v1250_v46  ;;  %v2077_v46 = vld [vmem:[#allocation2 + $0x68] sm:$0xff] }
 0x19a   : > { %v936_v17 = vpop.f32.mrf.mxu1  ;;  %v1710_v26 = vpop.f32.mrf.mxu0 }
 0x19b   : > { %v4289_v48 = vadd.f32 %v1704_v54, %v1508_v24  ;;  %2175 = vmatmul.f32.gmra.mxu2 %v2074_v29  ;;  %v994_v54 = vadd.f32 %v936_v17, %v4065_v50  ;;  %v2335_v29 = vld [vmem:[#allocation2 + $0x69] sm:$0xff]  ;;  %v2594_v17 = vld [vmem:[#allocation2 + $0x7a] sm:$0xff] }
 0x19c   : > { %2433 = vmatmul.f32.gmra.mxu3 %v2332_v36 }
 0x19d   : > { %1919 = vmatmul.f32.gmra.mxu1 %v2589_v47  ;;  %2694 = vmatmul.f32.gmra.mxu0 %v2591_v15 }
 0x19e   : > { %v1191_v34 = vpop.f32.mrf.mxu2 }
 0x19f   : > { %v1251_v52 = vadd.f32 %v1191_v34, %v993_v43  ;;  %v1449_v9 = vpop.f32.mrf.mxu3 }
 0x1a1   : > { %v1509_v41 = vadd.f32 %v1449_v9, %v1251_v52  ;;  %v2078_v52 = vld [vmem:[#allocation2 + $0x78] sm:$0xff] }
 0x1a2   : > { %v939_v61 = vpop.f32.mrf.mxu1  ;;  %v1713_v31 = vpop.f32.mrf.mxu0 }
 0x1a3   : > { %v4292_v22 = vadd.f32 %v1707_v32, %v1509_v41  ;;  %2178 = vmatmul.f32.gmra.mxu2 %v2075_v6  ;;  %v995_v32 = vadd.f32 %v939_v61, %v4082_v40  ;;  %v2336_v6 = vld [vmem:[#allocation2 + $0x79] sm:$0xff]  ;;  %v2595_v61 = vld [vmem:[#allocation2 + $0x82] sm:$0xff] }
 0x1a4   : > { %2436 = vmatmul.f32.gmra.mxu3 %v2333_v12 }
 0x1a5   : > { %1922 = vmatmul.f32.gmra.mxu1 %v2590_v25  ;;  %2697 = vmatmul.f32.gmra.mxu0 %v2592_v11 }
 0x1a6   : > { %v1194_v44 = vpop.f32.mrf.mxu2 }
 0x1a7   : > { %v1252_v47 = vadd.f32 %v1194_v44, %v994_v54  ;;  %v1452_v3 = vpop.f32.mrf.mxu3 }
 0x1a9   : > { %v1510_v0 = vadd.f32 %v1452_v3, %v1252_v47  ;;  %v2079_v47 = vld [vmem:[#allocation2 + $0x80] sm:$0xff] }
 0x1aa   : > { %v942_v13 = vpop.f32.mrf.mxu1  ;;  %v1716_v59 = vpop.f32.mrf.mxu0 }
 0x1ab   : > { %v4295_v60 = vadd.f32 %v1710_v26, %v1510_v0  ;;  %2181 = vmatmul.f32.gmra.mxu2 %v2076_v45  ;;  %v996_v26 = vadd.f32 %v942_v13, %v4098_v62  ;;  %v2337_v45 = vld [vmem:[#allocation2 + $0x81] sm:$0xff]  ;;  %v2596_v13 = vld [vmem:[#allocation2 + $0x92] sm:$0xff] }
 0x1ac   : > { %2439 = vmatmul.f32.gmra.mxu3 %v2334_v23 }
 0x1ad   : > { %1925 = vmatmul.f32.gmra.mxu1 %v2591_v15  ;;  %2700 = vmatmul.f32.gmra.mxu0 %v2593_v27 }
 0x1ae   : > { %v1197_v50 = vpop.f32.mrf.mxu2 }
 0x1af   : > { %v1253_v25 = vadd.f32 %v1197_v50, %v995_v32  ;;  %v1455_v4 = vpop.f32.mrf.mxu3 }
 0x1b1   : > { %v1511_v42 = vadd.f32 %v1455_v4, %v1253_v25  ;;  %v2080_v25 = vld [vmem:[#allocation2 + $0x90] sm:$0xff] }
 0x1b2   : > { %v945_v24 = vpop.f32.mrf.mxu1  ;;  %v1719_v36 = vpop.f32.mrf.mxu0 }
 0x1b3   : > { %v4298_v43 = vadd.f32 %v1713_v31, %v1511_v42  ;;  %2184 = vmatmul.f32.gmra.mxu2 %v2077_v46  ;;  %v997_v31 = vadd.f32 %v945_v24, %v4113_v49  ;;  %v2338_v46 = vld [vmem:[#allocation2 + $0x91] sm:$0xff]  ;;  %v2597_v24 = vld [vmem:[#allocation2 + $0x9a] sm:$0xff] }
 0x1b4   : > { %2442 = vmatmul.f32.gmra.mxu3 %v2335_v29 }
 0x1b5   : > { %1928 = vmatmul.f32.gmra.mxu1 %v2592_v11  ;;  %2703 = vmatmul.f32.gmra.mxu0 %v2594_v17 }
 0x1b6   : > { %v1200_v40 = vpop.f32.mrf.mxu2 }
 0x1b7   : > { %v1254_v15 = vadd.f32 %v1200_v40, %v996_v26  ;;  %v1458_v34 = vpop.f32.mrf.mxu3 }
 0x1b9   : > { %v1512_v9 = vadd.f32 %v1458_v34, %v1254_v15  ;;  %v2081_v15 = vld [vmem:[#allocation2 + $0x98] sm:$0xff] }
 0x1ba   : > { %v948_v41 = vpop.f32.mrf.mxu1  ;;  %v1722_v12 = vpop.f32.mrf.mxu0 }
 0x1bb   : > { %v4301_v54 = vadd.f32 %v1716_v59, %v1512_v9  ;;  %2187 = vmatmul.f32.gmra.mxu2 %v2078_v52  ;;  %v998_v59 = vadd.f32 %v948_v41, %v4123_v30  ;;  %v2339_v52 = vld [vmem:[#allocation2 + $0x99] sm:$0xff]  ;;  %v2598_v41 = vld [vmem:[#allocation2 + $0xaa] sm:$0xff] }
 0x1bc   : > { %2445 = vmatmul.f32.gmra.mxu3 %v2336_v6 }
 0x1bd   : > { %1931 = vmatmul.f32.gmra.mxu1 %v2593_v27  ;;  %2706 = vmatmul.f32.gmra.mxu0 %v2595_v61 }
 0x1be   : > { %v1203_v62 = vpop.f32.mrf.mxu2 }
 0x1bf   : > { %v1255_v11 = vadd.f32 %v1203_v62, %v997_v31  ;;  %v1461_v44 = vpop.f32.mrf.mxu3 }
 0x1c1   : > { %v1513_v3 = vadd.f32 %v1461_v44, %v1255_v11  ;;  %v2082_v11 = vld [vmem:[#allocation2 + $0xa8] sm:$0xff] }
 0x1c2   : > { %v951_v0 = vpop.f32.mrf.mxu1  ;;  %v1725_v23 = vpop.f32.mrf.mxu0 }
 0x1c3   : > { %v4304_v32 = vadd.f32 %v1719_v36, %v1513_v3  ;;  %2190 = vmatmul.f32.gmra.mxu2 %v2079_v47  ;;  %v999_v36 = vadd.f32 %v951_v0, %v4019_v28  ;;  %v2340_v47 = vld [vmem:[#allocation2 + $0xa9] sm:$0xff]  ;;  %v2599_v0 = vld [vmem:[#allocation2 + $0xb2] sm:$0xff] }
 0x1c4   : > { %2448 = vmatmul.f32.gmra.mxu3 %v2337_v45 }
 0x1c5   : > { %1934 = vmatmul.f32.gmra.mxu1 %v2594_v17  ;;  %2709 = vmatmul.f32.gmra.mxu0 %v2596_v13 }
 0x1c6   : > { %v1206_v49 = vpop.f32.mrf.mxu2 }
 0x1c7   : > { %v1256_v27 = vadd.f32 %v1206_v49, %v998_v59  ;;  %v1464_v50 = vpop.f32.mrf.mxu3 }
 0x1c9   : > { %v1514_v4 = vadd.f32 %v1464_v50, %v1256_v27  ;;  %v2083_v27 = vld [vmem:[#allocation2 + $0xb0] sm:$0xff] }
 0x1ca   : > { %v954_v42 = vpop.f32.mrf.mxu1  ;;  %v1728_v29 = vpop.f32.mrf.mxu0 }
 0x1cb   : > { %v4307_v26 = vadd.f32 %v1722_v12, %v1514_v4  ;;  %2193 = vmatmul.f32.gmra.mxu2 %v2080_v25  ;;  %v1000_v12 = vadd.f32 %v954_v42, %v4033_v37  ;;  %v2341_v25 = vld [vmem:[#allocation2 + $0xb1] sm:$0xff]  ;;  %v2600_v42 = vld [vmem:[#allocation2 + $0xc2] sm:$0xff] }
 0x1cc   : > { %2451 = vmatmul.f32.gmra.mxu3 %v2338_v46 }
 0x1cd   : > { %1937 = vmatmul.f32.gmra.mxu1 %v2595_v61  ;;  %2712 = vmatmul.f32.gmra.mxu0 %v2597_v24 }
 0x1ce   : > { %v1209_v30 = vpop.f32.mrf.mxu2 }
 0x1cf   : > { %v1257_v17 = vadd.f32 %v1209_v30, %v999_v36  ;;  %v1467_v40 = vpop.f32.mrf.mxu3 }
 0x1d1   : > { %v1515_v34 = vadd.f32 %v1467_v40, %v1257_v17  ;;  %v2084_v17 = vld [vmem:[#allocation2 + $0xc0] sm:$0xff] }
 0x1d2   : > { %v957_v9 = vpop.f32.mrf.mxu1  ;;  %v1731_v6 = vpop.f32.mrf.mxu0 }
 0x1d3   : > { %v4310_v31 = vadd.f32 %v1725_v23, %v1515_v34  ;;  %2196 = vmatmul.f32.gmra.mxu2 %v2081_v15  ;;  %v1001_v23 = vadd.f32 %v957_v9, %v4053_v8  ;;  %v2342_v15 = vld [vmem:[#allocation2 + $0xc1] sm:$0xff]  ;;  %v2601_v9 = vld [vmem:[#allocation2 + $0xca] sm:$0xff] }
 0x1d4   : > { %2454 = vmatmul.f32.gmra.mxu3 %v2339_v52 }
 0x1d5   : > { %1940 = vmatmul.f32.gmra.mxu1 %v2596_v13  ;;  %2715 = vmatmul.f32.gmra.mxu0 %v2598_v41 }
 0x1d6   : > { %v1212_v28 = vpop.f32.mrf.mxu2 }
 0x1d7   : > { %v1258_v61 = vadd.f32 %v1212_v28, %v1000_v12  ;;  %v1470_v62 = vpop.f32.mrf.mxu3 }
 0x1d9   : > { %v1516_v44 = vadd.f32 %v1470_v62, %v1258_v61  ;;  %v2085_v61 = vld [vmem:[#allocation2 + $0xc8] sm:$0xff] }
 0x1da   : > { %v960_v3 = vpop.f32.mrf.mxu1  ;;  %v1734_v45 = vpop.f32.mrf.mxu0 }
 0x1db   : > { %v4313_v59 = vadd.f32 %v1728_v29, %v1516_v44  ;;  %2199 = vmatmul.f32.gmra.mxu2 %v2082_v11  ;;  %v1002_v29 = vadd.f32 %v960_v3, %v4067_v53  ;;  %v2343_v11 = vld [vmem:[#allocation2 + $0xc9] sm:$0xff]  ;;  %v2602_v3 = vld [vmem:[#allocation2 + $0xda] sm:$0xff] }
 0x1dc   : > { %2457 = vmatmul.f32.gmra.mxu3 %v2340_v47 }
 0x1dd   : > { %1943 = vmatmul.f32.gmra.mxu1 %v2597_v24  ;;  %2718 = vmatmul.f32.gmra.mxu0 %v2599_v0 }
 0x1de   : > { %v1215_v37 = vpop.f32.mrf.mxu2 }
 0x1df   : > { %v1259_v13 = vadd.f32 %v1215_v37, %v1001_v23  ;;  %v1473_v49 = vpop.f32.mrf.mxu3 }
 0x1e1   : > { %v1517_v50 = vadd.f32 %v1473_v49, %v1259_v13  ;;  %v2086_v13 = vld [vmem:[#allocation2 + $0xd8] sm:$0xff] }
 0x1e2   : > { %v963_v4 = vpop.f32.mrf.mxu1  ;;  %v1737_v46 = vpop.f32.mrf.mxu0 }
 0x1e3   : > { %v4316_v36 = vadd.f32 %v1731_v6, %v1517_v50  ;;  %2202 = vmatmul.f32.gmra.mxu2 %v2083_v27  ;;  %v1003_v6 = vadd.f32 %v963_v4, %v4084_v56  ;;  %v2344_v27 = vld [vmem:[#allocation2 + $0xd9] sm:$0xff]  ;;  %v2603_v4 = vld [vmem:[#allocation2 + $0xe2] sm:$0xff] }
 0x1e4   : > { %2460 = vmatmul.f32.gmra.mxu3 %v2341_v25 }
 0x1e5   : > { %1946 = vmatmul.f32.gmra.mxu1 %v2598_v41  ;;  %2721 = vmatmul.f32.gmra.mxu0 %v2600_v42 }
 0x1e6   : > { %v1218_v8 = vpop.f32.mrf.mxu2 }
 0x1e7   : > { %v1260_v24 = vadd.f32 %v1218_v8, %v1002_v29  ;;  %v1476_v30 = vpop.f32.mrf.mxu3 }
 0x1e9   : > { %v1518_v40 = vadd.f32 %v1476_v30, %v1260_v24  ;;  %v2087_v24 = vld [vmem:[#allocation2 + $0xe0] sm:$0xff] }
 0x1ea   : > { %v966_v34 = vpop.f32.mrf.mxu1  ;;  %v1740_v52 = vpop.f32.mrf.mxu0 }
 0x1eb   : > { %v4319_v12 = vadd.f32 %v1734_v45, %v1518_v40  ;;  %2205 = vmatmul.f32.gmra.mxu2 %v2084_v17  ;;  %v1004_v45 = vadd.f32 %v966_v34, %v4100_v51  ;;  %v2345_v17 = vld [vmem:[#allocation2 + $0xe1] sm:$0xff]  ;;  %v2604_v34 = vld [vmem:[#allocation2 + $0xf2] sm:$0xff] }
 0x1ec   : > { %2463 = vmatmul.f32.gmra.mxu3 %v2342_v15 }
 0x1ed   : > { %1949 = vmatmul.f32.gmra.mxu1 %v2599_v0  ;;  %2724 = vmatmul.f32.gmra.mxu0 %v2601_v9 }
 0x1ee   : > { %v1221_v53 = vpop.f32.mrf.mxu2 }
 0x1ef   : > { %v1261_v41 = vadd.f32 %v1221_v53, %v1003_v6  ;;  %v1479_v28 = vpop.f32.mrf.mxu3 }
 0x1f1   : > { %v1519_v62 = vadd.f32 %v1479_v28, %v1261_v41  ;;  %v2088_v41 = vld [vmem:[#allocation2 + $0xf0] sm:$0xff] }
 0x1f2   : > { %v969_v44 = vpop.f32.mrf.mxu1  ;;  %v1743_v47 = vpop.f32.mrf.mxu0 }
 0x1f3   : > { %v4322_v23 = vadd.f32 %v1737_v46, %v1519_v62  ;;  %2208 = vmatmul.f32.gmra.mxu2 %v2085_v61  ;;  %v1005_v46 = vadd.f32 %v969_v44, %v4115_v20  ;;  %v2346_v61 = vld [vmem:[#allocation2 + $0xf1] sm:$0xff]  ;;  %v2605_v44 = vld [vmem:[#allocation2 + $0xfa] sm:$0xff] }
 0x1f4   : > { %2466 = vmatmul.f32.gmra.mxu3 %v2343_v11 }
 0x1f5   : > { %1952 = vmatmul.f32.gmra.mxu1 %v2600_v42  ;;  %2727 = vmatmul.f32.gmra.mxu0 %v2602_v3 }
 0x1f6   : > { %v1224_v56 = vpop.f32.mrf.mxu2 }
 0x1f7   : > { %v1262_v0 = vadd.f32 %v1224_v56, %v1004_v45  ;;  %v1482_v37 = vpop.f32.mrf.mxu3 }
 0x1f9   : > { %v1520_v49 = vadd.f32 %v1482_v37, %v1262_v0  ;;  %v2089_v0 = vld [vmem:[#allocation2 + $0xf8] sm:$0xff] }
 0x1fa   : > { %v972_v50 = vpop.f32.mrf.mxu1  ;;  %v1746_v25 = vpop.f32.mrf.mxu0 }
 0x1fb   : > { %v4325_v29 = vadd.f32 %v1740_v52, %v1520_v49  ;;  %2211 = vmatmul.f32.gmra.mxu2 %v2086_v13  ;;  %v1006_v52 = vadd.f32 %v972_v50, %v4125_v7  ;;  %v2347_v13 = vld [vmem:[#allocation2 + $0xf9] sm:$0xff]  ;;  %v2606_v50 = vld [vmem:[#allocation2 + $0x10a] sm:$0xff] }
 0x1fc   : > { %2469 = vmatmul.f32.gmra.mxu3 %v2344_v27 }
 0x1fd   : > { %1955 = vmatmul.f32.gmra.mxu1 %v2601_v9  ;;  %2730 = vmatmul.f32.gmra.mxu0 %v2603_v4 }
 0x1fe   : > { %v1227_v51 = vpop.f32.mrf.mxu2 }
 0x1ff   : > { %v1263_v42 = vadd.f32 %v1227_v51, %v1005_v46  ;;  %v1485_v8 = vpop.f32.mrf.mxu3 }
 0x201   : > { %v1521_v30 = vadd.f32 %v1485_v8, %v1263_v42  ;;  %v2090_v42 = vld [vmem:[#allocation2 + $0x108] sm:$0xff] }
 0x202   : > { %v1911_v40 = vpop.f32.mrf.mxu1  ;;  %v2686_v15 = vpop.f32.mrf.mxu0 }
 0x203   : > { %v4328_v6 = vadd.f32 %v1743_v47, %v1521_v30  ;;  %2214 = vmatmul.f32.gmra.mxu2 %v2087_v24  ;;  %v2007_v47 = vadd.f32 %v1911_v40, %v4139_v14  ;;  %v2348_v24 = vld [vmem:[#allocation2 + $0x109] sm:$0xff]  ;;  %v2607_v40 = vld [vmem:[#allocation2 + $0x112] sm:$0xff] }
 0x204   : > { %2472 = vmatmul.f32.gmra.mxu3 %v2345_v17 }
 0x205   : > { %1958 = vmatmul.f32.gmra.mxu1 %v2602_v3  ;;  %2733 = vmatmul.f32.gmra.mxu0 %v2604_v34 }
 0x206   : > { %v1230_v20 = vpop.f32.mrf.mxu2 }
 0x207   : > { %v1264_v9 = vadd.f32 %v1230_v20, %v1006_v52  ;;  %v1488_v53 = vpop.f32.mrf.mxu3 }
 0x209   : > { %v1522_v28 = vadd.f32 %v1488_v53, %v1264_v9 }
 0x20a   : > { %v1914_v62 = vpop.f32.mrf.mxu1  ;;  %v2689_v11 = vpop.f32.mrf.mxu0 }
 0x20b   : > { %v4331_v45 = vadd.f32 %v1746_v25, %v1522_v28  ;;  %2217 = vmatmul.f32.gmra.mxu2 %v2088_v41  ;;  %v2008_v14 = vadd.f32 %v1914_v62, %v4147_v63 }
 0x20c   : > { %2475 = vmatmul.f32.gmra.mxu3 %v2346_v61  ;;  %v2091_v61 = vld [vmem:[#allocation2 + $0x110] sm:$0xff] }
 0x20d   : > { %1961 = vmatmul.f32.gmra.mxu1 %v2603_v4  ;;  %2736 = vmatmul.f32.gmra.mxu0 %v2605_v44 }
 0x20e   : > { %v2170_v7 = vpop.f32.mrf.mxu2 }
 0x20f   : > { %v2266_v3 = vadd.f32 %v2170_v7, %v2007_v47  ;;  %v2428_v56 = vpop.f32.mrf.mxu3  ;;  %v2349_v47 = vld [vmem:[#allocation2 + $0x111] sm:$0xff] }
 0x211   : > { %v2524_v37 = vadd.f32 %v2428_v56, %v2266_v3  ;;  %v2608_v3 = vld [vmem:[#allocation2 + $0x122] sm:$0xff] }
 0x212   : > { %v1917_v49 = vpop.f32.mrf.mxu1  ;;  %v2692_v27 = vpop.f32.mrf.mxu0 }
 0x213   : > { %v2782_v25 = vadd.f32 %v2686_v15, %v2524_v37  ;;  %2220 = vmatmul.f32.gmra.mxu2 %v2089_v0  ;;  %v2009_v15 = vadd.f32 %v1917_v49, %v4162_v1 }
 0x214   : > { %2478 = vmatmul.f32.gmra.mxu3 %v2347_v13 }
 0x215   : > { %2878 = vst [vmem:[%s4339_s20] sm:$0xff] %v2782_v25  ;;  %1964 = vmatmul.f32.gmra.mxu1 %v2604_v34  ;;  %2739 = vmatmul.f32.gmra.mxu0 %v2606_v50  ;;  %v2948_v20 = vmul.f32 %v2782_v25, %v2782_v25 }
 0x216   : > { %v2173_v4 = vpop.f32.mrf.mxu2 }
 0x217   : > { %v2267_v46 = vadd.f32 %v2173_v4, %v2008_v14  ;;  %v2431_v51 = vpop.f32.mrf.mxu3  ;;  %v2092_v14 = vld [vmem:[#allocation2 + $0x120] sm:$0xff] }
 0x219   : > { %v2525_v8 = vadd.f32 %v2431_v51, %v2267_v46  ;;  %v2350_v46 = vld [vmem:[#allocation2 + $0x121] sm:$0xff] }
 0x21a   : > { %v1920_v30 = vpop.f32.mrf.mxu1  ;;  %v2695_v17 = vpop.f32.mrf.mxu0 }
 0x21b   : > { %v2783_v52 = vadd.f32 %v2689_v11, %v2525_v8  ;;  %2223 = vmatmul.f32.gmra.mxu2 %v2090_v42  ;;  %v2010_v1 = vadd.f32 %v1920_v30, %v4171_v16 }
 0x21c   : > { %2481 = vmatmul.f32.gmra.mxu3 %v2348_v24 }
 0x21d   : > { %2879 = vst [vmem:[%s4339_s20 + $0x8] sm:$0xff] %v2783_v52  ;;  %v2910_v63 = vadd.f32 %v2783_v52, %v2782_v25  ;;  %v2949_v34 = vmul.f32 %v2783_v52, %v2783_v52  ;;  %1967 = vmatmul.f32.gmra.mxu1 %v2605_v44  ;;  %2742 = vmatmul.f32.gmra.mxu0 %v2607_v40 }
 0x21e   : > { %v2176_v9 = vpop.f32.mrf.mxu2 }
 0x21f   : > { %v2980_v53 = vadd.f32 %v2949_v34, %v2948_v20  ;;  %v2268_v41 = vadd.f32 %v2176_v9, %v2009_v15  ;;  %v2434_v28 = vpop.f32.mrf.mxu3  ;;  %v2351_v9 = vld [vmem:[#allocation2 + $0x129] sm:$0xff] }
 0x221   : > { %v2526_v62 = vadd.f32 %v2434_v28, %v2268_v41 }
 0x222   : > { %v1923_v7 = vpop.f32.mrf.mxu1  ;;  %v2698_v11 = vpop.f32.mrf.mxu0 }
 0x223   : > { %v2784_v56 = vadd.f32 %v2692_v27, %v2526_v62  ;;  %2226 = vmatmul.f32.gmra.mxu2 %v2091_v61  ;;  %v2609_v27 = vld [vmem:[#allocation2 + $0x12a] sm:$0xff]  ;;  %v2011_v16 = vadd.f32 %v1923_v7, %v4186_v10 }
 0x224   : > { %2484 = vmatmul.f32.gmra.mxu3 %v2349_v47 }
 0x225   : > { %2880 = vst [vmem:[%s4339_s20 + $0x10] sm:$0xff] %v2784_v56  ;;  %v2911_v0 = vadd.f32 %v2910_v63, %v2784_v56  ;;  %v2950_v44 = vmul.f32 %v2784_v56, %v2784_v56  ;;  %1970 = vmatmul.f32.gmra.mxu1 %v2606_v50  ;;  %2745 = vmatmul.f32.gmra.mxu0 %v2608_v3  ;;  %v2093_v63 = vld [vmem:[#allocation2 + $0x128] sm:$0xff] }
 0x226   : > { %v2179_v37 = vpop.f32.mrf.mxu2 }
 0x227   : > { %v2981_v13 = vadd.f32 %v2980_v53, %v2950_v44  ;;  %v2269_v49 = vadd.f32 %v2179_v37, %v2010_v1  ;;  %v2437_v25 = vpop.f32.mrf.mxu3  ;;  %v2094_v1 = vld [vmem:[#allocation2 + $0x138] sm:$0xff] }
 0x228   : > { %v2352_v44 = vld [vmem:[#allocation2 + $0x139] sm:$0xff] }
 0x229   : > { %v2527_v4 = vadd.f32 %v2437_v25, %v2269_v49 }
 0x22a   : > { %v1926_v51 = vpop.f32.mrf.mxu1  ;;  %v2701_v42 = vpop.f32.mrf.mxu0 }
 0x22b   : > { %v2785_v8 = vadd.f32 %v2695_v17, %v2527_v4  ;;  %2229 = vmatmul.f32.gmra.mxu2 %v2092_v14  ;;  %v2610_v17 = vld [vmem:[#allocation2 + $0x13a] sm:$0xff]  ;;  %v2012_v10 = vadd.f32 %v1926_v51, %v4194_v33 }
 0x22c   : > { %2487 = vmatmul.f32.gmra.mxu3 %v2350_v46 }
 0x22d   : > { %2881 = vst [vmem:[%s4339_s20 + $0x18] sm:$0xff] %v2785_v8  ;;  %v2912_v24 = vadd.f32 %v2911_v0, %v2785_v8  ;;  %v2951_v50 = vmul.f32 %v2785_v8, %v2785_v8  ;;  %1973 = vmatmul.f32.gmra.mxu1 %v2607_v40  ;;  %2748 = vmatmul.f32.gmra.mxu0 %v2609_v27  ;;  %v2095_v8 = vld [vmem:[#allocation2 + $0x140] sm:$0xff] }
 0x22e   : > { %v2182_v30 = vpop.f32.mrf.mxu2 }
 0x22f   : > { %v2982_v52 = vadd.f32 %v2981_v13, %v2951_v50  ;;  %v2270_v15 = vadd.f32 %v2182_v30, %v2011_v16  ;;  %v2440_v20 = vpop.f32.mrf.mxu3 }
 0x231   : > { %v2528_v34 = vadd.f32 %v2440_v20, %v2270_v15 }
 0x232   : > { %v1929_v53 = vpop.f32.mrf.mxu1  ;;  %v2704_v41 = vpop.f32.mrf.mxu0 }
 0x233   : > { %v2786_v28 = vadd.f32 %v2698_v11, %v2528_v34  ;;  %2232 = vmatmul.f32.gmra.mxu2 %v2093_v63  ;;  %v2611_v11 = vld [vmem:[#allocation2 + $0x142] sm:$0xff]  ;;  %v2013_v33 = vadd.f32 %v1929_v53, %v4207_v38  ;;  %v2096_v53 = vld [vmem:[#allocation2 + $0x150] sm:$0xff] }
 0x234   : > { %2490 = vmatmul.f32.gmra.mxu3 %v2351_v9 }
 0x235   : > { %2882 = vst [vmem:[%s4339_s20 + $0x20] sm:$0xff] %v2786_v28  ;;  %v2913_v61 = vadd.f32 %v2912_v24, %v2786_v28  ;;  %v2952_v40 = vmul.f32 %v2786_v28, %v2786_v28  ;;  %1976 = vmatmul.f32.gmra.mxu1 %v2608_v3  ;;  %2751 = vmatmul.f32.gmra.mxu0 %v2610_v17  ;;  %v2353_v24 = vld [vmem:[#allocation2 + $0x141] sm:$0xff] }
 0x236   : > { %v2185_v62 = vpop.f32.mrf.mxu2 }
 0x237   : > { %v2983_v47 = vadd.f32 %v2982_v52, %v2952_v40  ;;  %v2271_v7 = vadd.f32 %v2185_v62, %v2012_v10  ;;  %v2443_v56 = vpop.f32.mrf.mxu3  ;;  %v2354_v10 = vld [vmem:[#allocation2 + $0x151] sm:$0xff] }
 0x239   : > { %v2529_v0 = vadd.f32 %v2443_v56, %v2271_v7 }
 0x23a   : > { %v1932_v37 = vpop.f32.mrf.mxu1  ;;  %v2707_v13 = vpop.f32.mrf.mxu0 }
 0x23b   : > { %v2787_v49 = vadd.f32 %v2701_v42, %v2529_v0  ;;  %2235 = vmatmul.f32.gmra.mxu2 %v2094_v1  ;;  %v2612_v42 = vld [vmem:[#allocation2 + $0x152] sm:$0xff]  ;;  %v2014_v38 = vadd.f32 %v1932_v37, %v4213_v57 }
 0x23c   : > { %2493 = vmatmul.f32.gmra.mxu3 %v2352_v44  ;;  %v2097_v44 = vld [vmem:[#allocation2 + $0x158] sm:$0xff] }
 0x23d   : > { %2883 = vst [vmem:[%s4339_s20 + $0x28] sm:$0xff] %v2787_v49  ;;  %v2914_v25 = vadd.f32 %v2913_v61, %v2787_v49  ;;  %v2953_v3 = vmul.f32 %v2787_v49, %v2787_v49  ;;  %1979 = vmatmul.f32.gmra.mxu1 %v2609_v27  ;;  %2754 = vmatmul.f32.gmra.mxu0 %v2611_v11  ;;  %v2355_v49 = vld [vmem:[#allocation2 + $0x159] sm:$0xff] }
 0x23e   : > { %v2188_v14 = vpop.f32.mrf.mxu2 }
 0x23f   : > { %v2984_v4 = vadd.f32 %v2983_v47, %v2953_v3  ;;  %v2272_v46 = vadd.f32 %v2188_v14, %v2013_v33  ;;  %v2446_v51 = vpop.f32.mrf.mxu3 }
 0x241   : > { %v2530_v16 = vadd.f32 %v2446_v51, %v2272_v46 }
 0x242   : > { %v1935_v50 = vpop.f32.mrf.mxu1  ;;  %v2710_v30 = vpop.f32.mrf.mxu0 }
 0x243   : > { %v2788_v52 = vadd.f32 %v2704_v41, %v2530_v16  ;;  %2238 = vmatmul.f32.gmra.mxu2 %v2095_v8  ;;  %v2613_v41 = vld [vmem:[#allocation2 + $0x15a] sm:$0xff]  ;;  %v2015_v57 = vadd.f32 %v1935_v50, %v4234_v5  ;;  %v2098_v16 = vld [vmem:[#allocation2 + $0x168] sm:$0xff] }
 0x244   : > { %2496 = vmatmul.f32.gmra.mxu3 %v2353_v24  ;;  %v2356_v50 = vld [vmem:[#allocation2 + $0x169] sm:$0xff] }
 0x245   : > { %2884 = vst [vmem:[%s4339_s20 + $0x30] sm:$0xff] %v2788_v52  ;;  %v2915_v15 = vadd.f32 %v2914_v25, %v2788_v52  ;;  %v2954_v27 = vmul.f32 %v2788_v52, %v2788_v52  ;;  %1982 = vmatmul.f32.gmra.mxu1 %v2610_v17  ;;  %2757 = vmatmul.f32.gmra.mxu0 %v2612_v42 }
 0x246   : > { %v2191_v20 = vpop.f32.mrf.mxu2 }
 0x247   : > { %v2985_v63 = vadd.f32 %v2984_v4, %v2954_v27  ;;  %v2273_v34 = vadd.f32 %v2191_v20, %v2014_v38  ;;  %v2449_v9 = vpop.f32.mrf.mxu3 }
 0x249   : > { %v2531_v28 = vadd.f32 %v2449_v9, %v2273_v34 }
 0x24a   : > { %v1938_v61 = vpop.f32.mrf.mxu1  ;;  %v2713_v40 = vpop.f32.mrf.mxu0 }
 0x24b   : > { %v2789_v62 = vadd.f32 %v2707_v13, %v2531_v28  ;;  %2241 = vmatmul.f32.gmra.mxu2 %v2096_v53  ;;  %v2614_v13 = vld [vmem:[#allocation2 + $0x16a] sm:$0xff]  ;;  %v2016_v5 = vadd.f32 %v1938_v61, %v4246_v18 }
 0x24c   : > { %2499 = vmatmul.f32.gmra.mxu3 %v2354_v10  ;;  %v2099_v53 = vld [vmem:[#allocation2 + $0x170] sm:$0xff] }
 0x24d   : > { %2885 = vst [vmem:[%s4339_s20 + $0x38] sm:$0xff] %v2789_v62  ;;  %v2916_v47 = vadd.f32 %v2915_v15, %v2789_v62  ;;  %v2955_v17 = vmul.f32 %v2789_v62, %v2789_v62  ;;  %1985 = vmatmul.f32.gmra.mxu1 %v2611_v11  ;;  %2760 = vmatmul.f32.gmra.mxu0 %v2613_v41  ;;  %v2357_v10 = vld [vmem:[#allocation2 + $0x171] sm:$0xff] }
 0x24e   : > { %v2194_v7 = vpop.f32.mrf.mxu2 }
 0x24f   : > { %v2986_v56 = vadd.f32 %v2985_v63, %v2955_v17  ;;  %v2274_v1 = vadd.f32 %v2194_v7, %v2015_v57  ;;  %v2452_v0 = vpop.f32.mrf.mxu3 }
 0x251   : > { %v2532_v37 = vadd.f32 %v2452_v0, %v2274_v1  ;;  %v2100_v0 = vld [vmem:[#allocation2 + $0x180] sm:$0xff] }
 0x252   : > { %v1941_v33 = vpop.f32.mrf.mxu1  ;;  %v2716_v25 = vpop.f32.mrf.mxu0 }
 0x253   : > { %v2790_v3 = vadd.f32 %v2710_v30, %v2532_v37  ;;  %2244 = vmatmul.f32.gmra.mxu2 %v2097_v44  ;;  %v2615_v30 = vld [vmem:[#allocation2 + $0x172] sm:$0xff]  ;;  %v2017_v18 = vadd.f32 %v1941_v33, %v4261_v58  ;;  %v2358_v37 = vld [vmem:[#allocation2 + $0x181] sm:$0xff] }
 0x254   : > { %2502 = vmatmul.f32.gmra.mxu3 %v2355_v49 }
 0x255   : > { %2886 = vst [vmem:[%s4339_s20 + $0x40] sm:$0xff] %v2790_v3  ;;  %v2917_v14 = vadd.f32 %v2916_v47, %v2790_v3  ;;  %v2956_v11 = vmul.f32 %v2790_v3, %v2790_v3  ;;  %1988 = vmatmul.f32.gmra.mxu1 %v2612_v42  ;;  %2763 = vmatmul.f32.gmra.mxu0 %v2614_v13 }
 0x256   : > { %v2197_v4 = vpop.f32.mrf.mxu2 }
 0x257   : > { %v2987_v46 = vadd.f32 %v2986_v56, %v2956_v11  ;;  %v2275_v51 = vadd.f32 %v2197_v4, %v2016_v5  ;;  %v2455_v8 = vpop.f32.mrf.mxu3 }
 0x259   : > { %v2533_v24 = vadd.f32 %v2455_v8, %v2275_v51  ;;  %v2101_v51 = vld [vmem:[#allocation2 + $0x188] sm:$0xff] }
 0x25a   : > { %v1944_v52 = vpop.f32.mrf.mxu1  ;;  %v2719_v38 = vpop.f32.mrf.mxu0 }
 0x25b   : > { %v2791_v15 = vadd.f32 %v2713_v40, %v2533_v24  ;;  %2247 = vmatmul.f32.gmra.mxu2 %v2098_v16  ;;  %v2616_v40 = vld [vmem:[#allocation2 + $0x182] sm:$0xff]  ;;  %v2018_v58 = vadd.f32 %v1944_v52, %v4267_v39  ;;  %v2618_v52 = vld [vmem:[#allocation2 + $0x19a] sm:$0xff] }
 0x25c   : > { %2505 = vmatmul.f32.gmra.mxu3 %v2356_v50  ;;  %v2359_v16 = vld [vmem:[#allocation2 + $0x189] sm:$0xff] }
 0x25d   : > { %2887 = vst [vmem:[%s4339_s20 + $0x48] sm:$0xff] %v2791_v15  ;;  %v2918_v27 = vadd.f32 %v2917_v14, %v2791_v15  ;;  %v2957_v42 = vmul.f32 %v2791_v15, %v2791_v15  ;;  %1991 = vmatmul.f32.gmra.mxu1 %v2613_v41  ;;  %2766 = vmatmul.f32.gmra.mxu0 %v2615_v30 }
 0x25e   : > { %v2200_v20 = vpop.f32.mrf.mxu2 }
 0x25f   : > { %v2988_v63 = vadd.f32 %v2987_v46, %v2957_v42  ;;  %v2276_v34 = vadd.f32 %v2200_v20, %v2017_v18  ;;  %v2458_v9 = vpop.f32.mrf.mxu3 }
 0x261   : > { %v2534_v28 = vadd.f32 %v2458_v9, %v2276_v34  ;;  %v2360_v34 = vld [vmem:[#allocation2 + $0x199] sm:$0xff] }
 0x262   : > { %v1947_v61 = vpop.f32.mrf.mxu1  ;;  %v2722_v62 = vpop.f32.mrf.mxu0 }
 0x263   : > { %v2792_v57 = vadd.f32 %v2716_v25, %v2534_v28  ;;  %2250 = vmatmul.f32.gmra.mxu2 %v2099_v53  ;;  %v2617_v25 = vld [vmem:[#allocation2 + $0x18a] sm:$0xff]  ;;  %v2019_v39 = vadd.f32 %v1947_v61, %v4270_v2  ;;  %v2619_v28 = vld [vmem:[#allocation2 + $0x1a2] sm:$0xff] }
 0x264   : > { %2508 = vmatmul.f32.gmra.mxu3 %v2357_v10  ;;  %v3325_v61 = vld [vmem:[#allocation2] sm:$0xff] }
 0x265   : > { %2888 = vst [vmem:[%s4339_s20 + $0x50] sm:$0xff] %v2792_v57  ;;  %v2919_v47 = vadd.f32 %v2918_v27, %v2792_v57  ;;  %v2958_v41 = vmul.f32 %v2792_v57, %v2792_v57  ;;  %1994 = vmatmul.f32.gmra.mxu1 %v2614_v13  ;;  %2769 = vmatmul.f32.gmra.mxu0 %v2616_v40 }
 0x266   : > { %v2203_v17 = vpop.f32.mrf.mxu2 }
 0x267   : > { %v2989_v7 = vadd.f32 %v2988_v63, %v2958_v41  ;;  %v2277_v56 = vadd.f32 %v2203_v17, %v2018_v58  ;;  %v2461_v1 = vpop.f32.mrf.mxu3 }
 0x269   : > { %v2535_v44 = vadd.f32 %v2461_v1, %v2277_v56 }
 0x26a   : > { %v1950_v49 = vpop.f32.mrf.mxu1  ;;  %v2725_v33 = vpop.f32.mrf.mxu0 }
 0x26b   : > { %v2793_v3 = vadd.f32 %v2719_v38, %v2535_v44  ;;  %2253 = vmatmul.f32.gmra.mxu2 %v2100_v0  ;;  %v2020_v2 = vadd.f32 %v1950_v49, %v4275_v19 }
 0x26c   : > { %2511 = vmatmul.f32.gmra.mxu3 %v2358_v37 }
 0x26d   : > { %2889 = vst [vmem:[%s4339_s20 + $0x58] sm:$0xff] %v2793_v3  ;;  %v2920_v5 = vadd.f32 %v2919_v47, %v2793_v3  ;;  %v2959_v13 = vmul.f32 %v2793_v3, %v2793_v3  ;;  %1997 = vmatmul.f32.gmra.mxu1 %v2615_v30  ;;  %2772 = vmatmul.f32.gmra.mxu0 %v2617_v25 }
 0x26e   : > { %v2206_v14 = vpop.f32.mrf.mxu2 }
 0x26f   : > { %v2990_v11 = vadd.f32 %v2989_v7, %v2959_v13  ;;  %v2278_v4 = vadd.f32 %v2206_v14, %v2019_v39  ;;  %v2464_v46 = vpop.f32.mrf.mxu3  ;;  %v2361_v7 = vld [vmem:[#allocation2 + $0x1a1] sm:$0xff] }
 0x271   : > { %v2536_v8 = vadd.f32 %v2464_v46, %v2278_v4 }
 0x272   : > { %v1953_v24 = vpop.f32.mrf.mxu1  ;;  %v2728_v50 = vpop.f32.mrf.mxu0 }
 0x273   : > { %v2794_v38 = vadd.f32 %v2722_v62, %v2536_v8  ;;  %2256 = vmatmul.f32.gmra.mxu2 %v2101_v51  ;;  %v2021_v19 = vadd.f32 %v1953_v24, %v4280_v35 }
 0x274   : > { %2514 = vmatmul.f32.gmra.mxu3 %v2359_v16 }
 0x275   : > { %2890 = vst [vmem:[%s4339_s20 + $0x60] sm:$0xff] %v2794_v38  ;;  %v2921_v15 = vadd.f32 %v2920_v5, %v2794_v38  ;;  %v2960_v30 = vmul.f32 %v2794_v38, %v2794_v38  ;;  %2000 = vmatmul.f32.gmra.mxu1 %v2616_v40  ;;  %2775 = vmatmul.f32.gmra.mxu0 %v2618_v52 }
 0x276   : > { %v2209_v18 = vpop.f32.mrf.mxu2 }
 0x277   : > { %v2991_v27 = vadd.f32 %v2990_v11, %v2960_v30  ;;  %v2279_v42 = vadd.f32 %v2209_v18, %v2020_v2  ;;  %v2467_v20 = vpop.f32.mrf.mxu3 }
 0x279   : > { %v2537_v63 = vadd.f32 %v2467_v20, %v2279_v42 }
 0x27a   : > { %v1956_v9 = vpop.f32.mrf.mxu1  ;;  %v2731_v53 = vpop.f32.mrf.mxu0 }
 0x27b   : > { %v2795_v10 = vadd.f32 %v2725_v33, %v2537_v63  ;;  %2259 = vmatmul.f32.gmra.mxu2 %v3325_v61  ;;  %v2022_v35 = vadd.f32 %v1956_v9, %v4283_v21 }
 0x27c   : > { %2517 = vmatmul.f32.gmra.mxu3 %v2360_v34 }
 0x27d   : > { %2891 = vst [vmem:[%s4339_s20 + $0x68] sm:$0xff] %v2795_v10  ;;  %v2922_v62 = vadd.f32 %v2921_v15, %v2795_v10  ;;  %v2961_v40 = vmul.f32 %v2795_v10, %v2795_v10  ;;  %2003 = vmatmul.f32.gmra.mxu1 %v2617_v25  ;;  %2778 = vmatmul.f32.gmra.mxu0 %v2619_v28 }
 0x27e   : > { %v2212_v57 = vpop.f32.mrf.mxu2 }
 0x27f   : > { %v2992_v58 = vadd.f32 %v2991_v27, %v2961_v40  ;;  %v2280_v47 = vadd.f32 %v2212_v57, %v2021_v19  ;;  %v2470_v41 = vpop.f32.mrf.mxu3 }
 0x281   : > { %v2538_v17 = vadd.f32 %v2470_v41, %v2280_v47 }
 0x282   : > { %v1959_v56 = vpop.f32.mrf.mxu1  ;;  %v2734_v1 = vpop.f32.mrf.mxu0 }
 0x283   : > { %v2796_v0 = vadd.f32 %v2728_v50, %v2538_v17  ;;  %2262 = vmatmul.f32.gmra.mxu2 %v3325_v61  ;;  %v2023_v11 = vadd.f32 %v1959_v56, %v4286_v55 }
 0x284   : > { %2520 = vmatmul.f32.gmra.mxu3 %v2361_v7 }
 0x285   : > { %2892 = vst [vmem:[%s4339_s20 + $0x70] sm:$0xff] %v2796_v0  ;;  %v2923_v44 = vadd.f32 %v2922_v62, %v2796_v0  ;;  %v2962_v37 = vmul.f32 %v2796_v0, %v2796_v0 }
 0x286   : > { %v2215_v49 = vpop.f32.mrf.mxu2 }
 0x287   : > { %v2993_v33 = vadd.f32 %v2992_v58, %v2962_v37  ;;  %v2281_v25 = vadd.f32 %v2215_v49, %v2022_v35  ;;  %v2473_v3 = vpop.f32.mrf.mxu3 }
 0x289   : > { %v2539_v39 = vadd.f32 %v2473_v3, %v2281_v25 }
 0x28a   : > { %v1962_v5 = vpop.f32.mrf.mxu1  ;;  %v2737_v13 = vpop.f32.mrf.mxu0 }
 0x28b   : > { %v2797_v14 = vadd.f32 %v2731_v53, %v2539_v39  ;;  %v2024_v2 = vadd.f32 %v1962_v5, %v4289_v48 }
 0x28d   : > { %2893 = vst [vmem:[%s4339_s20 + $0x78] sm:$0xff] %v2797_v14  ;;  %v2924_v4 = vadd.f32 %v2923_v44, %v2797_v14  ;;  %v2963_v46 = vmul.f32 %v2797_v14, %v2797_v14 }
 0x28e   : > { %v2218_v51 = vpop.f32.mrf.mxu2 }
 0x28f   : > { %v2994_v8 = vadd.f32 %v2993_v33, %v2963_v46  ;;  %v2282_v21 = vadd.f32 %v2218_v51, %v2023_v11  ;;  %v2476_v16 = vpop.f32.mrf.mxu3 }
 0x291   : > { %v2540_v24 = vadd.f32 %v2476_v16, %v2282_v21 }
 0x292   : > { %v1965_v50 = vpop.f32.mrf.mxu1  ;;  %v2740_v52 = vpop.f32.mrf.mxu0 }
 0x293   : > { %v2798_v38 = vadd.f32 %v2734_v1, %v2540_v24  ;;  %v2025_v53 = vadd.f32 %v1965_v50, %v4292_v22 }
 0x295   : > { %2894 = vst [vmem:[%s4339_s20 + $0x80] sm:$0xff] %v2798_v38  ;;  %v2925_v15 = vadd.f32 %v2924_v4, %v2798_v38  ;;  %v2964_v30 = vmul.f32 %v2798_v38, %v2798_v38 }
 0x296   : > { %v2221_v18 = vpop.f32.mrf.mxu2 }
 0x297   : > { %v2995_v27 = vadd.f32 %v2994_v8, %v2964_v30  ;;  %v2283_v55 = vadd.f32 %v2221_v18, %v2024_v2  ;;  %v2479_v42 = vpop.f32.mrf.mxu3 }
 0x299   : > { %v2541_v20 = vadd.f32 %v2479_v42, %v2283_v55 }
 0x29a   : > { %v1968_v63 = vpop.f32.mrf.mxu1  ;;  %v2743_v34 = vpop.f32.mrf.mxu0 }
 0x29b   : > { %v2799_v9 = vadd.f32 %v2737_v13, %v2541_v20  ;;  %v2026_v41 = vadd.f32 %v1968_v63, %v4295_v60 }
 0x29d   : > { %2895 = vst [vmem:[%s4339_s20 + $0x88] sm:$0xff] %v2799_v9  ;;  %v2926_v28 = vadd.f32 %v2925_v15, %v2799_v9  ;;  %v2965_v10 = vmul.f32 %v2799_v9, %v2799_v9 }
 0x29e   : > { %v2224_v61 = vpop.f32.mrf.mxu2 }
 0x29f   : > { %v2996_v19 = vadd.f32 %v2995_v27, %v2965_v10  ;;  %v2284_v48 = vadd.f32 %v2224_v61, %v2025_v53  ;;  %v2482_v62 = vpop.f32.mrf.mxu3 }
 0x2a1   : > { %v2542_v40 = vadd.f32 %v2482_v62, %v2284_v48 }
 0x2a2   : > { %v1971_v57 = vpop.f32.mrf.mxu1  ;;  %v2746_v58 = vpop.f32.mrf.mxu0 }
 0x2a3   : > { %v2800_v47 = vadd.f32 %v2740_v52, %v2542_v40  ;;  %v2027_v33 = vadd.f32 %v1971_v57, %v4298_v43 }
 0x2a5   : > { %2896 = vst [vmem:[%s4339_s20 + $0x90] sm:$0xff] %v2800_v47  ;;  %v2927_v17 = vadd.f32 %v2926_v28, %v2800_v47  ;;  %v2966_v7 = vmul.f32 %v2800_v47, %v2800_v47 }
 0x2a6   : > { %v2227_v56 = vpop.f32.mrf.mxu2 }
 0x2a7   : > { %v2997_v1 = vadd.f32 %v2996_v19, %v2966_v7  ;;  %v2285_v22 = vadd.f32 %v2227_v56, %v2026_v41  ;;  %v2485_v0 = vpop.f32.mrf.mxu3 }
 0x2a9   : > { %v2543_v35 = vadd.f32 %v2485_v0, %v2285_v22 }
 0x2aa   : > { %v1974_v44 = vpop.f32.mrf.mxu1  ;;  %v2749_v37 = vpop.f32.mrf.mxu0 }
 0x2ab   : > { %v2801_v49 = vadd.f32 %v2743_v34, %v2543_v35  ;;  %v2028_v51 = vadd.f32 %v1974_v44, %v4301_v54 }
 0x2ad   : > { %2897 = vst [vmem:[%s4339_s20 + $0x98] sm:$0xff] %v2801_v49  ;;  %v2928_v25 = vadd.f32 %v2927_v17, %v2801_v49  ;;  %v2967_v3 = vmul.f32 %v2801_v49, %v2801_v49 }
 0x2ae   : > { %v2230_v39 = vpop.f32.mrf.mxu2 }
 0x2af   : > { %v2998_v5 = vadd.f32 %v2997_v1, %v2967_v3  ;;  %v2286_v60 = vadd.f32 %v2230_v39, %v2027_v33  ;;  %v2488_v13 = vpop.f32.mrf.mxu3 }
 0x2b1   : > { %v2544_v14 = vadd.f32 %v2488_v13, %v2286_v60 }
 0x2b2   : > { %v1977_v11 = vpop.f32.mrf.mxu1  ;;  %v2752_v4 = vpop.f32.mrf.mxu0 }
 0x2b3   : > { %v2802_v46 = vadd.f32 %v2746_v58, %v2544_v14  ;;  %v2029_v30 = vadd.f32 %v1977_v11, %v4304_v32 }
 0x2b5   : > { %2898 = vst [vmem:[%s4339_s20 + $0xa0] sm:$0xff] %v2802_v46  ;;  %v2929_v8 = vadd.f32 %v2928_v25, %v2802_v46  ;;  %v2968_v21 = vmul.f32 %v2802_v46, %v2802_v46 }
 0x2b6   : > { %v2233_v16 = vpop.f32.mrf.mxu2 }
 0x2b7   : > { %v2999_v24 = vadd.f32 %v2998_v5, %v2968_v21  ;;  %v2287_v43 = vadd.f32 %v2233_v16, %v2028_v51  ;;  %v2491_v50 = vpop.f32.mrf.mxu3 }
 0x2b9   : > { %v2545_v52 = vadd.f32 %v2491_v50, %v2287_v43 }
 0x2ba   : > { %v1980_v38 = vpop.f32.mrf.mxu1  ;;  %v2755_v2 = vpop.f32.mrf.mxu0 }
 0x2bb   : > { %v2803_v15 = vadd.f32 %v2749_v37, %v2545_v52  ;;  %v2030_v28 = vadd.f32 %v1980_v38, %v4307_v26 }
 0x2bd   : > { %2899 = vst [vmem:[%s4339_s20 + $0xa8] sm:$0xff] %v2803_v15  ;;  %v2930_v18 = vadd.f32 %v2929_v8, %v2803_v15  ;;  %v2969_v27 = vmul.f32 %v2803_v15, %v2803_v15 }
 0x2be   : > { %v2236_v55 = vpop.f32.mrf.mxu2 }
 0x2bf   : > { %v3000_v42 = vadd.f32 %v2999_v24, %v2969_v27  ;;  %v2288_v54 = vadd.f32 %v2236_v55, %v2029_v30  ;;  %v2494_v20 = vpop.f32.mrf.mxu3 }
 0x2c1   : > { %v2546_v63 = vadd.f32 %v2494_v20, %v2288_v54 }
 0x2c2   : > { %v1983_v34 = vpop.f32.mrf.mxu1  ;;  %v2758_v9 = vpop.f32.mrf.mxu0 }
 0x2c3   : > { %v2804_v53 = vadd.f32 %v2752_v4, %v2546_v63  ;;  %v2031_v41 = vadd.f32 %v1983_v34, %v4310_v31 }
 0x2c5   : > { %2900 = vst [vmem:[%s4339_s20 + $0xb0] sm:$0xff] %v2804_v53  ;;  %v2931_v10 = vadd.f32 %v2930_v18, %v2804_v53  ;;  %v2970_v61 = vmul.f32 %v2804_v53, %v2804_v53 }
 0x2c6   : > { %v2239_v19 = vpop.f32.mrf.mxu2 }
 0x2c7   : > { %v3001_v48 = vadd.f32 %v3000_v42, %v2970_v61  ;;  %v2289_v32 = vadd.f32 %v2239_v19, %v2030_v28  ;;  %v2497_v62 = vpop.f32.mrf.mxu3 }
 0x2c9   : > { %v2547_v40 = vadd.f32 %v2497_v62, %v2289_v32 }
 0x2ca   : > { %v1986_v57 = vpop.f32.mrf.mxu1  ;;  %v2761_v47 = vpop.f32.mrf.mxu0 }
 0x2cb   : > { %v2805_v58 = vadd.f32 %v2755_v2, %v2547_v40  ;;  %v2032_v37 = vadd.f32 %v1986_v57, %v4313_v59 }
 0x2cd   : > { %2901 = vst [vmem:[%s4339_s20 + $0xb8] sm:$0xff] %v2805_v58  ;;  %v2932_v17 = vadd.f32 %v2931_v10, %v2805_v58  ;;  %v2971_v7 = vmul.f32 %v2805_v58, %v2805_v58 }
 0x2ce   : > { %v2242_v56 = vpop.f32.mrf.mxu2 }
 0x2cf   : > { %v3002_v1 = vadd.f32 %v3001_v48, %v2971_v7  ;;  %v2290_v26 = vadd.f32 %v2242_v56, %v2031_v41  ;;  %v2500_v22 = vpop.f32.mrf.mxu3 }
 0x2d1   : > { %v2548_v0 = vadd.f32 %v2500_v22, %v2290_v26 }
 0x2d2   : > { %v1989_v35 = vpop.f32.mrf.mxu1  ;;  %v2764_v3 = vpop.f32.mrf.mxu0 }
 0x2d3   : > { %v2806_v44 = vadd.f32 %v2758_v9, %v2548_v0  ;;  %v2033_v11 = vadd.f32 %v1989_v35, %v4316_v36 }
 0x2d5   : > { %2902 = vst [vmem:[%s4339_s20 + $0xc0] sm:$0xff] %v2806_v44  ;;  %v2933_v49 = vadd.f32 %v2932_v17, %v2806_v44  ;;  %v2972_v33 = vmul.f32 %v2806_v44, %v2806_v44 }
 0x2d6   : > { %v2245_v25 = vpop.f32.mrf.mxu2 }
 0x2d7   : > { %v3003_v39 = vadd.f32 %v3002_v1, %v2972_v33  ;;  %v2291_v31 = vadd.f32 %v2245_v25, %v2032_v37  ;;  %v2503_v5 = vpop.f32.mrf.mxu3 }
 0x2d9   : > { %v2549_v60 = vadd.f32 %v2503_v5, %v2291_v31 }
 0x2da   : > { %v1992_v13 = vpop.f32.mrf.mxu1  ;;  %v2767_v16 = vpop.f32.mrf.mxu0 }
 0x2db   : > { %v2807_v14 = vadd.f32 %v2761_v47, %v2549_v60  ;;  %v2034_v52 = vadd.f32 %v1992_v13, %v4319_v12 }
 0x2dd   : > { %2903 = vst [vmem:[%s4339_s20 + $0xc8] sm:$0xff] %v2807_v14  ;;  %v2934_v4 = vadd.f32 %v2933_v49, %v2807_v14  ;;  %v2973_v46 = vmul.f32 %v2807_v14, %v2807_v14 }
 0x2de   : > { %v2248_v51 = vpop.f32.mrf.mxu2 }
 0x2df   : > { %v3004_v8 = vadd.f32 %v3003_v39, %v2973_v46  ;;  %v2292_v59 = vadd.f32 %v2248_v51, %v2033_v11  ;;  %v2506_v21 = vpop.f32.mrf.mxu3 }
 0x2e1   : > { %v2550_v24 = vadd.f32 %v2506_v21, %v2292_v59 }
 0x2e2   : > { %v1995_v50 = vpop.f32.mrf.mxu1  ;;  %v2770_v55 = vpop.f32.mrf.mxu0 }
 0x2e3   : > { %v2808_v43 = vadd.f32 %v2764_v3, %v2550_v24  ;;  %v2035_v54 = vadd.f32 %v1995_v50, %v4322_v23 }
 0x2e5   : > { %2904 = vst [vmem:[%s4339_s20 + $0xd0] sm:$0xff] %v2808_v43  ;;  %v2935_v38 = vadd.f32 %v2934_v4, %v2808_v43  ;;  %v2974_v2 = vmul.f32 %v2808_v43, %v2808_v43 }
 0x2e6   : > { %v2251_v15 = vpop.f32.mrf.mxu2 }
 0x2e7   : > { %v3005_v30 = vadd.f32 %v3004_v8, %v2974_v2  ;;  %v2293_v36 = vadd.f32 %v2251_v15, %v2034_v52  ;;  %v2509_v18 = vpop.f32.mrf.mxu3 }
 0x2e9   : > { %v2551_v27 = vadd.f32 %v2509_v18, %v2293_v36 }
 0x2ea   : > { %v1998_v9 = vpop.f32.mrf.mxu1  ;;  %v2773_v19 = vpop.f32.mrf.mxu0 }
 0x2eb   : > { %v2809_v42 = vadd.f32 %v2767_v16, %v2551_v27  ;;  %v2036_v48 = vadd.f32 %v1998_v9, %v4325_v29 }
 0x2ed   : > { %2905 = vst [vmem:[%s4339_s20 + $0xd8] sm:$0xff] %v2809_v42  ;;  %v2936_v20 = vadd.f32 %v2935_v38, %v2809_v42  ;;  %v2975_v63 = vmul.f32 %v2809_v42, %v2809_v42 }
 0x2ee   : > { %v2254_v34 = vpop.f32.mrf.mxu2 }
 0x2ef   : > { %v3006_v53 = vadd.f32 %v3005_v30, %v2975_v63  ;;  %v2294_v12 = vadd.f32 %v2254_v34, %v2035_v54  ;;  %v2512_v28 = vpop.f32.mrf.mxu3 }
 0x2f1   : > { %v2552_v10 = vadd.f32 %v2512_v28, %v2294_v12 }
 0x2f2   : > { %v2001_v47 = vpop.f32.mrf.mxu1  ;;  %v2776_v22 = vpop.f32.mrf.mxu0 }
 0x2f3   : > { %v2810_v61 = vadd.f32 %v2770_v55, %v2552_v10  ;;  %v2037_v7 = vadd.f32 %v2001_v47, %v4328_v6 }
 0x2f5   : > { %2906 = vst [vmem:[%s4339_s20 + $0xe0] sm:$0xff] %v2810_v61  ;;  %v2937_v32 = vadd.f32 %v2936_v20, %v2810_v61  ;;  %v2976_v62 = vmul.f32 %v2810_v61, %v2810_v61 }
 0x2f6   : > { %v2257_v40 = vpop.f32.mrf.mxu2 }
 0x2f7   : > { %v3007_v57 = vadd.f32 %v3006_v53, %v2976_v62  ;;  %v2295_v23 = vadd.f32 %v2257_v40, %v2036_v48  ;;  %v2515_v58 = vpop.f32.mrf.mxu3 }
 0x2f9   : > { %v2553_v41 = vadd.f32 %v2515_v58, %v2295_v23 }
 0x2fa   : > { %v2004_v37 = vpop.f32.mrf.mxu1  ;;  %v2779_v60 = vpop.f32.mrf.mxu0 }
 0x2fb   : > { %v2811_v17 = vadd.f32 %v2773_v19, %v2553_v41  ;;  %v2038_v33 = vadd.f32 %v2004_v37, %v4331_v45 }
 0x2fd   : > { %2907 = vst [vmem:[%s4339_s20 + $0xe8] sm:$0xff] %v2811_v17  ;;  %v2938_v56 = vadd.f32 %v2937_v32, %v2811_v17  ;;  %v2977_v1 = vmul.f32 %v2811_v17, %v2811_v17 }
 0x2fe   : > { %v2260_v26 = vpop.f32.mrf.mxu2 }
 0x2ff   : > { %v3008_v0 = vadd.f32 %v3007_v57, %v2977_v1  ;;  %v2296_v29 = vadd.f32 %v2260_v26, %v2037_v7  ;;  %v2518_v35 = vpop.f32.mrf.mxu3 }
 0x301   : > { %v2554_v44 = vadd.f32 %v2518_v35, %v2296_v29 }
 0x303   : > { %v2812_v49 = vadd.f32 %v2776_v22, %v2554_v44 }
 0x305   : > { %2908 = vst [vmem:[%s4339_s20 + $0xf0] sm:$0xff] %v2812_v49  ;;  %v2939_v25 = vadd.f32 %v2938_v56, %v2812_v49  ;;  %v2978_v3 = vmul.f32 %v2812_v49, %v2812_v49 }
 0x306   : > { %v2263_v39 = vpop.f32.mrf.mxu2 }
 0x307   : > { %v3009_v31 = vadd.f32 %v3008_v0, %v2978_v3  ;;  %v2297_v6 = vadd.f32 %v2263_v39, %v2038_v33  ;;  %v2521_v5 = vpop.f32.mrf.mxu3 }
 0x309   : > { %v2555_v13 = vadd.f32 %v2521_v5, %v2297_v6 }
 0x30b   : > { %v2813_v14 = vadd.f32 %v2779_v60, %v2555_v13 }
 0x30d   : > { %2909 = vst [vmem:[%s4339_s20 + $0xf8] sm:$0xff] %v2813_v14  ;;  %v2940_v11 = vadd.f32 %v2939_v25, %v2813_v14  ;;  %v2979_v4 = vmul.f32 %v2813_v14, %v2813_v14 }
 0x30f   : > { %v2941_v46 = vrot.slane %v2940_v11, 4  ;;  %v3010_v51 = vadd.f32 %v3009_v31, %v2979_v4 }
 0x311   : > { %v2942_v8 = vadd.f32 %v2941_v46, %v2940_v11  ;;  %v3011_v59 = vrot.slane %v3010_v51, 4 }
 0x313   : > { %v2943_v45 = vrot.slane %v2942_v8, 2  ;;  %v3012_v21 = vadd.f32 %v3011_v59, %v3010_v51 }
 0x315   : > { %v2944_v16 = vadd.f32 %v2943_v45, %v2942_v8  ;;  %v3013_v24 = vrot.slane %v3012_v21, 2 }
 0x317   : > { %v2945_v43 = vrot.slane %v2944_v16, 1  ;;  %v3014_v50 = vadd.f32 %v3013_v24, %v3012_v21 }
 0x319   : > { %v2946_v52 = vadd.f32 %v2945_v43, %v2944_v16  ;;  %v3015_v38 = vrot.slane %v3014_v50, 1 }
 0x31b   : > { %2947 = vst [vmem:[%s265_s24] sm:$0x1] %v2946_v52  ;;  %v3016_v2 = vadd.f32 %v3015_v38, %v3014_v50 }
 0x31d   : > { %3017 = vst [vmem:[%s268_s27] sm:$0x1] %v3016_v2 }
 0x31e PF: > { %s17_s21 = sadd.s32 1, %s3332_s21  }
 0x31f   : > { %p14_p4 = scmp.ge.s32.totalorder %s17_s21, 4  }
 0x321   :  { %16 = sbr.rel (!%p14_p4) target bundleno = 1 (0x1), region = 100 }

</bundles_post_ra>
